<compile_context>
chip_gen: v7x
topology: tpu7x:2x2x1
jax: 0.10.0
libtpu: 0.0.40
codegen_flags: <defaults>
</compile_context>

<pallas_src>
import math
from functools import partial

import jax
import jax.numpy as jnp
from jax import lax
from jax.experimental import pallas as pl
from jax.experimental.pallas import tpu as pltpu

EPS = 1e-5
F32_MAX = float(jnp.finfo(jnp.float32).max)
_HP = lax.Precision.HIGHEST

CFG = dict(
    mamba_d_model=32,
    mamba_layers=2,
    mamba_dropout=0.15,      # dropout: eval semantics => identity
    mamba_pooling="last",
    mamba_indim=4,
    mamba_d_state=8,
    mamba_d_conv=4,
    mamba_expand=2,
)


# ----------------------------- fused Pallas kernel -----------------------------
def _erf(v):
    # Abramowitz & Stegun 7.1.26 (|err| < 1.5e-7); exp/mul/add only (EUP + VPU).
    p = 0.3275911
    a1, a2, a3, a4, a5 = 0.254829592, -0.284496736, 1.421413741, -1.453152027, 1.061405429
    sgn = jnp.where(v >= 0.0, 1.0, -1.0)
    a = jnp.abs(v)
    t = 1.0 / (1.0 + p * a)
    poly = ((((a5 * t + a4) * t + a3) * t + a2) * t + a1) * t
    return sgn * (1.0 - poly * jnp.exp(-a * a))


def _fused_encoder_kernel(x_ref, dvec_ref, w_in_ref, w_x_ref, w_out_ref, slab_ref,
                          out_ref, y_scr, *, BT, L, Din, D, d_inner, d_state,
                          d_conv, n_layers):
    """Whole encoder for BT packed batch elements; residual stays on-chip across layers."""
    BL = BT * L
    dv = dvec_ref[...]                                   # (4+Din+N, D) packed D-lane rows
    in_b, in_g = dv[0:1, :], dv[1:2, :]
    fn_w, fn_b = dv[2:3, :], dv[3:4, :]

    x = x_ref[...]                                       # (BL, Din)
    x = jnp.where(jnp.isnan(x), 0.0, x)                  # nan_to_num: nan -> 0
    x = jnp.clip(x, -F32_MAX, F32_MAX)                   # nan_to_num: +/-inf -> +/-f32max

    # --- input_proj Linear on the VPU (Din=4 broadcast MACs) + RMSNorm + (erf) GELU ---
    y = in_b
    for k in range(Din):
        y = y + x[:, k:k + 1] * dv[4 + k:5 + k, :]       # dv rows 4..4+Din-1 hold in_w
    y = y * lax.rsqrt(jnp.mean(y * y, axis=-1, keepdims=True) + EPS) * in_g
    residual = 0.5 * y * (1.0 + _erf(y * 0.7071067811865476))        # (BL, D)

    # Conv shift masks: valid iff position-within-sequence >= s (handles both the sequence
    # head and the batch-packing boundaries).  Built from iota comparisons only.
    idx = lax.broadcasted_iota(jnp.int32, (BL, d_inner), 0)
    shift_ok = []
    for s in range(1, d_conv):
        ok = idx >= s
        for b in range(1, BT):
            ok = ok & ((idx < b * L) | (idx >= b * L + s))
        shift_ok.append(ok)

    for li in range(n_layers):
        g = dv[4 + Din + li:5 + Din + li, :]             # (1, D) per-layer RMSNorm scale
        slab = slab_ref[li]                              # (d_state+d_conv+3, d_inner)
        A_T = slab[0:d_state, :]                         # already -exp(A_log).T (pack time)
        conv_w = slab[d_state:d_state + d_conv, :]       # (d_conv, d_inner)
        base = d_state + d_conv
        conv_b = slab[base:base + 1, :]
        b_dt = slab[base + 1:base + 2, :]
        d_skip = slab[base + 2:base + 3, :]

        # --- pre-norm RMSNorm ---
        xn = residual * lax.rsqrt(jnp.mean(residual * residual, axis=-1,
                                           keepdims=True) + EPS) * g

        # --- in_proj -> (x, z) ---
        xz = jnp.dot(xn, w_in_ref[li], precision=_HP,
                     preferred_element_type=jnp.float32)             # (BL, 2*d_inner)
        x_in, z = xz[:, :d_inner], xz[:, d_inner:]

        # --- depthwise causal conv1d: XLU rolls + precomputed masks (no per-tap concats) ---
        xc = x_in * conv_w[d_conv - 1:d_conv, :] + conv_b
        for s in range(1, d_conv):
            sh = jnp.where(shift_ok[s - 1], pltpu.roll(x_in, s, axis=0), 0.0)
            xc = xc + sh * conv_w[d_conv - 1 - s:d_conv - s, :]
        u = xc * jax.nn.sigmoid(xc)                      # SiLU(conv(x))

        # --- x_proj (dt_proj folded in at pack time): columns = [delta_pre | B | C] ---
        x_dbl = jnp.dot(u, w_x_ref[li], precision=_HP,
                        preferred_element_type=jnp.float32)          # (BL, d_inner+2*d_state)
        delta = jax.nn.softplus(x_dbl[:, :d_inner] + b_dt)           # (BL, d_inner)
        BCt = x_dbl[:, d_inner:].T                                   # (2*d_state, BL), once/layer
        BmT, CmT = BCt[:d_state, :], BCt[d_state:, :]
        du = delta * u

        # --- hoist all per-step exp / broadcast work off the recurrence critical path ---
        Eb = [jnp.exp(delta[i:i + 1, :] * A_T) for i in range(BL)]   # (d_state, d_inner) each
        Pb = [du[i:i + 1, :] * BmT[:, i:i + 1] for i in range(BL)]   # (d_state, d_inner) each

        # --- selective scan: per-step critical path is a single mul+add; the y-reduce and
        #     its store hang off the chain (kept as static-offset scratch stores for robust
        #     lowering; they are not on the recurrence path). ---
        for b in range(BT):
            h = jnp.zeros((d_state, d_inner), jnp.float32)
            for t in range(L):
                i = b * L + t
                h = Eb[i] * h + Pb[i]
                y_scr[i:i + 1, :] = jnp.sum(h * CmT[:, i:i + 1], axis=0, keepdims=True)

        ys = (y_scr[...] + u * d_skip) * (z * jax.nn.sigmoid(z))     # +D*u, SiLU(z) gate
        residual = residual + jnp.dot(ys, w_out_ref[li], precision=_HP,
                                      preferred_element_type=jnp.float32)

    # --- final LayerNorm on the last token of each packed sequence ('last' pooling, mask=None),
    #     with the trailing nan_to_num(nan=0, posinf=1, neginf=-1) fused in ---
    for b in range(BT):
        last = residual[b * L + L - 1:b * L + L, :]      # (1, D)
        mu = jnp.mean(last, axis=-1, keepdims=True)
        var = jnp.mean((last - mu) * (last - mu), axis=-1, keepdims=True)
        o = (last - mu) * lax.rsqrt(var + EPS) * fn_w + fn_b
        o = jnp.where(jnp.isnan(o), 0.0, o)
        o = jnp.where(o == jnp.inf, 1.0, o)
        o = jnp.where(o == -jnp.inf, -1.0, o)
        out_ref[b:b + 1, :] = o


# ----------------------------- wrapper -----------------------------
def mamba_encoder_forward(x, packed, dims, b_tile=None):
    B, L, Din = x.shape
    D = dims["d_model"]
    if b_tile is None:
        # Pack several batch elements per grid step, but keep >=2 grid steps when possible
        # so v7x's two TensorCores both get work.  Cap to keep the unrolled scan reasonable.
        b_tile = min(8, max(1, B // 2))
        while B % b_tile:
            b_tile -= 1
    G = B // b_tile
    BL = b_tile * L
    xg = x.reshape(G, BL, Din)

    kernel = partial(_fused_encoder_kernel, BT=b_tile, L=L, Din=Din, D=D,
                     d_inner=dims["d_inner"], d_state=dims["d_state"],
                     d_conv=dims["d_conv"], n_layers=dims["n_layers"])
    dvec, w_in, w_x, w_out, slab = (packed["dvec"], packed["w_in"], packed["w_x"],
                                    packed["w_out"], packed["slab"])
    out = pl.pallas_call(
        kernel,
        out_shape=jax.ShapeDtypeStruct((G, b_tile, D), jnp.float32),
        grid=(G,),
        in_specs=[
            pl.BlockSpec((None, BL, Din), lambda g: (g, 0, 0)),   # x (packed batch group)
            pl.BlockSpec(dvec.shape, lambda g: (0, 0)),           # packed D-lane vectors
            pl.BlockSpec(w_in.shape, lambda g: (0, 0, 0)),        # (N, D, 2*d_inner)
            pl.BlockSpec(w_x.shape, lambda g: (0, 0, 0)),         # (N, d_inner, d_inner+2*d_state)
            pl.BlockSpec(w_out.shape, lambda g: (0, 0, 0)),       # (N, d_inner, D)
            pl.BlockSpec(slab.shape, lambda g: (0, 0, 0)),        # packed d_inner-lane slab
        ],
        out_specs=pl.BlockSpec((None, b_tile, D), lambda g: (g, 0, 0)),
        scratch_shapes=[pltpu.VMEM((BL, dims["d_inner"]), jnp.float32)],
        compiler_params=pltpu.CompilerParams(dimension_semantics=("parallel",)),
    )(xg, dvec, w_in, w_x, w_out, slab)
    return out.reshape(B, D), None


# ----------------------------- parameters -----------------------------
def make_params(key, cfg):
    d_model = cfg["mamba_d_model"]
    n_layers = cfg["mamba_layers"]
    input_dim = cfg["mamba_indim"]
    d_state = cfg["mamba_d_state"]
    d_conv = cfg["mamba_d_conv"]
    d_inner = cfg["mamba_expand"] * d_model
    dt_rank = math.ceil(d_model / 16)

    keys = iter(jax.random.split(key, 8 * n_layers + 8))

    def xavier(k, fan_out, fan_in, gain=0.8):
        lim = gain * math.sqrt(6.0 / (fan_in + fan_out))
        return jax.random.uniform(k, (fan_out, fan_in), jnp.float32, -lim, lim)

    p = {}
    # input_proj: Linear(input_dim -> d_model) (xavier gain 0.8, bias 0.01) + RMSNorm(scale=1)
    p["in_w"] = xavier(next(keys), d_model, input_dim).T                 # (Din, D)
    p["in_b"] = jnp.full((1, d_model), 0.01, jnp.float32)
    p["in_g"] = jnp.ones((1, d_model), jnp.float32)

    layers = []
    for _ in range(n_layers):
        lp = {}
        lp["norm_g"] = jnp.ones((1, d_model), jnp.float32)
        lp["w_in"] = xavier(next(keys), 2 * d_inner, d_model).T          # (D, 2*d_inner)
        bound = 1.0 / math.sqrt(d_conv)
        lp["conv_w"] = jax.random.uniform(next(keys), (d_conv, d_inner), jnp.float32, -bound, bound)
        lp["conv_b"] = jax.random.uniform(next(keys), (1, d_inner), jnp.float32, -bound, bound)
        lp["w_x"] = xavier(next(keys), dt_rank + 2 * d_state, d_inner).T  # (d_inner, dt_rank+2*d_state)
        lp["w_dt"] = xavier(next(keys), d_inner, dt_rank).T              # (dt_rank, d_inner)
        lp["b_dt"] = jnp.full((1, d_inner), 0.01, jnp.float32)           # _init_weights: bias=0.01
        lp["A_log"] = jnp.log(jnp.tile(jnp.arange(1, d_state + 1, dtype=jnp.float32)[None, :],
                                       (d_inner, 1)))                    # (d_inner, d_state)
        lp["D"] = jnp.ones((1, d_inner), jnp.float32)
        lp["w_out"] = xavier(next(keys), d_model, d_inner).T             # (d_inner, D)
        layers.append(lp)
    p["layers"] = layers

    p["fn_w"] = jnp.ones((1, d_model), jnp.float32)                      # final nn.LayerNorm
    p["fn_b"] = jnp.zeros((1, d_model), jnp.float32)

    dims = dict(d_model=d_model, d_inner=d_inner, d_state=d_state, dt_rank=dt_rank,
                d_conv=d_conv, input_dim=input_dim, n_layers=n_layers)
    return p, dims


def pack_params(p, dims):
    """Pack the tiny per-layer tensors into lane-dense slabs; fold dt_proj / -exp(A_log).T."""
    layers = p["layers"]
    dt_rank = dims["dt_rank"]
    # D-lane slab: rows = [in_b, in_g, fn_w, fn_b, in_w (Din rows), norm_g (N rows)]
    dvec = jnp.concatenate(
        [p["in_b"], p["in_g"], p["fn_w"], p["fn_b"], p["in_w"]]
        + [lp["norm_g"] for lp in layers], axis=0)

    w_x_folded, slabs = [], []
    for lp in layers:
        # Exact identity: u @ W_x[:, :dt_rank] @ W_dt == u @ W_delta (softplus applied after).
        w_delta = jnp.dot(lp["w_x"][:, :dt_rank], lp["w_dt"], precision=_HP)  # (d_inner, d_inner)
        w_x_folded.append(jnp.concatenate([w_delta, lp["w_x"][:, dt_rank:]], axis=1))
        a_t = (-jnp.exp(lp["A_log"])).T                                       # (d_state, d_inner)
        # d_inner-lane slab per layer: rows = [A_T, conv_w, conv_b, b_dt, D]
        slabs.append(jnp.concatenate([a_t, lp["conv_w"], lp["conv_b"],
                                      lp["b_dt"], lp["D"]], axis=0))
    return dict(
        dvec=dvec,
        slab=jnp.stack(slabs, axis=0),
        w_in=jnp.stack([lp["w_in"] for lp in layers], axis=0),
        w_x=jnp.stack(w_x_folded, axis=0),
        w_out=jnp.stack([lp["w_out"] for lp in layers], axis=0),
    )


# ----------------------------- plain-JAX reference -----------------------------
def reference_forward(x, params, dims):
    hp = lax.Precision.HIGHEST
    d_inner, d_state = dims["d_inner"], dims["d_state"]
    dt_rank, d_conv = dims["dt_rank"], dims["d_conv"]
    B, L, Din = x.shape
    x = jnp.nan_to_num(x, nan=0.0)

    y = jnp.dot(x.reshape(B * L, Din), params["in_w"], precision=hp) + params["in_b"]
    y = y / jnp.sqrt(jnp.mean(y * y, -1, keepdims=True) + EPS) * params["in_g"]
    y = jax.nn.gelu(y, approximate=False)
    res = y.reshape(B, L, -1)

    for lp in params["layers"]:
        rms = jnp.sqrt(jnp.mean(res * res, -1, keepdims=True) + EPS)
        xn = res / rms * lp["norm_g"]
        xz = jnp.einsum("bld,de->ble", xn, lp["w_in"], precision=hp)
        x_in, z = xz[..., :d_inner], xz[..., d_inner:]
        xpad = jnp.pad(x_in, ((0, 0), (d_conv - 1, 0), (0, 0)))
        xc = sum(xpad[:, k:k + L, :] * lp["conv_w"][k] for k in range(d_conv)) + lp["conv_b"]
        u = xc * jax.nn.sigmoid(xc)
        x_dbl = jnp.einsum("bld,de->ble", u, lp["w_x"], precision=hp)
        dt = x_dbl[..., :dt_rank]
        Bm = x_dbl[..., dt_rank:dt_rank + d_state]
        Cm = x_dbl[..., dt_rank + d_state:]
        delta = jax.nn.softplus(jnp.einsum("blr,rd->bld", dt, lp["w_dt"], precision=hp) + lp["b_dt"])
        A = -jnp.exp(lp["A_log"])

        def step(h, inp):
            d_t, u_t, B_t, C_t = inp
            h = jnp.exp(d_t[..., None] * A) * h + (d_t * u_t)[..., None] * B_t[:, None, :]
            return h, jnp.sum(h * C_t[:, None, :], -1)

        h0 = jnp.zeros((B, d_inner, d_state), jnp.float32)
        _, ys = lax.scan(step, h0, (delta.transpose(1, 0, 2), u.transpose(1, 0, 2),
                                    Bm.transpose(1, 0, 2), Cm.transpose(1, 0, 2)))
        ysc = ys.transpose(1, 0, 2) + u * lp["D"]
        ysc = ysc * (z * jax.nn.sigmoid(z))
        res = res + jnp.einsum("bld,de->ble", ysc, lp["w_out"], precision=hp)

    mu = jnp.mean(res, -1, keepdims=True)
    var = jnp.mean((res - mu) ** 2, -1, keepdims=True)
    xf = (res - mu) / jnp.sqrt(var + EPS) * params["fn_w"] + params["fn_b"]
    out = xf[:, -1, :]
    return jnp.nan_to_num(out, nan=0.0, posinf=1.0, neginf=-1.0)


if __name__ == "__main__":
    key = jax.random.PRNGKey(0)
    pkey, xkey = jax.random.split(key)
    params, dims = make_params(pkey, CFG)
    packed = pack_params(params, dims)

    B, L = 4, 8
    x = jax.random.normal(xkey, (B, L, CFG["mamba_indim"]), jnp.float32)

    out, aux = mamba_encoder_forward(x, packed, dims)   # B=4 -> b_tile=2, grid=(2,)
    out = jax.block_until_ready(out)
    assert aux is None
    assert out.shape == (B, CFG["mamba_d_model"])
    assert bool(jnp.all(jnp.isfinite(out)))

    ref = reference_forward(x, params, dims)
    err = float(jnp.max(jnp.abs(out - ref)))
    assert err < 5e-3, f"Pallas output mismatch vs plain-JAX reference: max|diff|={err}"

    print("KERNEL_OK")
</pallas_src>

<mosaic_0001>
module attributes {stable_mosaic.version = 11 : i64} {
  func.func @_fused_encoder_kernel(%arg0: i32, %arg1: memref<1x16x4xf32, #tpu.memory_space<vmem>>, %arg2: memref<10x32xf32, #tpu.memory_space<vmem>>, %arg3: memref<2x32x128xf32, #tpu.memory_space<vmem>>, %arg4: memref<2x64x80xf32, #tpu.memory_space<vmem>>, %arg5: memref<2x64x32xf32, #tpu.memory_space<vmem>>, %arg6: memref<2x15x64xf32, #tpu.memory_space<vmem>>, %arg7: memref<1x2x32xf32, #tpu.memory_space<vmem>>, %arg8: memref<16x64xf32, #tpu.memory_space<vmem>>) attributes {dimension_semantics = [#tpu.dimension_semantics<parallel>], iteration_bounds = array<i64: 2>, scalar_prefetch = 0 : i64, scratch_operands = 1 : i64, tpu.core_type = #tpu.core_type<tc>, window_params = [{transform_indices = @transform_0, window_bounds = array<i64: 1, 16, 4>}, {pipeline_mode = #tpu.pipeline_mode<synchronous>, transform_indices = @transform_1, window_bounds = array<i64: 10, 32>}, {pipeline_mode = #tpu.pipeline_mode<synchronous>, transform_indices = @transform_2, window_bounds = array<i64: 2, 32, 128>}, {pipeline_mode = #tpu.pipeline_mode<synchronous>, transform_indices = @transform_3, window_bounds = array<i64: 2, 64, 80>}, {pipeline_mode = #tpu.pipeline_mode<synchronous>, transform_indices = @transform_4, window_bounds = array<i64: 2, 64, 32>}, {pipeline_mode = #tpu.pipeline_mode<synchronous>, transform_indices = @transform_5, window_bounds = array<i64: 2, 15, 64>}, {transform_indices = @transform_6, window_bounds = array<i64: 1, 2, 32>}]} {
    %c0 = arith.constant 0 : index
    %c0_0 = arith.constant 0 : index
    %0 = vector.load %arg2[%c0, %c0_0] : memref<10x32xf32, #tpu.memory_space<vmem>>, vector<10x32xf32>
    %1 = vector.extract_strided_slice %0 {offsets = [0, 0], sizes = [1, 32], strides = [1, 1]} : vector<10x32xf32> to vector<1x32xf32>
    %2 = vector.extract_strided_slice %0 {offsets = [1, 0], sizes = [1, 32], strides = [1, 1]} : vector<10x32xf32> to vector<1x32xf32>
    %3 = vector.extract_strided_slice %0 {offsets = [2, 0], sizes = [1, 32], strides = [1, 1]} : vector<10x32xf32> to vector<1x32xf32>
    %4 = vector.extract_strided_slice %0 {offsets = [3, 0], sizes = [1, 32], strides = [1, 1]} : vector<10x32xf32> to vector<1x32xf32>
    %c0_1 = arith.constant 0 : index
    %c0_2 = arith.constant 0 : index
    %c0_3 = arith.constant 0 : index
    %5 = vector.load %arg1[%c0_1, %c0_2, %c0_3] : memref<1x16x4xf32, #tpu.memory_space<vmem>>, vector<1x16x4xf32>
    %6 = vector.shape_cast %5 : vector<1x16x4xf32> to vector<16x4xf32>
    %7 = arith.cmpf one, %6, %6 : vector<16x4xf32>
    %cst = arith.constant 0.000000e+00 : f32
    %8 = vector.broadcast %cst : f32 to vector<16x4xf32>
    %9 = arith.select %7, %8, %6 : vector<16x4xi1>, vector<16x4xf32>
    %cst_4 = arith.constant -3.40282347E+38 : f32
    %cst_5 = arith.constant 3.40282347E+38 : f32
    %10 = vector.broadcast %cst_4 : f32 to vector<16x4xf32>
    %11 = arith.maximumf %10, %9 : vector<16x4xf32>
    %12 = vector.broadcast %cst_5 : f32 to vector<16x4xf32>
    %13 = arith.minimumf %12, %11 : vector<16x4xf32>
    %14 = vector.extract_strided_slice %13 {offsets = [0, 0], sizes = [16, 1], strides = [1, 1]} : vector<16x4xf32> to vector<16x1xf32>
    %15 = vector.extract_strided_slice %0 {offsets = [4, 0], sizes = [1, 32], strides = [1, 1]} : vector<10x32xf32> to vector<1x32xf32>
    %16 = vector.broadcast %14 : vector<16x1xf32> to vector<16x32xf32>
    %17 = vector.broadcast %15 : vector<1x32xf32> to vector<16x32xf32>
    %18 = arith.mulf %16, %17 : vector<16x32xf32>
    %19 = vector.broadcast %1 : vector<1x32xf32> to vector<16x32xf32>
    %20 = arith.addf %19, %18 : vector<16x32xf32>
    %21 = vector.extract_strided_slice %13 {offsets = [0, 1], sizes = [16, 1], strides = [1, 1]} : vector<16x4xf32> to vector<16x1xf32>
    %22 = vector.extract_strided_slice %0 {offsets = [5, 0], sizes = [1, 32], strides = [1, 1]} : vector<10x32xf32> to vector<1x32xf32>
    %23 = vector.broadcast %21 : vector<16x1xf32> to vector<16x32xf32>
    %24 = vector.broadcast %22 : vector<1x32xf32> to vector<16x32xf32>
    %25 = arith.mulf %23, %24 : vector<16x32xf32>
    %26 = arith.addf %20, %25 : vector<16x32xf32>
    %27 = vector.extract_strided_slice %13 {offsets = [0, 2], sizes = [16, 1], strides = [1, 1]} : vector<16x4xf32> to vector<16x1xf32>
    %28 = vector.extract_strided_slice %0 {offsets = [6, 0], sizes = [1, 32], strides = [1, 1]} : vector<10x32xf32> to vector<1x32xf32>
    %29 = vector.broadcast %27 : vector<16x1xf32> to vector<16x32xf32>
    %30 = vector.broadcast %28 : vector<1x32xf32> to vector<16x32xf32>
    %31 = arith.mulf %29, %30 : vector<16x32xf32>
    %32 = arith.addf %26, %31 : vector<16x32xf32>
    %33 = vector.extract_strided_slice %13 {offsets = [0, 3], sizes = [16, 1], strides = [1, 1]} : vector<16x4xf32> to vector<16x1xf32>
    %34 = vector.extract_strided_slice %0 {offsets = [7, 0], sizes = [1, 32], strides = [1, 1]} : vector<10x32xf32> to vector<1x32xf32>
    %35 = vector.broadcast %33 : vector<16x1xf32> to vector<16x32xf32>
    %36 = vector.broadcast %34 : vector<1x32xf32> to vector<16x32xf32>
    %37 = arith.mulf %35, %36 : vector<16x32xf32>
    %38 = arith.addf %32, %37 : vector<16x32xf32>
    %39 = arith.mulf %38, %38 : vector<16x32xf32>
    %cst_6 = arith.constant dense<0.000000e+00> : vector<16xf32>
    %40 = vector.multi_reduction <add>, %39, %cst_6 [1] : vector<16x32xf32> to vector<16xf32>
    %41 = vector.shape_cast %40 : vector<16xf32> to vector<16x1xf32>
    %cst_7 = arith.constant 3.200000e+01 : f32
    %42 = vector.broadcast %cst_7 : f32 to vector<16x1xf32>
    %43 = arith.divf %41, %42 : vector<16x1xf32>
    %cst_8 = arith.constant 9.99999974E-6 : f32
    %44 = vector.broadcast %cst_8 : f32 to vector<16x1xf32>
    %45 = arith.addf %43, %44 : vector<16x1xf32>
    %46 = math.rsqrt %45 : vector<16x1xf32>
    %47 = vector.broadcast %46 : vector<16x1xf32> to vector<16x32xf32>
    %48 = arith.mulf %38, %47 : vector<16x32xf32>
    %49 = vector.broadcast %2 : vector<1x32xf32> to vector<16x32xf32>
    %50 = arith.mulf %48, %49 : vector<16x32xf32>
    %cst_9 = arith.constant 5.000000e-01 : f32
    %51 = vector.broadcast %cst_9 : f32 to vector<16x32xf32>
    %52 = arith.mulf %51, %50 : vector<16x32xf32>
    %cst_10 = arith.constant 0.707106769 : f32
    %53 = vector.broadcast %cst_10 : f32 to vector<16x32xf32>
    %54 = arith.mulf %50, %53 : vector<16x32xf32>
    %cst_11 = arith.constant 0.000000e+00 : f32
    %55 = vector.broadcast %cst_11 : f32 to vector<16x32xf32>
    %56 = arith.cmpf oge, %54, %55 : vector<16x32xf32>
    %cst_12 = arith.constant 1.000000e+00 : f32
    %cst_13 = arith.constant -1.000000e+00 : f32
    %57 = vector.broadcast %cst_12 : f32 to vector<16x32xf32>
    %58 = vector.broadcast %cst_13 : f32 to vector<16x32xf32>
    %59 = arith.select %56, %57, %58 : vector<16x32xi1>, vector<16x32xf32>
    %60 = math.absf %54 : vector<16x32xf32>
    %cst_14 = arith.constant 0.327591091 : f32
    %61 = vector.broadcast %cst_14 : f32 to vector<16x32xf32>
    %62 = arith.mulf %61, %60 : vector<16x32xf32>
    %cst_15 = arith.constant 1.000000e+00 : f32
    %63 = vector.broadcast %cst_15 : f32 to vector<16x32xf32>
    %64 = arith.addf %63, %62 : vector<16x32xf32>
    %cst_16 = arith.constant 1.000000e+00 : f32
    %65 = vector.broadcast %cst_16 : f32 to vector<16x32xf32>
    %66 = arith.divf %65, %64 : vector<16x32xf32>
    %cst_17 = arith.constant 1.06140542 : f32
    %67 = vector.broadcast %cst_17 : f32 to vector<16x32xf32>
    %68 = arith.mulf %67, %66 : vector<16x32xf32>
    %cst_18 = arith.constant -1.45315206 : f32
    %69 = vector.broadcast %cst_18 : f32 to vector<16x32xf32>
    %70 = arith.addf %68, %69 : vector<16x32xf32>
    %71 = arith.mulf %70, %66 : vector<16x32xf32>
    %cst_19 = arith.constant 1.42141378 : f32
    %72 = vector.broadcast %cst_19 : f32 to vector<16x32xf32>
    %73 = arith.addf %71, %72 : vector<16x32xf32>
    %74 = arith.mulf %73, %66 : vector<16x32xf32>
    %cst_20 = arith.constant -0.284496725 : f32
    %75 = vector.broadcast %cst_20 : f32 to vector<16x32xf32>
    %76 = arith.addf %74, %75 : vector<16x32xf32>
    %77 = arith.mulf %76, %66 : vector<16x32xf32>
    %cst_21 = arith.constant 0.254829586 : f32
    %78 = vector.broadcast %cst_21 : f32 to vector<16x32xf32>
    %79 = arith.addf %77, %78 : vector<16x32xf32>
    %80 = arith.mulf %79, %66 : vector<16x32xf32>
    %cst_22 = arith.constant 0.000000e+00 : f32
    %81 = vector.broadcast %cst_22 : f32 to vector<16x32xf32>
    %82 = arith.subf %81, %60 : vector<16x32xf32>
    %83 = arith.mulf %82, %60 : vector<16x32xf32>
    %84 = math.exp %83 : vector<16x32xf32>
    %85 = arith.mulf %80, %84 : vector<16x32xf32>
    %cst_23 = arith.constant 1.000000e+00 : f32
    %86 = vector.broadcast %cst_23 : f32 to vector<16x32xf32>
    %87 = arith.subf %86, %85 : vector<16x32xf32>
    %88 = arith.mulf %59, %87 : vector<16x32xf32>
    %cst_24 = arith.constant 1.000000e+00 : f32
    %89 = vector.broadcast %cst_24 : f32 to vector<16x32xf32>
    %90 = arith.addf %89, %88 : vector<16x32xf32>
    %91 = arith.mulf %52, %90 : vector<16x32xf32>
    %92 = tpu.iota {dimensions = array<i32: 0>} : vector<16x64xi32>
    %c1_i32 = arith.constant 1 : i32
    %93 = vector.broadcast %c1_i32 : i32 to vector<16x64xi32>
    %94 = arith.cmpi sge, %92, %93 : vector<16x64xi32>
    %c8_i32 = arith.constant 8 : i32
    %95 = vector.broadcast %c8_i32 : i32 to vector<16x64xi32>
    %96 = arith.cmpi slt, %92, %95 : vector<16x64xi32>
    %c9_i32 = arith.constant 9 : i32
    %97 = vector.broadcast %c9_i32 : i32 to vector<16x64xi32>
    %98 = arith.cmpi sge, %92, %97 : vector<16x64xi32>
    %99 = arith.ori %96, %98 : vector<16x64xi1>
    %100 = arith.andi %94, %99 : vector<16x64xi1>
    %c2_i32 = arith.constant 2 : i32
    %101 = vector.broadcast %c2_i32 : i32 to vector<16x64xi32>
    %102 = arith.cmpi sge, %92, %101 : vector<16x64xi32>
    %c8_i32_25 = arith.constant 8 : i32
    %103 = vector.broadcast %c8_i32_25 : i32 to vector<16x64xi32>
    %104 = arith.cmpi slt, %92, %103 : vector<16x64xi32>
    %c10_i32 = arith.constant 10 : i32
    %105 = vector.broadcast %c10_i32 : i32 to vector<16x64xi32>
    %106 = arith.cmpi sge, %92, %105 : vector<16x64xi32>
    %107 = arith.ori %104, %106 : vector<16x64xi1>
    %108 = arith.andi %102, %107 : vector<16x64xi1>
    %c3_i32 = arith.constant 3 : i32
    %109 = vector.broadcast %c3_i32 : i32 to vector<16x64xi32>
    %110 = arith.cmpi sge, %92, %109 : vector<16x64xi32>
    %c8_i32_26 = arith.constant 8 : i32
    %111 = vector.broadcast %c8_i32_26 : i32 to vector<16x64xi32>
    %112 = arith.cmpi slt, %92, %111 : vector<16x64xi32>
    %c11_i32 = arith.constant 11 : i32
    %113 = vector.broadcast %c11_i32 : i32 to vector<16x64xi32>
    %114 = arith.cmpi sge, %92, %113 : vector<16x64xi32>
    %115 = arith.ori %112, %114 : vector<16x64xi1>
    %116 = arith.andi %110, %115 : vector<16x64xi1>
    %117 = vector.extract_strided_slice %0 {offsets = [8, 0], sizes = [1, 32], strides = [1, 1]} : vector<10x32xf32> to vector<1x32xf32>
    %c0_27 = arith.constant 0 : index
    %c0_28 = arith.constant 0 : index
    %c0_29 = arith.constant 0 : index
    %118 = vector.load %arg6[%c0_27, %c0_28, %c0_29] : memref<2x15x64xf32, #tpu.memory_space<vmem>>, vector<1x15x64xf32>
    %119 = vector.shape_cast %118 : vector<1x15x64xf32> to vector<15x64xf32>
    %120 = vector.extract_strided_slice %119 {offsets = [0, 0], sizes = [8, 64], strides = [1, 1]} : vector<15x64xf32> to vector<8x64xf32>
    %121 = vector.extract_strided_slice %119 {offsets = [8, 0], sizes = [4, 64], strides = [1, 1]} : vector<15x64xf32> to vector<4x64xf32>
    %122 = vector.extract_strided_slice %119 {offsets = [12, 0], sizes = [1, 64], strides = [1, 1]} : vector<15x64xf32> to vector<1x64xf32>
    %123 = vector.extract_strided_slice %119 {offsets = [13, 0], sizes = [1, 64], strides = [1, 1]} : vector<15x64xf32> to vector<1x64xf32>
    %124 = vector.extract_strided_slice %119 {offsets = [14, 0], sizes = [1, 64], strides = [1, 1]} : vector<15x64xf32> to vector<1x64xf32>
    %125 = arith.mulf %91, %91 : vector<16x32xf32>
    %cst_30 = arith.constant dense<0.000000e+00> : vector<16xf32>
    %126 = vector.multi_reduction <add>, %125, %cst_30 [1] : vector<16x32xf32> to vector<16xf32>
    %127 = vector.shape_cast %126 : vector<16xf32> to vector<16x1xf32>
    %cst_31 = arith.constant 3.200000e+01 : f32
    %128 = vector.broadcast %cst_31 : f32 to vector<16x1xf32>
    %129 = arith.divf %127, %128 : vector<16x1xf32>
    %cst_32 = arith.constant 9.99999974E-6 : f32
    %130 = vector.broadcast %cst_32 : f32 to vector<16x1xf32>
    %131 = arith.addf %129, %130 : vector<16x1xf32>
    %132 = math.rsqrt %131 : vector<16x1xf32>
    %133 = vector.broadcast %132 : vector<16x1xf32> to vector<16x32xf32>
    %134 = arith.mulf %91, %133 : vector<16x32xf32>
    %135 = vector.broadcast %117 : vector<1x32xf32> to vector<16x32xf32>
    %136 = arith.mulf %134, %135 : vector<16x32xf32>
    %c0_33 = arith.constant 0 : index
    %c0_34 = arith.constant 0 : index
    %c0_35 = arith.constant 0 : index
    %137 = vector.load %arg3[%c0_33, %c0_34, %c0_35] : memref<2x32x128xf32, #tpu.memory_space<vmem>>, vector<1x32x128xf32>
    %138 = vector.shape_cast %137 : vector<1x32x128xf32> to vector<32x128xf32>
    %cst_36 = arith.constant dense<0.000000e+00> : vector<16x128xf32>
    %139 = tpu.matmul %136, %138, %cst_36 {dimension_numbers = #tpu.dot_dimension_numbers<[1], [0], [0], [1], [0, 0, 1, 1], [], []>, precision = #tpu.contract_precision<fp32>} : vector<16x32xf32>, vector<32x128xf32>, vector<16x128xf32> -> vector<16x128xf32>
    %140 = vector.extract_strided_slice %139 {offsets = [0, 0], sizes = [16, 64], strides = [1, 1]} : vector<16x128xf32> to vector<16x64xf32>
    %141 = vector.extract_strided_slice %139 {offsets = [0, 64], sizes = [16, 64], strides = [1, 1]} : vector<16x128xf32> to vector<16x64xf32>
    %142 = vector.extract_strided_slice %121 {offsets = [3, 0], sizes = [1, 64], strides = [1, 1]} : vector<4x64xf32> to vector<1x64xf32>
    %143 = vector.broadcast %142 : vector<1x64xf32> to vector<16x64xf32>
    %144 = arith.mulf %140, %143 : vector<16x64xf32>
    %145 = vector.broadcast %122 : vector<1x64xf32> to vector<16x64xf32>
    %146 = arith.addf %144, %145 : vector<16x64xf32>
    %c1_i32_37 = arith.constant 1 : i32
    %147 = tpu.dynamic_rotate %140 by %c1_i32_37 dim 0 : vector<16x64xf32>, i32 -> vector<16x64xf32>
    %cst_38 = arith.constant 0.000000e+00 : f32
    %148 = vector.broadcast %cst_38 : f32 to vector<16x64xf32>
    %149 = arith.select %100, %147, %148 : vector<16x64xi1>, vector<16x64xf32>
    %150 = vector.extract_strided_slice %121 {offsets = [2, 0], sizes = [1, 64], strides = [1, 1]} : vector<4x64xf32> to vector<1x64xf32>
    %151 = vector.broadcast %150 : vector<1x64xf32> to vector<16x64xf32>
    %152 = arith.mulf %149, %151 : vector<16x64xf32>
    %153 = arith.addf %146, %152 : vector<16x64xf32>
    %c2_i32_39 = arith.constant 2 : i32
    %154 = tpu.dynamic_rotate %140 by %c2_i32_39 dim 0 : vector<16x64xf32>, i32 -> vector<16x64xf32>
    %cst_40 = arith.constant 0.000000e+00 : f32
    %155 = vector.broadcast %cst_40 : f32 to vector<16x64xf32>
    %156 = arith.select %108, %154, %155 : vector<16x64xi1>, vector<16x64xf32>
    %157 = vector.extract_strided_slice %121 {offsets = [1, 0], sizes = [1, 64], strides = [1, 1]} : vector<4x64xf32> to vector<1x64xf32>
    %158 = vector.broadcast %157 : vector<1x64xf32> to vector<16x64xf32>
    %159 = arith.mulf %156, %158 : vector<16x64xf32>
    %160 = arith.addf %153, %159 : vector<16x64xf32>
    %c3_i32_41 = arith.constant 3 : i32
    %161 = tpu.dynamic_rotate %140 by %c3_i32_41 dim 0 : vector<16x64xf32>, i32 -> vector<16x64xf32>
    %cst_42 = arith.constant 0.000000e+00 : f32
    %162 = vector.broadcast %cst_42 : f32 to vector<16x64xf32>
    %163 = arith.select %116, %161, %162 : vector<16x64xi1>, vector<16x64xf32>
    %164 = vector.extract_strided_slice %121 {offsets = [0, 0], sizes = [1, 64], strides = [1, 1]} : vector<4x64xf32> to vector<1x64xf32>
    %165 = vector.broadcast %164 : vector<1x64xf32> to vector<16x64xf32>
    %166 = arith.mulf %163, %165 : vector<16x64xf32>
    %167 = arith.addf %160, %166 : vector<16x64xf32>
    %168 = arith.negf %167 : vector<16x64xf32>
    %169 = math.exp %168 : vector<16x64xf32>
    %cst_43 = arith.constant 1.000000e+00 : f32
    %170 = vector.broadcast %cst_43 : f32 to vector<16x64xf32>
    %171 = arith.addf %170, %169 : vector<16x64xf32>
    %172 = arith.divf %170, %171 : vector<16x64xf32>
    %173 = arith.mulf %167, %172 : vector<16x64xf32>
    %c0_44 = arith.constant 0 : index
    %c0_45 = arith.constant 0 : index
    %c0_46 = arith.constant 0 : index
    %174 = vector.load %arg4[%c0_44, %c0_45, %c0_46] : memref<2x64x80xf32, #tpu.memory_space<vmem>>, vector<1x64x80xf32>
    %175 = vector.shape_cast %174 : vector<1x64x80xf32> to vector<64x80xf32>
    %cst_47 = arith.constant dense<0.000000e+00> : vector<16x80xf32>
    %176 = tpu.matmul %173, %175, %cst_47 {dimension_numbers = #tpu.dot_dimension_numbers<[1], [0], [0], [1], [0, 0, 1, 1], [], []>, precision = #tpu.contract_precision<fp32>} : vector<16x64xf32>, vector<64x80xf32>, vector<16x80xf32> -> vector<16x80xf32>
    %177 = vector.extract_strided_slice %176 {offsets = [0, 0], sizes = [16, 64], strides = [1, 1]} : vector<16x80xf32> to vector<16x64xf32>
    %178 = vector.broadcast %123 : vector<1x64xf32> to vector<16x64xf32>
    %179 = arith.addf %177, %178 : vector<16x64xf32>
    %cst_48 = arith.constant 0.000000e+00 : f32
    %180 = vector.broadcast %cst_48 : f32 to vector<16x64xf32>
    %181 = arith.maximumf %179, %180 : vector<16x64xf32>
    %182 = vector.broadcast %cst_48 : f32 to vector<16x64xf32>
    %183 = arith.subf %179, %182 : vector<16x64xf32>
    %184 = arith.cmpf one, %183, %183 : vector<16x64xf32>
    %185 = vector.broadcast %cst_48 : f32 to vector<16x64xf32>
    %186 = arith.addf %179, %185 : vector<16x64xf32>
    %187 = math.absf %183 : vector<16x64xf32>
    %cst_49 = arith.constant 0.000000e+00 : f32
    %188 = vector.broadcast %cst_49 : f32 to vector<16x64xf32>
    %189 = arith.subf %188, %187 : vector<16x64xf32>
    %190 = math.exp %189 : vector<16x64xf32>
    %191 = math.log1p %190 : vector<16x64xf32>
    %192 = arith.addf %181, %191 : vector<16x64xf32>
    %193 = arith.select %184, %186, %192 : vector<16x64xi1>, vector<16x64xf32>
    %194 = vector.extract_strided_slice %176 {offsets = [0, 64], sizes = [16, 16], strides = [1, 1]} : vector<16x80xf32> to vector<16x16xf32>
    %195 = tpu.transpose %194, [1, 0] : vector<16x16xf32> -> vector<16x16xf32>
    %196 = vector.extract_strided_slice %195 {offsets = [0, 0], sizes = [8, 16], strides = [1, 1]} : vector<16x16xf32> to vector<8x16xf32>
    %197 = vector.extract_strided_slice %195 {offsets = [8, 0], sizes = [8, 16], strides = [1, 1]} : vector<16x16xf32> to vector<8x16xf32>
    %198 = arith.mulf %193, %173 : vector<16x64xf32>
    %199 = vector.extract_strided_slice %193 {offsets = [0, 0], sizes = [1, 64], strides = [1, 1]} : vector<16x64xf32> to vector<1x64xf32>
    %200 = vector.broadcast %199 : vector<1x64xf32> to vector<8x64xf32>
    %201 = arith.mulf %200, %120 : vector<8x64xf32>
    %202 = math.exp %201 : vector<8x64xf32>
    %203 = vector.extract_strided_slice %193 {offsets = [1, 0], sizes = [1, 64], strides = [1, 1]} : vector<16x64xf32> to vector<1x64xf32>
    %204 = vector.broadcast %203 : vector<1x64xf32> to vector<8x64xf32>
    %205 = arith.mulf %204, %120 : vector<8x64xf32>
    %206 = math.exp %205 : vector<8x64xf32>
    %207 = vector.extract_strided_slice %193 {offsets = [2, 0], sizes = [1, 64], strides = [1, 1]} : vector<16x64xf32> to vector<1x64xf32>
    %208 = vector.broadcast %207 : vector<1x64xf32> to vector<8x64xf32>
    %209 = arith.mulf %208, %120 : vector<8x64xf32>
    %210 = math.exp %209 : vector<8x64xf32>
    %211 = vector.extract_strided_slice %193 {offsets = [3, 0], sizes = [1, 64], strides = [1, 1]} : vector<16x64xf32> to vector<1x64xf32>
    %212 = vector.broadcast %211 : vector<1x64xf32> to vector<8x64xf32>
    %213 = arith.mulf %212, %120 : vector<8x64xf32>
    %214 = math.exp %213 : vector<8x64xf32>
    %215 = vector.extract_strided_slice %193 {offsets = [4, 0], sizes = [1, 64], strides = [1, 1]} : vector<16x64xf32> to vector<1x64xf32>
    %216 = vector.broadcast %215 : vector<1x64xf32> to vector<8x64xf32>
    %217 = arith.mulf %216, %120 : vector<8x64xf32>
    %218 = math.exp %217 : vector<8x64xf32>
    %219 = vector.extract_strided_slice %193 {offsets = [5, 0], sizes = [1, 64], strides = [1, 1]} : vector<16x64xf32> to vector<1x64xf32>
    %220 = vector.broadcast %219 : vector<1x64xf32> to vector<8x64xf32>
    %221 = arith.mulf %220, %120 : vector<8x64xf32>
    %222 = math.exp %221 : vector<8x64xf32>
    %223 = vector.extract_strided_slice %193 {offsets = [6, 0], sizes = [1, 64], strides = [1, 1]} : vector<16x64xf32> to vector<1x64xf32>
    %224 = vector.broadcast %223 : vector<1x64xf32> to vector<8x64xf32>
    %225 = arith.mulf %224, %120 : vector<8x64xf32>
    %226 = math.exp %225 : vector<8x64xf32>
    %227 = vector.extract_strided_slice %193 {offsets = [7, 0], sizes = [1, 64], strides = [1, 1]} : vector<16x64xf32> to vector<1x64xf32>
    %228 = vector.broadcast %227 : vector<1x64xf32> to vector<8x64xf32>
    %229 = arith.mulf %228, %120 : vector<8x64xf32>
    %230 = math.exp %229 : vector<8x64xf32>
    %231 = vector.extract_strided_slice %193 {offsets = [8, 0], sizes = [1, 64], strides = [1, 1]} : vector<16x64xf32> to vector<1x64xf32>
    %232 = vector.broadcast %231 : vector<1x64xf32> to vector<8x64xf32>
    %233 = arith.mulf %232, %120 : vector<8x64xf32>
    %234 = math.exp %233 : vector<8x64xf32>
    %235 = vector.extract_strided_slice %193 {offsets = [9, 0], sizes = [1, 64], strides = [1, 1]} : vector<16x64xf32> to vector<1x64xf32>
    %236 = vector.broadcast %235 : vector<1x64xf32> to vector<8x64xf32>
    %237 = arith.mulf %236, %120 : vector<8x64xf32>
    %238 = math.exp %237 : vector<8x64xf32>
    %239 = vector.extract_strided_slice %193 {offsets = [10, 0], sizes = [1, 64], strides = [1, 1]} : vector<16x64xf32> to vector<1x64xf32>
    %240 = vector.broadcast %239 : vector<1x64xf32> to vector<8x64xf32>
    %241 = arith.mulf %240, %120 : vector<8x64xf32>
    %242 = math.exp %241 : vector<8x64xf32>
    %243 = vector.extract_strided_slice %193 {offsets = [11, 0], sizes = [1, 64], strides = [1, 1]} : vector<16x64xf32> to vector<1x64xf32>
    %244 = vector.broadcast %243 : vector<1x64xf32> to vector<8x64xf32>
    %245 = arith.mulf %244, %120 : vector<8x64xf32>
    %246 = math.exp %245 : vector<8x64xf32>
    %247 = vector.extract_strided_slice %193 {offsets = [12, 0], sizes = [1, 64], strides = [1, 1]} : vector<16x64xf32> to vector<1x64xf32>
    %248 = vector.broadcast %247 : vector<1x64xf32> to vector<8x64xf32>
    %249 = arith.mulf %248, %120 : vector<8x64xf32>
    %250 = math.exp %249 : vector<8x64xf32>
    %251 = vector.extract_strided_slice %193 {offsets = [13, 0], sizes = [1, 64], strides = [1, 1]} : vector<16x64xf32> to vector<1x64xf32>
    %252 = vector.broadcast %251 : vector<1x64xf32> to vector<8x64xf32>
    %253 = arith.mulf %252, %120 : vector<8x64xf32>
    %254 = math.exp %253 : vector<8x64xf32>
    %255 = vector.extract_strided_slice %193 {offsets = [14, 0], sizes = [1, 64], strides = [1, 1]} : vector<16x64xf32> to vector<1x64xf32>
    %256 = vector.broadcast %255 : vector<1x64xf32> to vector<8x64xf32>
    %257 = arith.mulf %256, %120 : vector<8x64xf32>
    %258 = math.exp %257 : vector<8x64xf32>
    %259 = vector.extract_strided_slice %193 {offsets = [15, 0], sizes = [1, 64], strides = [1, 1]} : vector<16x64xf32> to vector<1x64xf32>
    %260 = vector.broadcast %259 : vector<1x64xf32> to vector<8x64xf32>
    %261 = arith.mulf %260, %120 : vector<8x64xf32>
    %262 = math.exp %261 : vector<8x64xf32>
    %263 = vector.extract_strided_slice %198 {offsets = [0, 0], sizes = [1, 64], strides = [1, 1]} : vector<16x64xf32> to vector<1x64xf32>
    %264 = vector.extract_strided_slice %196 {offsets = [0, 0], sizes = [8, 1], strides = [1, 1]} : vector<8x16xf32> to vector<8x1xf32>
    %265 = vector.broadcast %263 : vector<1x64xf32> to vector<8x64xf32>
    %266 = vector.broadcast %264 : vector<8x1xf32> to vector<8x64xf32>
    %267 = arith.mulf %265, %266 : vector<8x64xf32>
    %268 = vector.extract_strided_slice %198 {offsets = [1, 0], sizes = [1, 64], strides = [1, 1]} : vector<16x64xf32> to vector<1x64xf32>
    %269 = vector.extract_strided_slice %196 {offsets = [0, 1], sizes = [8, 1], strides = [1, 1]} : vector<8x16xf32> to vector<8x1xf32>
    %270 = vector.broadcast %268 : vector<1x64xf32> to vector<8x64xf32>
    %271 = vector.broadcast %269 : vector<8x1xf32> to vector<8x64xf32>
    %272 = arith.mulf %270, %271 : vector<8x64xf32>
    %273 = vector.extract_strided_slice %198 {offsets = [2, 0], sizes = [1, 64], strides = [1, 1]} : vector<16x64xf32> to vector<1x64xf32>
    %274 = vector.extract_strided_slice %196 {offsets = [0, 2], sizes = [8, 1], strides = [1, 1]} : vector<8x16xf32> to vector<8x1xf32>
    %275 = vector.broadcast %273 : vector<1x64xf32> to vector<8x64xf32>
    %276 = vector.broadcast %274 : vector<8x1xf32> to vector<8x64xf32>
    %277 = arith.mulf %275, %276 : vector<8x64xf32>
    %278 = vector.extract_strided_slice %198 {offsets = [3, 0], sizes = [1, 64], strides = [1, 1]} : vector<16x64xf32> to vector<1x64xf32>
    %279 = vector.extract_strided_slice %196 {offsets = [0, 3], sizes = [8, 1], strides = [1, 1]} : vector<8x16xf32> to vector<8x1xf32>
    %280 = vector.broadcast %278 : vector<1x64xf32> to vector<8x64xf32>
    %281 = vector.broadcast %279 : vector<8x1xf32> to vector<8x64xf32>
    %282 = arith.mulf %280, %281 : vector<8x64xf32>
    %283 = vector.extract_strided_slice %198 {offsets = [4, 0], sizes = [1, 64], strides = [1, 1]} : vector<16x64xf32> to vector<1x64xf32>
    %284 = vector.extract_strided_slice %196 {offsets = [0, 4], sizes = [8, 1], strides = [1, 1]} : vector<8x16xf32> to vector<8x1xf32>
    %285 = vector.broadcast %283 : vector<1x64xf32> to vector<8x64xf32>
    %286 = vector.broadcast %284 : vector<8x1xf32> to vector<8x64xf32>
    %287 = arith.mulf %285, %286 : vector<8x64xf32>
    %288 = vector.extract_strided_slice %198 {offsets = [5, 0], sizes = [1, 64], strides = [1, 1]} : vector<16x64xf32> to vector<1x64xf32>
    %289 = vector.extract_strided_slice %196 {offsets = [0, 5], sizes = [8, 1], strides = [1, 1]} : vector<8x16xf32> to vector<8x1xf32>
    %290 = vector.broadcast %288 : vector<1x64xf32> to vector<8x64xf32>
    %291 = vector.broadcast %289 : vector<8x1xf32> to vector<8x64xf32>
    %292 = arith.mulf %290, %291 : vector<8x64xf32>
    %293 = vector.extract_strided_slice %198 {offsets = [6, 0], sizes = [1, 64], strides = [1, 1]} : vector<16x64xf32> to vector<1x64xf32>
    %294 = vector.extract_strided_slice %196 {offsets = [0, 6], sizes = [8, 1], strides = [1, 1]} : vector<8x16xf32> to vector<8x1xf32>
    %295 = vector.broadcast %293 : vector<1x64xf32> to vector<8x64xf32>
    %296 = vector.broadcast %294 : vector<8x1xf32> to vector<8x64xf32>
    %297 = arith.mulf %295, %296 : vector<8x64xf32>
    %298 = vector.extract_strided_slice %198 {offsets = [7, 0], sizes = [1, 64], strides = [1, 1]} : vector<16x64xf32> to vector<1x64xf32>
    %299 = vector.extract_strided_slice %196 {offsets = [0, 7], sizes = [8, 1], strides = [1, 1]} : vector<8x16xf32> to vector<8x1xf32>
    %300 = vector.broadcast %298 : vector<1x64xf32> to vector<8x64xf32>
    %301 = vector.broadcast %299 : vector<8x1xf32> to vector<8x64xf32>
    %302 = arith.mulf %300, %301 : vector<8x64xf32>
    %303 = vector.extract_strided_slice %198 {offsets = [8, 0], sizes = [1, 64], strides = [1, 1]} : vector<16x64xf32> to vector<1x64xf32>
    %304 = vector.extract_strided_slice %196 {offsets = [0, 8], sizes = [8, 1], strides = [1, 1]} : vector<8x16xf32> to vector<8x1xf32>
    %305 = vector.broadcast %303 : vector<1x64xf32> to vector<8x64xf32>
    %306 = vector.broadcast %304 : vector<8x1xf32> to vector<8x64xf32>
    %307 = arith.mulf %305, %306 : vector<8x64xf32>
    %308 = vector.extract_strided_slice %198 {offsets = [9, 0], sizes = [1, 64], strides = [1, 1]} : vector<16x64xf32> to vector<1x64xf32>
    %309 = vector.extract_strided_slice %196 {offsets = [0, 9], sizes = [8, 1], strides = [1, 1]} : vector<8x16xf32> to vector<8x1xf32>
    %310 = vector.broadcast %308 : vector<1x64xf32> to vector<8x64xf32>
    %311 = vector.broadcast %309 : vector<8x1xf32> to vector<8x64xf32>
    %312 = arith.mulf %310, %311 : vector<8x64xf32>
    %313 = vector.extract_strided_slice %198 {offsets = [10, 0], sizes = [1, 64], strides = [1, 1]} : vector<16x64xf32> to vector<1x64xf32>
    %314 = vector.extract_strided_slice %196 {offsets = [0, 10], sizes = [8, 1], strides = [1, 1]} : vector<8x16xf32> to vector<8x1xf32>
    %315 = vector.broadcast %313 : vector<1x64xf32> to vector<8x64xf32>
    %316 = vector.broadcast %314 : vector<8x1xf32> to vector<8x64xf32>
    %317 = arith.mulf %315, %316 : vector<8x64xf32>
    %318 = vector.extract_strided_slice %198 {offsets = [11, 0], sizes = [1, 64], strides = [1, 1]} : vector<16x64xf32> to vector<1x64xf32>
    %319 = vector.extract_strided_slice %196 {offsets = [0, 11], sizes = [8, 1], strides = [1, 1]} : vector<8x16xf32> to vector<8x1xf32>
    %320 = vector.broadcast %318 : vector<1x64xf32> to vector<8x64xf32>
    %321 = vector.broadcast %319 : vector<8x1xf32> to vector<8x64xf32>
    %322 = arith.mulf %320, %321 : vector<8x64xf32>
    %323 = vector.extract_strided_slice %198 {offsets = [12, 0], sizes = [1, 64], strides = [1, 1]} : vector<16x64xf32> to vector<1x64xf32>
    %324 = vector.extract_strided_slice %196 {offsets = [0, 12], sizes = [8, 1], strides = [1, 1]} : vector<8x16xf32> to vector<8x1xf32>
    %325 = vector.broadcast %323 : vector<1x64xf32> to vector<8x64xf32>
    %326 = vector.broadcast %324 : vector<8x1xf32> to vector<8x64xf32>
    %327 = arith.mulf %325, %326 : vector<8x64xf32>
    %328 = vector.extract_strided_slice %198 {offsets = [13, 0], sizes = [1, 64], strides = [1, 1]} : vector<16x64xf32> to vector<1x64xf32>
    %329 = vector.extract_strided_slice %196 {offsets = [0, 13], sizes = [8, 1], strides = [1, 1]} : vector<8x16xf32> to vector<8x1xf32>
    %330 = vector.broadcast %328 : vector<1x64xf32> to vector<8x64xf32>
    %331 = vector.broadcast %329 : vector<8x1xf32> to vector<8x64xf32>
    %332 = arith.mulf %330, %331 : vector<8x64xf32>
    %333 = vector.extract_strided_slice %198 {offsets = [14, 0], sizes = [1, 64], strides = [1, 1]} : vector<16x64xf32> to vector<1x64xf32>
    %334 = vector.extract_strided_slice %196 {offsets = [0, 14], sizes = [8, 1], strides = [1, 1]} : vector<8x16xf32> to vector<8x1xf32>
    %335 = vector.broadcast %333 : vector<1x64xf32> to vector<8x64xf32>
    %336 = vector.broadcast %334 : vector<8x1xf32> to vector<8x64xf32>
    %337 = arith.mulf %335, %336 : vector<8x64xf32>
    %338 = vector.extract_strided_slice %198 {offsets = [15, 0], sizes = [1, 64], strides = [1, 1]} : vector<16x64xf32> to vector<1x64xf32>
    %339 = vector.extract_strided_slice %196 {offsets = [0, 15], sizes = [8, 1], strides = [1, 1]} : vector<8x16xf32> to vector<8x1xf32>
    %340 = vector.broadcast %338 : vector<1x64xf32> to vector<8x64xf32>
    %341 = vector.broadcast %339 : vector<8x1xf32> to vector<8x64xf32>
    %342 = arith.mulf %340, %341 : vector<8x64xf32>
    %cst_50 = arith.constant 0.000000e+00 : f32
    %343 = vector.broadcast %cst_50 : f32 to vector<8x64xf32>
    %344 = arith.mulf %202, %343 : vector<8x64xf32>
    %345 = arith.addf %344, %267 : vector<8x64xf32>
    %346 = vector.extract_strided_slice %197 {offsets = [0, 0], sizes = [8, 1], strides = [1, 1]} : vector<8x16xf32> to vector<8x1xf32>
    %347 = vector.broadcast %346 : vector<8x1xf32> to vector<8x64xf32>
    %348 = arith.mulf %345, %347 : vector<8x64xf32>
    %cst_51 = arith.constant dense<0.000000e+00> : vector<64xf32>
    %349 = vector.multi_reduction <add>, %348, %cst_51 [0] : vector<8x64xf32> to vector<64xf32>
    %350 = vector.shape_cast %349 : vector<64xf32> to vector<1x64xf32>
    %c0_52 = arith.constant 0 : index
    %c0_53 = arith.constant 0 : index
    %351 = vector.load %arg8[%c0_52, %c0_53] : memref<16x64xf32, #tpu.memory_space<vmem>>, vector<1x64xf32>
    tpu.vector_store %arg8[%c0_52, %c0_53], %350 {strides = array<i32>} : memref<16x64xf32, #tpu.memory_space<vmem>>, vector<1x64xf32>,
    %352 = arith.mulf %206, %345 : vector<8x64xf32>
    %353 = arith.addf %352, %272 : vector<8x64xf32>
    %354 = vector.extract_strided_slice %197 {offsets = [0, 1], sizes = [8, 1], strides = [1, 1]} : vector<8x16xf32> to vector<8x1xf32>
    %355 = vector.broadcast %354 : vector<8x1xf32> to vector<8x64xf32>
    %356 = arith.mulf %353, %355 : vector<8x64xf32>
    %cst_54 = arith.constant dense<0.000000e+00> : vector<64xf32>
    %357 = vector.multi_reduction <add>, %356, %cst_54 [0] : vector<8x64xf32> to vector<64xf32>
    %358 = vector.shape_cast %357 : vector<64xf32> to vector<1x64xf32>
    %c1 = arith.constant 1 : index
    %c0_55 = arith.constant 0 : index
    %359 = vector.load %arg8[%c1, %c0_55] : memref<16x64xf32, #tpu.memory_space<vmem>>, vector<1x64xf32>
    tpu.vector_store %arg8[%c1, %c0_55], %358 {strides = array<i32>} : memref<16x64xf32, #tpu.memory_space<vmem>>, vector<1x64xf32>,
    %360 = arith.mulf %210, %353 : vector<8x64xf32>
    %361 = arith.addf %360, %277 : vector<8x64xf32>
    %362 = vector.extract_strided_slice %197 {offsets = [0, 2], sizes = [8, 1], strides = [1, 1]} : vector<8x16xf32> to vector<8x1xf32>
    %363 = vector.broadcast %362 : vector<8x1xf32> to vector<8x64xf32>
    %364 = arith.mulf %361, %363 : vector<8x64xf32>
    %cst_56 = arith.constant dense<0.000000e+00> : vector<64xf32>
    %365 = vector.multi_reduction <add>, %364, %cst_56 [0] : vector<8x64xf32> to vector<64xf32>
    %366 = vector.shape_cast %365 : vector<64xf32> to vector<1x64xf32>
    %c2 = arith.constant 2 : index
    %c0_57 = arith.constant 0 : index
    %367 = vector.load %arg8[%c2, %c0_57] : memref<16x64xf32, #tpu.memory_space<vmem>>, vector<1x64xf32>
    tpu.vector_store %arg8[%c2, %c0_57], %366 {strides = array<i32>} : memref<16x64xf32, #tpu.memory_space<vmem>>, vector<1x64xf32>,
    %368 = arith.mulf %214, %361 : vector<8x64xf32>
    %369 = arith.addf %368, %282 : vector<8x64xf32>
    %370 = vector.extract_strided_slice %197 {offsets = [0, 3], sizes = [8, 1], strides = [1, 1]} : vector<8x16xf32> to vector<8x1xf32>
    %371 = vector.broadcast %370 : vector<8x1xf32> to vector<8x64xf32>
    %372 = arith.mulf %369, %371 : vector<8x64xf32>
    %cst_58 = arith.constant dense<0.000000e+00> : vector<64xf32>
    %373 = vector.multi_reduction <add>, %372, %cst_58 [0] : vector<8x64xf32> to vector<64xf32>
    %374 = vector.shape_cast %373 : vector<64xf32> to vector<1x64xf32>
    %c3 = arith.constant 3 : index
    %c0_59 = arith.constant 0 : index
    %375 = vector.load %arg8[%c3, %c0_59] : memref<16x64xf32, #tpu.memory_space<vmem>>, vector<1x64xf32>
    tpu.vector_store %arg8[%c3, %c0_59], %374 {strides = array<i32>} : memref<16x64xf32, #tpu.memory_space<vmem>>, vector<1x64xf32>,
    %376 = arith.mulf %218, %369 : vector<8x64xf32>
    %377 = arith.addf %376, %287 : vector<8x64xf32>
    %378 = vector.extract_strided_slice %197 {offsets = [0, 4], sizes = [8, 1], strides = [1, 1]} : vector<8x16xf32> to vector<8x1xf32>
    %379 = vector.broadcast %378 : vector<8x1xf32> to vector<8x64xf32>
    %380 = arith.mulf %377, %379 : vector<8x64xf32>
    %cst_60 = arith.constant dense<0.000000e+00> : vector<64xf32>
    %381 = vector.multi_reduction <add>, %380, %cst_60 [0] : vector<8x64xf32> to vector<64xf32>
    %382 = vector.shape_cast %381 : vector<64xf32> to vector<1x64xf32>
    %c4 = arith.constant 4 : index
    %c0_61 = arith.constant 0 : index
    %383 = vector.load %arg8[%c4, %c0_61] : memref<16x64xf32, #tpu.memory_space<vmem>>, vector<1x64xf32>
    tpu.vector_store %arg8[%c4, %c0_61], %382 {strides = array<i32>} : memref<16x64xf32, #tpu.memory_space<vmem>>, vector<1x64xf32>,
    %384 = arith.mulf %222, %377 : vector<8x64xf32>
    %385 = arith.addf %384, %292 : vector<8x64xf32>
    %386 = vector.extract_strided_slice %197 {offsets = [0, 5], sizes = [8, 1], strides = [1, 1]} : vector<8x16xf32> to vector<8x1xf32>
    %387 = vector.broadcast %386 : vector<8x1xf32> to vector<8x64xf32>
    %388 = arith.mulf %385, %387 : vector<8x64xf32>
    %cst_62 = arith.constant dense<0.000000e+00> : vector<64xf32>
    %389 = vector.multi_reduction <add>, %388, %cst_62 [0] : vector<8x64xf32> to vector<64xf32>
    %390 = vector.shape_cast %389 : vector<64xf32> to vector<1x64xf32>
    %c5 = arith.constant 5 : index
    %c0_63 = arith.constant 0 : index
    %391 = vector.load %arg8[%c5, %c0_63] : memref<16x64xf32, #tpu.memory_space<vmem>>, vector<1x64xf32>
    tpu.vector_store %arg8[%c5, %c0_63], %390 {strides = array<i32>} : memref<16x64xf32, #tpu.memory_space<vmem>>, vector<1x64xf32>,
    %392 = arith.mulf %226, %385 : vector<8x64xf32>
    %393 = arith.addf %392, %297 : vector<8x64xf32>
    %394 = vector.extract_strided_slice %197 {offsets = [0, 6], sizes = [8, 1], strides = [1, 1]} : vector<8x16xf32> to vector<8x1xf32>
    %395 = vector.broadcast %394 : vector<8x1xf32> to vector<8x64xf32>
    %396 = arith.mulf %393, %395 : vector<8x64xf32>
    %cst_64 = arith.constant dense<0.000000e+00> : vector<64xf32>
    %397 = vector.multi_reduction <add>, %396, %cst_64 [0] : vector<8x64xf32> to vector<64xf32>
    %398 = vector.shape_cast %397 : vector<64xf32> to vector<1x64xf32>
    %c6 = arith.constant 6 : index
    %c0_65 = arith.constant 0 : index
    %399 = vector.load %arg8[%c6, %c0_65] : memref<16x64xf32, #tpu.memory_space<vmem>>, vector<1x64xf32>
    tpu.vector_store %arg8[%c6, %c0_65], %398 {strides = array<i32>} : memref<16x64xf32, #tpu.memory_space<vmem>>, vector<1x64xf32>,
    %400 = arith.mulf %230, %393 : vector<8x64xf32>
    %401 = arith.addf %400, %302 : vector<8x64xf32>
    %402 = vector.extract_strided_slice %197 {offsets = [0, 7], sizes = [8, 1], strides = [1, 1]} : vector<8x16xf32> to vector<8x1xf32>
    %403 = vector.broadcast %402 : vector<8x1xf32> to vector<8x64xf32>
    %404 = arith.mulf %401, %403 : vector<8x64xf32>
    %cst_66 = arith.constant dense<0.000000e+00> : vector<64xf32>
    %405 = vector.multi_reduction <add>, %404, %cst_66 [0] : vector<8x64xf32> to vector<64xf32>
    %406 = vector.shape_cast %405 : vector<64xf32> to vector<1x64xf32>
    %c7 = arith.constant 7 : index
    %c0_67 = arith.constant 0 : index
    %407 = vector.load %arg8[%c7, %c0_67] : memref<16x64xf32, #tpu.memory_space<vmem>>, vector<1x64xf32>
    tpu.vector_store %arg8[%c7, %c0_67], %406 {strides = array<i32>} : memref<16x64xf32, #tpu.memory_space<vmem>>, vector<1x64xf32>,
    %cst_68 = arith.constant 0.000000e+00 : f32
    %408 = vector.broadcast %cst_68 : f32 to vector<8x64xf32>
    %409 = arith.mulf %234, %408 : vector<8x64xf32>
    %410 = arith.addf %409, %307 : vector<8x64xf32>
    %411 = vector.extract_strided_slice %197 {offsets = [0, 8], sizes = [8, 1], strides = [1, 1]} : vector<8x16xf32> to vector<8x1xf32>
    %412 = vector.broadcast %411 : vector<8x1xf32> to vector<8x64xf32>
    %413 = arith.mulf %410, %412 : vector<8x64xf32>
    %cst_69 = arith.constant dense<0.000000e+00> : vector<64xf32>
    %414 = vector.multi_reduction <add>, %413, %cst_69 [0] : vector<8x64xf32> to vector<64xf32>
    %415 = vector.shape_cast %414 : vector<64xf32> to vector<1x64xf32>
    %c8 = arith.constant 8 : index
    %c0_70 = arith.constant 0 : index
    %416 = vector.load %arg8[%c8, %c0_70] : memref<16x64xf32, #tpu.memory_space<vmem>>, vector<1x64xf32>
    tpu.vector_store %arg8[%c8, %c0_70], %415 {strides = array<i32>} : memref<16x64xf32, #tpu.memory_space<vmem>>, vector<1x64xf32>,
    %417 = arith.mulf %238, %410 : vector<8x64xf32>
    %418 = arith.addf %417, %312 : vector<8x64xf32>
    %419 = vector.extract_strided_slice %197 {offsets = [0, 9], sizes = [8, 1], strides = [1, 1]} : vector<8x16xf32> to vector<8x1xf32>
    %420 = vector.broadcast %419 : vector<8x1xf32> to vector<8x64xf32>
    %421 = arith.mulf %418, %420 : vector<8x64xf32>
    %cst_71 = arith.constant dense<0.000000e+00> : vector<64xf32>
    %422 = vector.multi_reduction <add>, %421, %cst_71 [0] : vector<8x64xf32> to vector<64xf32>
    %423 = vector.shape_cast %422 : vector<64xf32> to vector<1x64xf32>
    %c9 = arith.constant 9 : index
    %c0_72 = arith.constant 0 : index
    %424 = vector.load %arg8[%c9, %c0_72] : memref<16x64xf32, #tpu.memory_space<vmem>>, vector<1x64xf32>
    tpu.vector_store %arg8[%c9, %c0_72], %423 {strides = array<i32>} : memref<16x64xf32, #tpu.memory_space<vmem>>, vector<1x64xf32>,
    %425 = arith.mulf %242, %418 : vector<8x64xf32>
    %426 = arith.addf %425, %317 : vector<8x64xf32>
    %427 = vector.extract_strided_slice %197 {offsets = [0, 10], sizes = [8, 1], strides = [1, 1]} : vector<8x16xf32> to vector<8x1xf32>
    %428 = vector.broadcast %427 : vector<8x1xf32> to vector<8x64xf32>
    %429 = arith.mulf %426, %428 : vector<8x64xf32>
    %cst_73 = arith.constant dense<0.000000e+00> : vector<64xf32>
    %430 = vector.multi_reduction <add>, %429, %cst_73 [0] : vector<8x64xf32> to vector<64xf32>
    %431 = vector.shape_cast %430 : vector<64xf32> to vector<1x64xf32>
    %c10 = arith.constant 10 : index
    %c0_74 = arith.constant 0 : index
    %432 = vector.load %arg8[%c10, %c0_74] : memref<16x64xf32, #tpu.memory_space<vmem>>, vector<1x64xf32>
    tpu.vector_store %arg8[%c10, %c0_74], %431 {strides = array<i32>} : memref<16x64xf32, #tpu.memory_space<vmem>>, vector<1x64xf32>,
    %433 = arith.mulf %246, %426 : vector<8x64xf32>
    %434 = arith.addf %433, %322 : vector<8x64xf32>
    %435 = vector.extract_strided_slice %197 {offsets = [0, 11], sizes = [8, 1], strides = [1, 1]} : vector<8x16xf32> to vector<8x1xf32>
    %436 = vector.broadcast %435 : vector<8x1xf32> to vector<8x64xf32>
    %437 = arith.mulf %434, %436 : vector<8x64xf32>
    %cst_75 = arith.constant dense<0.000000e+00> : vector<64xf32>
    %438 = vector.multi_reduction <add>, %437, %cst_75 [0] : vector<8x64xf32> to vector<64xf32>
    %439 = vector.shape_cast %438 : vector<64xf32> to vector<1x64xf32>
    %c11 = arith.constant 11 : index
    %c0_76 = arith.constant 0 : index
    %440 = vector.load %arg8[%c11, %c0_76] : memref<16x64xf32, #tpu.memory_space<vmem>>, vector<1x64xf32>
    tpu.vector_store %arg8[%c11, %c0_76], %439 {strides = array<i32>} : memref<16x64xf32, #tpu.memory_space<vmem>>, vector<1x64xf32>,
    %441 = arith.mulf %250, %434 : vector<8x64xf32>
    %442 = arith.addf %441, %327 : vector<8x64xf32>
    %443 = vector.extract_strided_slice %197 {offsets = [0, 12], sizes = [8, 1], strides = [1, 1]} : vector<8x16xf32> to vector<8x1xf32>
    %444 = vector.broadcast %443 : vector<8x1xf32> to vector<8x64xf32>
    %445 = arith.mulf %442, %444 : vector<8x64xf32>
    %cst_77 = arith.constant dense<0.000000e+00> : vector<64xf32>
    %446 = vector.multi_reduction <add>, %445, %cst_77 [0] : vector<8x64xf32> to vector<64xf32>
    %447 = vector.shape_cast %446 : vector<64xf32> to vector<1x64xf32>
    %c12 = arith.constant 12 : index
    %c0_78 = arith.constant 0 : index
    %448 = vector.load %arg8[%c12, %c0_78] : memref<16x64xf32, #tpu.memory_space<vmem>>, vector<1x64xf32>
    tpu.vector_store %arg8[%c12, %c0_78], %447 {strides = array<i32>} : memref<16x64xf32, #tpu.memory_space<vmem>>, vector<1x64xf32>,
    %449 = arith.mulf %254, %442 : vector<8x64xf32>
    %450 = arith.addf %449, %332 : vector<8x64xf32>
    %451 = vector.extract_strided_slice %197 {offsets = [0, 13], sizes = [8, 1], strides = [1, 1]} : vector<8x16xf32> to vector<8x1xf32>
    %452 = vector.broadcast %451 : vector<8x1xf32> to vector<8x64xf32>
    %453 = arith.mulf %450, %452 : vector<8x64xf32>
    %cst_79 = arith.constant dense<0.000000e+00> : vector<64xf32>
    %454 = vector.multi_reduction <add>, %453, %cst_79 [0] : vector<8x64xf32> to vector<64xf32>
    %455 = vector.shape_cast %454 : vector<64xf32> to vector<1x64xf32>
    %c13 = arith.constant 13 : index
    %c0_80 = arith.constant 0 : index
    %456 = vector.load %arg8[%c13, %c0_80] : memref<16x64xf32, #tpu.memory_space<vmem>>, vector<1x64xf32>
    tpu.vector_store %arg8[%c13, %c0_80], %455 {strides = array<i32>} : memref<16x64xf32, #tpu.memory_space<vmem>>, vector<1x64xf32>,
    %457 = arith.mulf %258, %450 : vector<8x64xf32>
    %458 = arith.addf %457, %337 : vector<8x64xf32>
    %459 = vector.extract_strided_slice %197 {offsets = [0, 14], sizes = [8, 1], strides = [1, 1]} : vector<8x16xf32> to vector<8x1xf32>
    %460 = vector.broadcast %459 : vector<8x1xf32> to vector<8x64xf32>
    %461 = arith.mulf %458, %460 : vector<8x64xf32>
    %cst_81 = arith.constant dense<0.000000e+00> : vector<64xf32>
    %462 = vector.multi_reduction <add>, %461, %cst_81 [0] : vector<8x64xf32> to vector<64xf32>
    %463 = vector.shape_cast %462 : vector<64xf32> to vector<1x64xf32>
    %c14 = arith.constant 14 : index
    %c0_82 = arith.constant 0 : index
    %464 = vector.load %arg8[%c14, %c0_82] : memref<16x64xf32, #tpu.memory_space<vmem>>, vector<1x64xf32>
    tpu.vector_store %arg8[%c14, %c0_82], %463 {strides = array<i32>} : memref<16x64xf32, #tpu.memory_space<vmem>>, vector<1x64xf32>,
    %465 = arith.mulf %262, %458 : vector<8x64xf32>
    %466 = arith.addf %465, %342 : vector<8x64xf32>
    %467 = vector.extract_strided_slice %197 {offsets = [0, 15], sizes = [8, 1], strides = [1, 1]} : vector<8x16xf32> to vector<8x1xf32>
    %468 = vector.broadcast %467 : vector<8x1xf32> to vector<8x64xf32>
    %469 = arith.mulf %466, %468 : vector<8x64xf32>
    %cst_83 = arith.constant dense<0.000000e+00> : vector<64xf32>
    %470 = vector.multi_reduction <add>, %469, %cst_83 [0] : vector<8x64xf32> to vector<64xf32>
    %471 = vector.shape_cast %470 : vector<64xf32> to vector<1x64xf32>
    %c15 = arith.constant 15 : index
    %c0_84 = arith.constant 0 : index
    %472 = vector.load %arg8[%c15, %c0_84] : memref<16x64xf32, #tpu.memory_space<vmem>>, vector<1x64xf32>
    tpu.vector_store %arg8[%c15, %c0_84], %471 {strides = array<i32>} : memref<16x64xf32, #tpu.memory_space<vmem>>, vector<1x64xf32>,
    %c0_85 = arith.constant 0 : index
    %c0_86 = arith.constant 0 : index
    %473 = vector.load %arg8[%c0_85, %c0_86] : memref<16x64xf32, #tpu.memory_space<vmem>>, vector<16x64xf32>
    %474 = vector.broadcast %124 : vector<1x64xf32> to vector<16x64xf32>
    %475 = arith.mulf %173, %474 : vector<16x64xf32>
    %476 = arith.addf %473, %475 : vector<16x64xf32>
    %477 = arith.negf %141 : vector<16x64xf32>
    %478 = math.exp %477 : vector<16x64xf32>
    %cst_87 = arith.constant 1.000000e+00 : f32
    %479 = vector.broadcast %cst_87 : f32 to vector<16x64xf32>
    %480 = arith.addf %479, %478 : vector<16x64xf32>
    %481 = arith.divf %479, %480 : vector<16x64xf32>
    %482 = arith.mulf %141, %481 : vector<16x64xf32>
    %483 = arith.mulf %476, %482 : vector<16x64xf32>
    %c0_88 = arith.constant 0 : index
    %c0_89 = arith.constant 0 : index
    %c0_90 = arith.constant 0 : index
    %484 = vector.load %arg5[%c0_88, %c0_89, %c0_90] : memref<2x64x32xf32, #tpu.memory_space<vmem>>, vector<1x64x32xf32>
    %485 = vector.shape_cast %484 : vector<1x64x32xf32> to vector<64x32xf32>
    %cst_91 = arith.constant dense<0.000000e+00> : vector<16x32xf32>
    %486 = tpu.matmul %483, %485, %cst_91 {dimension_numbers = #tpu.dot_dimension_numbers<[1], [0], [0], [1], [0, 0, 1, 1], [], []>, precision = #tpu.contract_precision<fp32>} : vector<16x64xf32>, vector<64x32xf32>, vector<16x32xf32> -> vector<16x32xf32>
    %487 = arith.addf %91, %486 : vector<16x32xf32>
    %488 = vector.extract_strided_slice %0 {offsets = [9, 0], sizes = [1, 32], strides = [1, 1]} : vector<10x32xf32> to vector<1x32xf32>
    %c1_92 = arith.constant 1 : index
    %c0_93 = arith.constant 0 : index
    %c0_94 = arith.constant 0 : index
    %489 = vector.load %arg6[%c1_92, %c0_93, %c0_94] : memref<2x15x64xf32, #tpu.memory_space<vmem>>, vector<1x15x64xf32>
    %490 = vector.shape_cast %489 : vector<1x15x64xf32> to vector<15x64xf32>
    %491 = vector.extract_strided_slice %490 {offsets = [0, 0], sizes = [8, 64], strides = [1, 1]} : vector<15x64xf32> to vector<8x64xf32>
    %492 = vector.extract_strided_slice %490 {offsets = [8, 0], sizes = [4, 64], strides = [1, 1]} : vector<15x64xf32> to vector<4x64xf32>
    %493 = vector.extract_strided_slice %490 {offsets = [12, 0], sizes = [1, 64], strides = [1, 1]} : vector<15x64xf32> to vector<1x64xf32>
    %494 = vector.extract_strided_slice %490 {offsets = [13, 0], sizes = [1, 64], strides = [1, 1]} : vector<15x64xf32> to vector<1x64xf32>
    %495 = vector.extract_strided_slice %490 {offsets = [14, 0], sizes = [1, 64], strides = [1, 1]} : vector<15x64xf32> to vector<1x64xf32>
    %496 = arith.mulf %487, %487 : vector<16x32xf32>
    %cst_95 = arith.constant dense<0.000000e+00> : vector<16xf32>
    %497 = vector.multi_reduction <add>, %496, %cst_95 [1] : vector<16x32xf32> to vector<16xf32>
    %498 = vector.shape_cast %497 : vector<16xf32> to vector<16x1xf32>
    %cst_96 = arith.constant 3.200000e+01 : f32
    %499 = vector.broadcast %cst_96 : f32 to vector<16x1xf32>
    %500 = arith.divf %498, %499 : vector<16x1xf32>
    %cst_97 = arith.constant 9.99999974E-6 : f32
    %501 = vector.broadcast %cst_97 : f32 to vector<16x1xf32>
    %502 = arith.addf %500, %501 : vector<16x1xf32>
    %503 = math.rsqrt %502 : vector<16x1xf32>
    %504 = vector.broadcast %503 : vector<16x1xf32> to vector<16x32xf32>
    %505 = arith.mulf %487, %504 : vector<16x32xf32>
    %506 = vector.broadcast %488 : vector<1x32xf32> to vector<16x32xf32>
    %507 = arith.mulf %505, %506 : vector<16x32xf32>
    %c1_98 = arith.constant 1 : index
    %c0_99 = arith.constant 0 : index
    %c0_100 = arith.constant 0 : index
    %508 = vector.load %arg3[%c1_98, %c0_99, %c0_100] : memref<2x32x128xf32, #tpu.memory_space<vmem>>, vector<1x32x128xf32>
    %509 = vector.shape_cast %508 : vector<1x32x128xf32> to vector<32x128xf32>
    %cst_101 = arith.constant dense<0.000000e+00> : vector<16x128xf32>
    %510 = tpu.matmul %507, %509, %cst_101 {dimension_numbers = #tpu.dot_dimension_numbers<[1], [0], [0], [1], [0, 0, 1, 1], [], []>, precision = #tpu.contract_precision<fp32>} : vector<16x32xf32>, vector<32x128xf32>, vector<16x128xf32> -> vector<16x128xf32>
    %511 = vector.extract_strided_slice %510 {offsets = [0, 0], sizes = [16, 64], strides = [1, 1]} : vector<16x128xf32> to vector<16x64xf32>
    %512 = vector.extract_strided_slice %510 {offsets = [0, 64], sizes = [16, 64], strides = [1, 1]} : vector<16x128xf32> to vector<16x64xf32>
    %513 = vector.extract_strided_slice %492 {offsets = [3, 0], sizes = [1, 64], strides = [1, 1]} : vector<4x64xf32> to vector<1x64xf32>
    %514 = vector.broadcast %513 : vector<1x64xf32> to vector<16x64xf32>
    %515 = arith.mulf %511, %514 : vector<16x64xf32>
    %516 = vector.broadcast %493 : vector<1x64xf32> to vector<16x64xf32>
    %517 = arith.addf %515, %516 : vector<16x64xf32>
    %c1_i32_102 = arith.constant 1 : i32
    %518 = tpu.dynamic_rotate %511 by %c1_i32_102 dim 0 : vector<16x64xf32>, i32 -> vector<16x64xf32>
    %cst_103 = arith.constant 0.000000e+00 : f32
    %519 = vector.broadcast %cst_103 : f32 to vector<16x64xf32>
    %520 = arith.select %100, %518, %519 : vector<16x64xi1>, vector<16x64xf32>
    %521 = vector.extract_strided_slice %492 {offsets = [2, 0], sizes = [1, 64], strides = [1, 1]} : vector<4x64xf32> to vector<1x64xf32>
    %522 = vector.broadcast %521 : vector<1x64xf32> to vector<16x64xf32>
    %523 = arith.mulf %520, %522 : vector<16x64xf32>
    %524 = arith.addf %517, %523 : vector<16x64xf32>
    %c2_i32_104 = arith.constant 2 : i32
    %525 = tpu.dynamic_rotate %511 by %c2_i32_104 dim 0 : vector<16x64xf32>, i32 -> vector<16x64xf32>
    %cst_105 = arith.constant 0.000000e+00 : f32
    %526 = vector.broadcast %cst_105 : f32 to vector<16x64xf32>
    %527 = arith.select %108, %525, %526 : vector<16x64xi1>, vector<16x64xf32>
    %528 = vector.extract_strided_slice %492 {offsets = [1, 0], sizes = [1, 64], strides = [1, 1]} : vector<4x64xf32> to vector<1x64xf32>
    %529 = vector.broadcast %528 : vector<1x64xf32> to vector<16x64xf32>
    %530 = arith.mulf %527, %529 : vector<16x64xf32>
    %531 = arith.addf %524, %530 : vector<16x64xf32>
    %c3_i32_106 = arith.constant 3 : i32
    %532 = tpu.dynamic_rotate %511 by %c3_i32_106 dim 0 : vector<16x64xf32>, i32 -> vector<16x64xf32>
    %cst_107 = arith.constant 0.000000e+00 : f32
    %533 = vector.broadcast %cst_107 : f32 to vector<16x64xf32>
    %534 = arith.select %116, %532, %533 : vector<16x64xi1>, vector<16x64xf32>
    %535 = vector.extract_strided_slice %492 {offsets = [0, 0], sizes = [1, 64], strides = [1, 1]} : vector<4x64xf32> to vector<1x64xf32>
    %536 = vector.broadcast %535 : vector<1x64xf32> to vector<16x64xf32>
    %537 = arith.mulf %534, %536 : vector<16x64xf32>
    %538 = arith.addf %531, %537 : vector<16x64xf32>
    %539 = arith.negf %538 : vector<16x64xf32>
    %540 = math.exp %539 : vector<16x64xf32>
    %cst_108 = arith.constant 1.000000e+00 : f32
    %541 = vector.broadcast %cst_108 : f32 to vector<16x64xf32>
    %542 = arith.addf %541, %540 : vector<16x64xf32>
    %543 = arith.divf %541, %542 : vector<16x64xf32>
    %544 = arith.mulf %538, %543 : vector<16x64xf32>
    %c1_109 = arith.constant 1 : index
    %c0_110 = arith.constant 0 : index
    %c0_111 = arith.constant 0 : index
    %545 = vector.load %arg4[%c1_109, %c0_110, %c0_111] : memref<2x64x80xf32, #tpu.memory_space<vmem>>, vector<1x64x80xf32>
    %546 = vector.shape_cast %545 : vector<1x64x80xf32> to vector<64x80xf32>
    %cst_112 = arith.constant dense<0.000000e+00> : vector<16x80xf32>
    %547 = tpu.matmul %544, %546, %cst_112 {dimension_numbers = #tpu.dot_dimension_numbers<[1], [0], [0], [1], [0, 0, 1, 1], [], []>, precision = #tpu.contract_precision<fp32>} : vector<16x64xf32>, vector<64x80xf32>, vector<16x80xf32> -> vector<16x80xf32>
    %548 = vector.extract_strided_slice %547 {offsets = [0, 0], sizes = [16, 64], strides = [1, 1]} : vector<16x80xf32> to vector<16x64xf32>
    %549 = vector.broadcast %494 : vector<1x64xf32> to vector<16x64xf32>
    %550 = arith.addf %548, %549 : vector<16x64xf32>
    %cst_113 = arith.constant 0.000000e+00 : f32
    %551 = vector.broadcast %cst_113 : f32 to vector<16x64xf32>
    %552 = arith.maximumf %550, %551 : vector<16x64xf32>
    %553 = vector.broadcast %cst_113 : f32 to vector<16x64xf32>
    %554 = arith.subf %550, %553 : vector<16x64xf32>
    %555 = arith.cmpf one, %554, %554 : vector<16x64xf32>
    %556 = vector.broadcast %cst_113 : f32 to vector<16x64xf32>
    %557 = arith.addf %550, %556 : vector<16x64xf32>
    %558 = math.absf %554 : vector<16x64xf32>
    %cst_114 = arith.constant 0.000000e+00 : f32
    %559 = vector.broadcast %cst_114 : f32 to vector<16x64xf32>
    %560 = arith.subf %559, %558 : vector<16x64xf32>
    %561 = math.exp %560 : vector<16x64xf32>
    %562 = math.log1p %561 : vector<16x64xf32>
    %563 = arith.addf %552, %562 : vector<16x64xf32>
    %564 = arith.select %555, %557, %563 : vector<16x64xi1>, vector<16x64xf32>
    %565 = vector.extract_strided_slice %547 {offsets = [0, 64], sizes = [16, 16], strides = [1, 1]} : vector<16x80xf32> to vector<16x16xf32>
    %566 = tpu.transpose %565, [1, 0] : vector<16x16xf32> -> vector<16x16xf32>
    %567 = vector.extract_strided_slice %566 {offsets = [0, 0], sizes = [8, 16], strides = [1, 1]} : vector<16x16xf32> to vector<8x16xf32>
    %568 = vector.extract_strided_slice %566 {offsets = [8, 0], sizes = [8, 16], strides = [1, 1]} : vector<16x16xf32> to vector<8x16xf32>
    %569 = arith.mulf %564, %544 : vector<16x64xf32>
    %570 = vector.extract_strided_slice %564 {offsets = [0, 0], sizes = [1, 64], strides = [1, 1]} : vector<16x64xf32> to vector<1x64xf32>
    %571 = vector.broadcast %570 : vector<1x64xf32> to vector<8x64xf32>
    %572 = arith.mulf %571, %491 : vector<8x64xf32>
    %573 = math.exp %572 : vector<8x64xf32>
    %574 = vector.extract_strided_slice %564 {offsets = [1, 0], sizes = [1, 64], strides = [1, 1]} : vector<16x64xf32> to vector<1x64xf32>
    %575 = vector.broadcast %574 : vector<1x64xf32> to vector<8x64xf32>
    %576 = arith.mulf %575, %491 : vector<8x64xf32>
    %577 = math.exp %576 : vector<8x64xf32>
    %578 = vector.extract_strided_slice %564 {offsets = [2, 0], sizes = [1, 64], strides = [1, 1]} : vector<16x64xf32> to vector<1x64xf32>
    %579 = vector.broadcast %578 : vector<1x64xf32> to vector<8x64xf32>
    %580 = arith.mulf %579, %491 : vector<8x64xf32>
    %581 = math.exp %580 : vector<8x64xf32>
    %582 = vector.extract_strided_slice %564 {offsets = [3, 0], sizes = [1, 64], strides = [1, 1]} : vector<16x64xf32> to vector<1x64xf32>
    %583 = vector.broadcast %582 : vector<1x64xf32> to vector<8x64xf32>
    %584 = arith.mulf %583, %491 : vector<8x64xf32>
    %585 = math.exp %584 : vector<8x64xf32>
    %586 = vector.extract_strided_slice %564 {offsets = [4, 0], sizes = [1, 64], strides = [1, 1]} : vector<16x64xf32> to vector<1x64xf32>
    %587 = vector.broadcast %586 : vector<1x64xf32> to vector<8x64xf32>
    %588 = arith.mulf %587, %491 : vector<8x64xf32>
    %589 = math.exp %588 : vector<8x64xf32>
    %590 = vector.extract_strided_slice %564 {offsets = [5, 0], sizes = [1, 64], strides = [1, 1]} : vector<16x64xf32> to vector<1x64xf32>
    %591 = vector.broadcast %590 : vector<1x64xf32> to vector<8x64xf32>
    %592 = arith.mulf %591, %491 : vector<8x64xf32>
    %593 = math.exp %592 : vector<8x64xf32>
    %594 = vector.extract_strided_slice %564 {offsets = [6, 0], sizes = [1, 64], strides = [1, 1]} : vector<16x64xf32> to vector<1x64xf32>
    %595 = vector.broadcast %594 : vector<1x64xf32> to vector<8x64xf32>
    %596 = arith.mulf %595, %491 : vector<8x64xf32>
    %597 = math.exp %596 : vector<8x64xf32>
    %598 = vector.extract_strided_slice %564 {offsets = [7, 0], sizes = [1, 64], strides = [1, 1]} : vector<16x64xf32> to vector<1x64xf32>
    %599 = vector.broadcast %598 : vector<1x64xf32> to vector<8x64xf32>
    %600 = arith.mulf %599, %491 : vector<8x64xf32>
    %601 = math.exp %600 : vector<8x64xf32>
    %602 = vector.extract_strided_slice %564 {offsets = [8, 0], sizes = [1, 64], strides = [1, 1]} : vector<16x64xf32> to vector<1x64xf32>
    %603 = vector.broadcast %602 : vector<1x64xf32> to vector<8x64xf32>
    %604 = arith.mulf %603, %491 : vector<8x64xf32>
    %605 = math.exp %604 : vector<8x64xf32>
    %606 = vector.extract_strided_slice %564 {offsets = [9, 0], sizes = [1, 64], strides = [1, 1]} : vector<16x64xf32> to vector<1x64xf32>
    %607 = vector.broadcast %606 : vector<1x64xf32> to vector<8x64xf32>
    %608 = arith.mulf %607, %491 : vector<8x64xf32>
    %609 = math.exp %608 : vector<8x64xf32>
    %610 = vector.extract_strided_slice %564 {offsets = [10, 0], sizes = [1, 64], strides = [1, 1]} : vector<16x64xf32> to vector<1x64xf32>
    %611 = vector.broadcast %610 : vector<1x64xf32> to vector<8x64xf32>
    %612 = arith.mulf %611, %491 : vector<8x64xf32>
    %613 = math.exp %612 : vector<8x64xf32>
    %614 = vector.extract_strided_slice %564 {offsets = [11, 0], sizes = [1, 64], strides = [1, 1]} : vector<16x64xf32> to vector<1x64xf32>
    %615 = vector.broadcast %614 : vector<1x64xf32> to vector<8x64xf32>
    %616 = arith.mulf %615, %491 : vector<8x64xf32>
    %617 = math.exp %616 : vector<8x64xf32>
    %618 = vector.extract_strided_slice %564 {offsets = [12, 0], sizes = [1, 64], strides = [1, 1]} : vector<16x64xf32> to vector<1x64xf32>
    %619 = vector.broadcast %618 : vector<1x64xf32> to vector<8x64xf32>
    %620 = arith.mulf %619, %491 : vector<8x64xf32>
    %621 = math.exp %620 : vector<8x64xf32>
    %622 = vector.extract_strided_slice %564 {offsets = [13, 0], sizes = [1, 64], strides = [1, 1]} : vector<16x64xf32> to vector<1x64xf32>
    %623 = vector.broadcast %622 : vector<1x64xf32> to vector<8x64xf32>
    %624 = arith.mulf %623, %491 : vector<8x64xf32>
    %625 = math.exp %624 : vector<8x64xf32>
    %626 = vector.extract_strided_slice %564 {offsets = [14, 0], sizes = [1, 64], strides = [1, 1]} : vector<16x64xf32> to vector<1x64xf32>
    %627 = vector.broadcast %626 : vector<1x64xf32> to vector<8x64xf32>
    %628 = arith.mulf %627, %491 : vector<8x64xf32>
    %629 = math.exp %628 : vector<8x64xf32>
    %630 = vector.extract_strided_slice %564 {offsets = [15, 0], sizes = [1, 64], strides = [1, 1]} : vector<16x64xf32> to vector<1x64xf32>
    %631 = vector.broadcast %630 : vector<1x64xf32> to vector<8x64xf32>
    %632 = arith.mulf %631, %491 : vector<8x64xf32>
    %633 = math.exp %632 : vector<8x64xf32>
    %634 = vector.extract_strided_slice %569 {offsets = [0, 0], sizes = [1, 64], strides = [1, 1]} : vector<16x64xf32> to vector<1x64xf32>
    %635 = vector.extract_strided_slice %567 {offsets = [0, 0], sizes = [8, 1], strides = [1, 1]} : vector<8x16xf32> to vector<8x1xf32>
    %636 = vector.broadcast %634 : vector<1x64xf32> to vector<8x64xf32>
    %637 = vector.broadcast %635 : vector<8x1xf32> to vector<8x64xf32>
    %638 = arith.mulf %636, %637 : vector<8x64xf32>
    %639 = vector.extract_strided_slice %569 {offsets = [1, 0], sizes = [1, 64], strides = [1, 1]} : vector<16x64xf32> to vector<1x64xf32>
    %640 = vector.extract_strided_slice %567 {offsets = [0, 1], sizes = [8, 1], strides = [1, 1]} : vector<8x16xf32> to vector<8x1xf32>
    %641 = vector.broadcast %639 : vector<1x64xf32> to vector<8x64xf32>
    %642 = vector.broadcast %640 : vector<8x1xf32> to vector<8x64xf32>
    %643 = arith.mulf %641, %642 : vector<8x64xf32>
    %644 = vector.extract_strided_slice %569 {offsets = [2, 0], sizes = [1, 64], strides = [1, 1]} : vector<16x64xf32> to vector<1x64xf32>
    %645 = vector.extract_strided_slice %567 {offsets = [0, 2], sizes = [8, 1], strides = [1, 1]} : vector<8x16xf32> to vector<8x1xf32>
    %646 = vector.broadcast %644 : vector<1x64xf32> to vector<8x64xf32>
    %647 = vector.broadcast %645 : vector<8x1xf32> to vector<8x64xf32>
    %648 = arith.mulf %646, %647 : vector<8x64xf32>
    %649 = vector.extract_strided_slice %569 {offsets = [3, 0], sizes = [1, 64], strides = [1, 1]} : vector<16x64xf32> to vector<1x64xf32>
    %650 = vector.extract_strided_slice %567 {offsets = [0, 3], sizes = [8, 1], strides = [1, 1]} : vector<8x16xf32> to vector<8x1xf32>
    %651 = vector.broadcast %649 : vector<1x64xf32> to vector<8x64xf32>
    %652 = vector.broadcast %650 : vector<8x1xf32> to vector<8x64xf32>
    %653 = arith.mulf %651, %652 : vector<8x64xf32>
    %654 = vector.extract_strided_slice %569 {offsets = [4, 0], sizes = [1, 64], strides = [1, 1]} : vector<16x64xf32> to vector<1x64xf32>
    %655 = vector.extract_strided_slice %567 {offsets = [0, 4], sizes = [8, 1], strides = [1, 1]} : vector<8x16xf32> to vector<8x1xf32>
    %656 = vector.broadcast %654 : vector<1x64xf32> to vector<8x64xf32>
    %657 = vector.broadcast %655 : vector<8x1xf32> to vector<8x64xf32>
    %658 = arith.mulf %656, %657 : vector<8x64xf32>
    %659 = vector.extract_strided_slice %569 {offsets = [5, 0], sizes = [1, 64], strides = [1, 1]} : vector<16x64xf32> to vector<1x64xf32>
    %660 = vector.extract_strided_slice %567 {offsets = [0, 5], sizes = [8, 1], strides = [1, 1]} : vector<8x16xf32> to vector<8x1xf32>
    %661 = vector.broadcast %659 : vector<1x64xf32> to vector<8x64xf32>
    %662 = vector.broadcast %660 : vector<8x1xf32> to vector<8x64xf32>
    %663 = arith.mulf %661, %662 : vector<8x64xf32>
    %664 = vector.extract_strided_slice %569 {offsets = [6, 0], sizes = [1, 64], strides = [1, 1]} : vector<16x64xf32> to vector<1x64xf32>
    %665 = vector.extract_strided_slice %567 {offsets = [0, 6], sizes = [8, 1], strides = [1, 1]} : vector<8x16xf32> to vector<8x1xf32>
    %666 = vector.broadcast %664 : vector<1x64xf32> to vector<8x64xf32>
    %667 = vector.broadcast %665 : vector<8x1xf32> to vector<8x64xf32>
    %668 = arith.mulf %666, %667 : vector<8x64xf32>
    %669 = vector.extract_strided_slice %569 {offsets = [7, 0], sizes = [1, 64], strides = [1, 1]} : vector<16x64xf32> to vector<1x64xf32>
    %670 = vector.extract_strided_slice %567 {offsets = [0, 7], sizes = [8, 1], strides = [1, 1]} : vector<8x16xf32> to vector<8x1xf32>
    %671 = vector.broadcast %669 : vector<1x64xf32> to vector<8x64xf32>
    %672 = vector.broadcast %670 : vector<8x1xf32> to vector<8x64xf32>
    %673 = arith.mulf %671, %672 : vector<8x64xf32>
    %674 = vector.extract_strided_slice %569 {offsets = [8, 0], sizes = [1, 64], strides = [1, 1]} : vector<16x64xf32> to vector<1x64xf32>
    %675 = vector.extract_strided_slice %567 {offsets = [0, 8], sizes = [8, 1], strides = [1, 1]} : vector<8x16xf32> to vector<8x1xf32>
    %676 = vector.broadcast %674 : vector<1x64xf32> to vector<8x64xf32>
    %677 = vector.broadcast %675 : vector<8x1xf32> to vector<8x64xf32>
    %678 = arith.mulf %676, %677 : vector<8x64xf32>
    %679 = vector.extract_strided_slice %569 {offsets = [9, 0], sizes = [1, 64], strides = [1, 1]} : vector<16x64xf32> to vector<1x64xf32>
    %680 = vector.extract_strided_slice %567 {offsets = [0, 9], sizes = [8, 1], strides = [1, 1]} : vector<8x16xf32> to vector<8x1xf32>
    %681 = vector.broadcast %679 : vector<1x64xf32> to vector<8x64xf32>
    %682 = vector.broadcast %680 : vector<8x1xf32> to vector<8x64xf32>
    %683 = arith.mulf %681, %682 : vector<8x64xf32>
    %684 = vector.extract_strided_slice %569 {offsets = [10, 0], sizes = [1, 64], strides = [1, 1]} : vector<16x64xf32> to vector<1x64xf32>
    %685 = vector.extract_strided_slice %567 {offsets = [0, 10], sizes = [8, 1], strides = [1, 1]} : vector<8x16xf32> to vector<8x1xf32>
    %686 = vector.broadcast %684 : vector<1x64xf32> to vector<8x64xf32>
    %687 = vector.broadcast %685 : vector<8x1xf32> to vector<8x64xf32>
    %688 = arith.mulf %686, %687 : vector<8x64xf32>
    %689 = vector.extract_strided_slice %569 {offsets = [11, 0], sizes = [1, 64], strides = [1, 1]} : vector<16x64xf32> to vector<1x64xf32>
    %690 = vector.extract_strided_slice %567 {offsets = [0, 11], sizes = [8, 1], strides = [1, 1]} : vector<8x16xf32> to vector<8x1xf32>
    %691 = vector.broadcast %689 : vector<1x64xf32> to vector<8x64xf32>
    %692 = vector.broadcast %690 : vector<8x1xf32> to vector<8x64xf32>
    %693 = arith.mulf %691, %692 : vector<8x64xf32>
    %694 = vector.extract_strided_slice %569 {offsets = [12, 0], sizes = [1, 64], strides = [1, 1]} : vector<16x64xf32> to vector<1x64xf32>
    %695 = vector.extract_strided_slice %567 {offsets = [0, 12], sizes = [8, 1], strides = [1, 1]} : vector<8x16xf32> to vector<8x1xf32>
    %696 = vector.broadcast %694 : vector<1x64xf32> to vector<8x64xf32>
    %697 = vector.broadcast %695 : vector<8x1xf32> to vector<8x64xf32>
    %698 = arith.mulf %696, %697 : vector<8x64xf32>
    %699 = vector.extract_strided_slice %569 {offsets = [13, 0], sizes = [1, 64], strides = [1, 1]} : vector<16x64xf32> to vector<1x64xf32>
    %700 = vector.extract_strided_slice %567 {offsets = [0, 13], sizes = [8, 1], strides = [1, 1]} : vector<8x16xf32> to vector<8x1xf32>
    %701 = vector.broadcast %699 : vector<1x64xf32> to vector<8x64xf32>
    %702 = vector.broadcast %700 : vector<8x1xf32> to vector<8x64xf32>
    %703 = arith.mulf %701, %702 : vector<8x64xf32>
    %704 = vector.extract_strided_slice %569 {offsets = [14, 0], sizes = [1, 64], strides = [1, 1]} : vector<16x64xf32> to vector<1x64xf32>
    %705 = vector.extract_strided_slice %567 {offsets = [0, 14], sizes = [8, 1], strides = [1, 1]} : vector<8x16xf32> to vector<8x1xf32>
    %706 = vector.broadcast %704 : vector<1x64xf32> to vector<8x64xf32>
    %707 = vector.broadcast %705 : vector<8x1xf32> to vector<8x64xf32>
    %708 = arith.mulf %706, %707 : vector<8x64xf32>
    %709 = vector.extract_strided_slice %569 {offsets = [15, 0], sizes = [1, 64], strides = [1, 1]} : vector<16x64xf32> to vector<1x64xf32>
    %710 = vector.extract_strided_slice %567 {offsets = [0, 15], sizes = [8, 1], strides = [1, 1]} : vector<8x16xf32> to vector<8x1xf32>
    %711 = vector.broadcast %709 : vector<1x64xf32> to vector<8x64xf32>
    %712 = vector.broadcast %710 : vector<8x1xf32> to vector<8x64xf32>
    %713 = arith.mulf %711, %712 : vector<8x64xf32>
    %cst_115 = arith.constant 0.000000e+00 : f32
    %714 = vector.broadcast %cst_115 : f32 to vector<8x64xf32>
    %715 = arith.mulf %573, %714 : vector<8x64xf32>
    %716 = arith.addf %715, %638 : vector<8x64xf32>
    %717 = vector.extract_strided_slice %568 {offsets = [0, 0], sizes = [8, 1], strides = [1, 1]} : vector<8x16xf32> to vector<8x1xf32>
    %718 = vector.broadcast %717 : vector<8x1xf32> to vector<8x64xf32>
    %719 = arith.mulf %716, %718 : vector<8x64xf32>
    %cst_116 = arith.constant dense<0.000000e+00> : vector<64xf32>
    %720 = vector.multi_reduction <add>, %719, %cst_116 [0] : vector<8x64xf32> to vector<64xf32>
    %721 = vector.shape_cast %720 : vector<64xf32> to vector<1x64xf32>
    %c0_117 = arith.constant 0 : index
    %c0_118 = arith.constant 0 : index
    %722 = vector.load %arg8[%c0_117, %c0_118] : memref<16x64xf32, #tpu.memory_space<vmem>>, vector<1x64xf32>
    tpu.vector_store %arg8[%c0_117, %c0_118], %721 {strides = array<i32>} : memref<16x64xf32, #tpu.memory_space<vmem>>, vector<1x64xf32>,
    %723 = arith.mulf %577, %716 : vector<8x64xf32>
    %724 = arith.addf %723, %643 : vector<8x64xf32>
    %725 = vector.extract_strided_slice %568 {offsets = [0, 1], sizes = [8, 1], strides = [1, 1]} : vector<8x16xf32> to vector<8x1xf32>
    %726 = vector.broadcast %725 : vector<8x1xf32> to vector<8x64xf32>
    %727 = arith.mulf %724, %726 : vector<8x64xf32>
    %cst_119 = arith.constant dense<0.000000e+00> : vector<64xf32>
    %728 = vector.multi_reduction <add>, %727, %cst_119 [0] : vector<8x64xf32> to vector<64xf32>
    %729 = vector.shape_cast %728 : vector<64xf32> to vector<1x64xf32>
    %c1_120 = arith.constant 1 : index
    %c0_121 = arith.constant 0 : index
    %730 = vector.load %arg8[%c1_120, %c0_121] : memref<16x64xf32, #tpu.memory_space<vmem>>, vector<1x64xf32>
    tpu.vector_store %arg8[%c1_120, %c0_121], %729 {strides = array<i32>} : memref<16x64xf32, #tpu.memory_space<vmem>>, vector<1x64xf32>,
    %731 = arith.mulf %581, %724 : vector<8x64xf32>
    %732 = arith.addf %731, %648 : vector<8x64xf32>
    %733 = vector.extract_strided_slice %568 {offsets = [0, 2], sizes = [8, 1], strides = [1, 1]} : vector<8x16xf32> to vector<8x1xf32>
    %734 = vector.broadcast %733 : vector<8x1xf32> to vector<8x64xf32>
    %735 = arith.mulf %732, %734 : vector<8x64xf32>
    %cst_122 = arith.constant dense<0.000000e+00> : vector<64xf32>
    %736 = vector.multi_reduction <add>, %735, %cst_122 [0] : vector<8x64xf32> to vector<64xf32>
    %737 = vector.shape_cast %736 : vector<64xf32> to vector<1x64xf32>
    %c2_123 = arith.constant 2 : index
    %c0_124 = arith.constant 0 : index
    %738 = vector.load %arg8[%c2_123, %c0_124] : memref<16x64xf32, #tpu.memory_space<vmem>>, vector<1x64xf32>
    tpu.vector_store %arg8[%c2_123, %c0_124], %737 {strides = array<i32>} : memref<16x64xf32, #tpu.memory_space<vmem>>, vector<1x64xf32>,
    %739 = arith.mulf %585, %732 : vector<8x64xf32>
    %740 = arith.addf %739, %653 : vector<8x64xf32>
    %741 = vector.extract_strided_slice %568 {offsets = [0, 3], sizes = [8, 1], strides = [1, 1]} : vector<8x16xf32> to vector<8x1xf32>
    %742 = vector.broadcast %741 : vector<8x1xf32> to vector<8x64xf32>
    %743 = arith.mulf %740, %742 : vector<8x64xf32>
    %cst_125 = arith.constant dense<0.000000e+00> : vector<64xf32>
    %744 = vector.multi_reduction <add>, %743, %cst_125 [0] : vector<8x64xf32> to vector<64xf32>
    %745 = vector.shape_cast %744 : vector<64xf32> to vector<1x64xf32>
    %c3_126 = arith.constant 3 : index
    %c0_127 = arith.constant 0 : index
    %746 = vector.load %arg8[%c3_126, %c0_127] : memref<16x64xf32, #tpu.memory_space<vmem>>, vector<1x64xf32>
    tpu.vector_store %arg8[%c3_126, %c0_127], %745 {strides = array<i32>} : memref<16x64xf32, #tpu.memory_space<vmem>>, vector<1x64xf32>,
    %747 = arith.mulf %589, %740 : vector<8x64xf32>
    %748 = arith.addf %747, %658 : vector<8x64xf32>
    %749 = vector.extract_strided_slice %568 {offsets = [0, 4], sizes = [8, 1], strides = [1, 1]} : vector<8x16xf32> to vector<8x1xf32>
    %750 = vector.broadcast %749 : vector<8x1xf32> to vector<8x64xf32>
    %751 = arith.mulf %748, %750 : vector<8x64xf32>
    %cst_128 = arith.constant dense<0.000000e+00> : vector<64xf32>
    %752 = vector.multi_reduction <add>, %751, %cst_128 [0] : vector<8x64xf32> to vector<64xf32>
    %753 = vector.shape_cast %752 : vector<64xf32> to vector<1x64xf32>
    %c4_129 = arith.constant 4 : index
    %c0_130 = arith.constant 0 : index
    %754 = vector.load %arg8[%c4_129, %c0_130] : memref<16x64xf32, #tpu.memory_space<vmem>>, vector<1x64xf32>
    tpu.vector_store %arg8[%c4_129, %c0_130], %753 {strides = array<i32>} : memref<16x64xf32, #tpu.memory_space<vmem>>, vector<1x64xf32>,
    %755 = arith.mulf %593, %748 : vector<8x64xf32>
    %756 = arith.addf %755, %663 : vector<8x64xf32>
    %757 = vector.extract_strided_slice %568 {offsets = [0, 5], sizes = [8, 1], strides = [1, 1]} : vector<8x16xf32> to vector<8x1xf32>
    %758 = vector.broadcast %757 : vector<8x1xf32> to vector<8x64xf32>
    %759 = arith.mulf %756, %758 : vector<8x64xf32>
    %cst_131 = arith.constant dense<0.000000e+00> : vector<64xf32>
    %760 = vector.multi_reduction <add>, %759, %cst_131 [0] : vector<8x64xf32> to vector<64xf32>
    %761 = vector.shape_cast %760 : vector<64xf32> to vector<1x64xf32>
    %c5_132 = arith.constant 5 : index
    %c0_133 = arith.constant 0 : index
    %762 = vector.load %arg8[%c5_132, %c0_133] : memref<16x64xf32, #tpu.memory_space<vmem>>, vector<1x64xf32>
    tpu.vector_store %arg8[%c5_132, %c0_133], %761 {strides = array<i32>} : memref<16x64xf32, #tpu.memory_space<vmem>>, vector<1x64xf32>,
    %763 = arith.mulf %597, %756 : vector<8x64xf32>
    %764 = arith.addf %763, %668 : vector<8x64xf32>
    %765 = vector.extract_strided_slice %568 {offsets = [0, 6], sizes = [8, 1], strides = [1, 1]} : vector<8x16xf32> to vector<8x1xf32>
    %766 = vector.broadcast %765 : vector<8x1xf32> to vector<8x64xf32>
    %767 = arith.mulf %764, %766 : vector<8x64xf32>
    %cst_134 = arith.constant dense<0.000000e+00> : vector<64xf32>
    %768 = vector.multi_reduction <add>, %767, %cst_134 [0] : vector<8x64xf32> to vector<64xf32>
    %769 = vector.shape_cast %768 : vector<64xf32> to vector<1x64xf32>
    %c6_135 = arith.constant 6 : index
    %c0_136 = arith.constant 0 : index
    %770 = vector.load %arg8[%c6_135, %c0_136] : memref<16x64xf32, #tpu.memory_space<vmem>>, vector<1x64xf32>
    tpu.vector_store %arg8[%c6_135, %c0_136], %769 {strides = array<i32>} : memref<16x64xf32, #tpu.memory_space<vmem>>, vector<1x64xf32>,
    %771 = arith.mulf %601, %764 : vector<8x64xf32>
    %772 = arith.addf %771, %673 : vector<8x64xf32>
    %773 = vector.extract_strided_slice %568 {offsets = [0, 7], sizes = [8, 1], strides = [1, 1]} : vector<8x16xf32> to vector<8x1xf32>
    %774 = vector.broadcast %773 : vector<8x1xf32> to vector<8x64xf32>
    %775 = arith.mulf %772, %774 : vector<8x64xf32>
    %cst_137 = arith.constant dense<0.000000e+00> : vector<64xf32>
    %776 = vector.multi_reduction <add>, %775, %cst_137 [0] : vector<8x64xf32> to vector<64xf32>
    %777 = vector.shape_cast %776 : vector<64xf32> to vector<1x64xf32>
    %c7_138 = arith.constant 7 : index
    %c0_139 = arith.constant 0 : index
    %778 = vector.load %arg8[%c7_138, %c0_139] : memref<16x64xf32, #tpu.memory_space<vmem>>, vector<1x64xf32>
    tpu.vector_store %arg8[%c7_138, %c0_139], %777 {strides = array<i32>} : memref<16x64xf32, #tpu.memory_space<vmem>>, vector<1x64xf32>,
    %cst_140 = arith.constant 0.000000e+00 : f32
    %779 = vector.broadcast %cst_140 : f32 to vector<8x64xf32>
    %780 = arith.mulf %605, %779 : vector<8x64xf32>
    %781 = arith.addf %780, %678 : vector<8x64xf32>
    %782 = vector.extract_strided_slice %568 {offsets = [0, 8], sizes = [8, 1], strides = [1, 1]} : vector<8x16xf32> to vector<8x1xf32>
    %783 = vector.broadcast %782 : vector<8x1xf32> to vector<8x64xf32>
    %784 = arith.mulf %781, %783 : vector<8x64xf32>
    %cst_141 = arith.constant dense<0.000000e+00> : vector<64xf32>
    %785 = vector.multi_reduction <add>, %784, %cst_141 [0] : vector<8x64xf32> to vector<64xf32>
    %786 = vector.shape_cast %785 : vector<64xf32> to vector<1x64xf32>
    %c8_142 = arith.constant 8 : index
    %c0_143 = arith.constant 0 : index
    %787 = vector.load %arg8[%c8_142, %c0_143] : memref<16x64xf32, #tpu.memory_space<vmem>>, vector<1x64xf32>
    tpu.vector_store %arg8[%c8_142, %c0_143], %786 {strides = array<i32>} : memref<16x64xf32, #tpu.memory_space<vmem>>, vector<1x64xf32>,
    %788 = arith.mulf %609, %781 : vector<8x64xf32>
    %789 = arith.addf %788, %683 : vector<8x64xf32>
    %790 = vector.extract_strided_slice %568 {offsets = [0, 9], sizes = [8, 1], strides = [1, 1]} : vector<8x16xf32> to vector<8x1xf32>
    %791 = vector.broadcast %790 : vector<8x1xf32> to vector<8x64xf32>
    %792 = arith.mulf %789, %791 : vector<8x64xf32>
    %cst_144 = arith.constant dense<0.000000e+00> : vector<64xf32>
    %793 = vector.multi_reduction <add>, %792, %cst_144 [0] : vector<8x64xf32> to vector<64xf32>
    %794 = vector.shape_cast %793 : vector<64xf32> to vector<1x64xf32>
    %c9_145 = arith.constant 9 : index
    %c0_146 = arith.constant 0 : index
    %795 = vector.load %arg8[%c9_145, %c0_146] : memref<16x64xf32, #tpu.memory_space<vmem>>, vector<1x64xf32>
    tpu.vector_store %arg8[%c9_145, %c0_146], %794 {strides = array<i32>} : memref<16x64xf32, #tpu.memory_space<vmem>>, vector<1x64xf32>,
    %796 = arith.mulf %613, %789 : vector<8x64xf32>
    %797 = arith.addf %796, %688 : vector<8x64xf32>
    %798 = vector.extract_strided_slice %568 {offsets = [0, 10], sizes = [8, 1], strides = [1, 1]} : vector<8x16xf32> to vector<8x1xf32>
    %799 = vector.broadcast %798 : vector<8x1xf32> to vector<8x64xf32>
    %800 = arith.mulf %797, %799 : vector<8x64xf32>
    %cst_147 = arith.constant dense<0.000000e+00> : vector<64xf32>
    %801 = vector.multi_reduction <add>, %800, %cst_147 [0] : vector<8x64xf32> to vector<64xf32>
    %802 = vector.shape_cast %801 : vector<64xf32> to vector<1x64xf32>
    %c10_148 = arith.constant 10 : index
    %c0_149 = arith.constant 0 : index
    %803 = vector.load %arg8[%c10_148, %c0_149] : memref<16x64xf32, #tpu.memory_space<vmem>>, vector<1x64xf32>
    tpu.vector_store %arg8[%c10_148, %c0_149], %802 {strides = array<i32>} : memref<16x64xf32, #tpu.memory_space<vmem>>, vector<1x64xf32>,
    %804 = arith.mulf %617, %797 : vector<8x64xf32>
    %805 = arith.addf %804, %693 : vector<8x64xf32>
    %806 = vector.extract_strided_slice %568 {offsets = [0, 11], sizes = [8, 1], strides = [1, 1]} : vector<8x16xf32> to vector<8x1xf32>
    %807 = vector.broadcast %806 : vector<8x1xf32> to vector<8x64xf32>
    %808 = arith.mulf %805, %807 : vector<8x64xf32>
    %cst_150 = arith.constant dense<0.000000e+00> : vector<64xf32>
    %809 = vector.multi_reduction <add>, %808, %cst_150 [0] : vector<8x64xf32> to vector<64xf32>
    %810 = vector.shape_cast %809 : vector<64xf32> to vector<1x64xf32>
    %c11_151 = arith.constant 11 : index
    %c0_152 = arith.constant 0 : index
    %811 = vector.load %arg8[%c11_151, %c0_152] : memref<16x64xf32, #tpu.memory_space<vmem>>, vector<1x64xf32>
    tpu.vector_store %arg8[%c11_151, %c0_152], %810 {strides = array<i32>} : memref<16x64xf32, #tpu.memory_space<vmem>>, vector<1x64xf32>,
    %812 = arith.mulf %621, %805 : vector<8x64xf32>
    %813 = arith.addf %812, %698 : vector<8x64xf32>
    %814 = vector.extract_strided_slice %568 {offsets = [0, 12], sizes = [8, 1], strides = [1, 1]} : vector<8x16xf32> to vector<8x1xf32>
    %815 = vector.broadcast %814 : vector<8x1xf32> to vector<8x64xf32>
    %816 = arith.mulf %813, %815 : vector<8x64xf32>
    %cst_153 = arith.constant dense<0.000000e+00> : vector<64xf32>
    %817 = vector.multi_reduction <add>, %816, %cst_153 [0] : vector<8x64xf32> to vector<64xf32>
    %818 = vector.shape_cast %817 : vector<64xf32> to vector<1x64xf32>
    %c12_154 = arith.constant 12 : index
    %c0_155 = arith.constant 0 : index
    %819 = vector.load %arg8[%c12_154, %c0_155] : memref<16x64xf32, #tpu.memory_space<vmem>>, vector<1x64xf32>
    tpu.vector_store %arg8[%c12_154, %c0_155], %818 {strides = array<i32>} : memref<16x64xf32, #tpu.memory_space<vmem>>, vector<1x64xf32>,
    %820 = arith.mulf %625, %813 : vector<8x64xf32>
    %821 = arith.addf %820, %703 : vector<8x64xf32>
    %822 = vector.extract_strided_slice %568 {offsets = [0, 13], sizes = [8, 1], strides = [1, 1]} : vector<8x16xf32> to vector<8x1xf32>
    %823 = vector.broadcast %822 : vector<8x1xf32> to vector<8x64xf32>
    %824 = arith.mulf %821, %823 : vector<8x64xf32>
    %cst_156 = arith.constant dense<0.000000e+00> : vector<64xf32>
    %825 = vector.multi_reduction <add>, %824, %cst_156 [0] : vector<8x64xf32> to vector<64xf32>
    %826 = vector.shape_cast %825 : vector<64xf32> to vector<1x64xf32>
    %c13_157 = arith.constant 13 : index
    %c0_158 = arith.constant 0 : index
    %827 = vector.load %arg8[%c13_157, %c0_158] : memref<16x64xf32, #tpu.memory_space<vmem>>, vector<1x64xf32>
    tpu.vector_store %arg8[%c13_157, %c0_158], %826 {strides = array<i32>} : memref<16x64xf32, #tpu.memory_space<vmem>>, vector<1x64xf32>,
    %828 = arith.mulf %629, %821 : vector<8x64xf32>
    %829 = arith.addf %828, %708 : vector<8x64xf32>
    %830 = vector.extract_strided_slice %568 {offsets = [0, 14], sizes = [8, 1], strides = [1, 1]} : vector<8x16xf32> to vector<8x1xf32>
    %831 = vector.broadcast %830 : vector<8x1xf32> to vector<8x64xf32>
    %832 = arith.mulf %829, %831 : vector<8x64xf32>
    %cst_159 = arith.constant dense<0.000000e+00> : vector<64xf32>
    %833 = vector.multi_reduction <add>, %832, %cst_159 [0] : vector<8x64xf32> to vector<64xf32>
    %834 = vector.shape_cast %833 : vector<64xf32> to vector<1x64xf32>
    %c14_160 = arith.constant 14 : index
    %c0_161 = arith.constant 0 : index
    %835 = vector.load %arg8[%c14_160, %c0_161] : memref<16x64xf32, #tpu.memory_space<vmem>>, vector<1x64xf32>
    tpu.vector_store %arg8[%c14_160, %c0_161], %834 {strides = array<i32>} : memref<16x64xf32, #tpu.memory_space<vmem>>, vector<1x64xf32>,
    %836 = arith.mulf %633, %829 : vector<8x64xf32>
    %837 = arith.addf %836, %713 : vector<8x64xf32>
    %838 = vector.extract_strided_slice %568 {offsets = [0, 15], sizes = [8, 1], strides = [1, 1]} : vector<8x16xf32> to vector<8x1xf32>
    %839 = vector.broadcast %838 : vector<8x1xf32> to vector<8x64xf32>
    %840 = arith.mulf %837, %839 : vector<8x64xf32>
    %cst_162 = arith.constant dense<0.000000e+00> : vector<64xf32>
    %841 = vector.multi_reduction <add>, %840, %cst_162 [0] : vector<8x64xf32> to vector<64xf32>
    %842 = vector.shape_cast %841 : vector<64xf32> to vector<1x64xf32>
    %c15_163 = arith.constant 15 : index
    %c0_164 = arith.constant 0 : index
    %843 = vector.load %arg8[%c15_163, %c0_164] : memref<16x64xf32, #tpu.memory_space<vmem>>, vector<1x64xf32>
    tpu.vector_store %arg8[%c15_163, %c0_164], %842 {strides = array<i32>} : memref<16x64xf32, #tpu.memory_space<vmem>>, vector<1x64xf32>,
    %c0_165 = arith.constant 0 : index
    %c0_166 = arith.constant 0 : index
    %844 = vector.load %arg8[%c0_165, %c0_166] : memref<16x64xf32, #tpu.memory_space<vmem>>, vector<16x64xf32>
    %845 = vector.broadcast %495 : vector<1x64xf32> to vector<16x64xf32>
    %846 = arith.mulf %544, %845 : vector<16x64xf32>
    %847 = arith.addf %844, %846 : vector<16x64xf32>
    %848 = arith.negf %512 : vector<16x64xf32>
    %849 = math.exp %848 : vector<16x64xf32>
    %cst_167 = arith.constant 1.000000e+00 : f32
    %850 = vector.broadcast %cst_167 : f32 to vector<16x64xf32>
    %851 = arith.addf %850, %849 : vector<16x64xf32>
    %852 = arith.divf %850, %851 : vector<16x64xf32>
    %853 = arith.mulf %512, %852 : vector<16x64xf32>
    %854 = arith.mulf %847, %853 : vector<16x64xf32>
    %c1_168 = arith.constant 1 : index
    %c0_169 = arith.constant 0 : index
    %c0_170 = arith.constant 0 : index
    %855 = vector.load %arg5[%c1_168, %c0_169, %c0_170] : memref<2x64x32xf32, #tpu.memory_space<vmem>>, vector<1x64x32xf32>
    %856 = vector.shape_cast %855 : vector<1x64x32xf32> to vector<64x32xf32>
    %cst_171 = arith.constant dense<0.000000e+00> : vector<16x32xf32>
    %857 = tpu.matmul %854, %856, %cst_171 {dimension_numbers = #tpu.dot_dimension_numbers<[1], [0], [0], [1], [0, 0, 1, 1], [], []>, precision = #tpu.contract_precision<fp32>} : vector<16x64xf32>, vector<64x32xf32>, vector<16x32xf32> -> vector<16x32xf32>
    %858 = arith.addf %487, %857 : vector<16x32xf32>
    %859 = vector.extract_strided_slice %858 {offsets = [7, 0], sizes = [1, 32], strides = [1, 1]} : vector<16x32xf32> to vector<1x32xf32>
    %cst_172 = arith.constant dense<0.000000e+00> : vector<1xf32>
    %860 = vector.multi_reduction <add>, %859, %cst_172 [1] : vector<1x32xf32> to vector<1xf32>
    %861 = vector.shape_cast %860 : vector<1xf32> to vector<1x1xf32>
    %cst_173 = arith.constant 3.200000e+01 : f32
    %862 = vector.broadcast %cst_173 : f32 to vector<1x1xf32>
    %863 = arith.divf %861, %862 : vector<1x1xf32>
    %864 = vector.broadcast %863 : vector<1x1xf32> to vector<1x32xf32>
    %865 = arith.subf %859, %864 : vector<1x32xf32>
    %866 = vector.broadcast %863 : vector<1x1xf32> to vector<1x32xf32>
    %867 = arith.subf %859, %866 : vector<1x32xf32>
    %868 = arith.mulf %865, %867 : vector<1x32xf32>
    %cst_174 = arith.constant dense<0.000000e+00> : vector<1xf32>
    %869 = vector.multi_reduction <add>, %868, %cst_174 [1] : vector<1x32xf32> to vector<1xf32>
    %870 = vector.shape_cast %869 : vector<1xf32> to vector<1x1xf32>
    %cst_175 = arith.constant 3.200000e+01 : f32
    %871 = vector.broadcast %cst_175 : f32 to vector<1x1xf32>
    %872 = arith.divf %870, %871 : vector<1x1xf32>
    %873 = vector.broadcast %863 : vector<1x1xf32> to vector<1x32xf32>
    %874 = arith.subf %859, %873 : vector<1x32xf32>
    %cst_176 = arith.constant 9.99999974E-6 : f32
    %875 = vector.broadcast %cst_176 : f32 to vector<1x1xf32>
    %876 = arith.addf %872, %875 : vector<1x1xf32>
    %877 = math.rsqrt %876 : vector<1x1xf32>
    %878 = vector.broadcast %877 : vector<1x1xf32> to vector<1x32xf32>
    %879 = arith.mulf %874, %878 : vector<1x32xf32>
    %880 = arith.mulf %879, %3 : vector<1x32xf32>
    %881 = arith.addf %880, %4 : vector<1x32xf32>
    %882 = arith.cmpf one, %881, %881 : vector<1x32xf32>
    %cst_177 = arith.constant 0.000000e+00 : f32
    %883 = vector.broadcast %cst_177 : f32 to vector<1x32xf32>
    %884 = arith.select %882, %883, %881 : vector<1x32xi1>, vector<1x32xf32>
    %cst_178 = arith.constant 0x7F800000 : f32
    %885 = vector.broadcast %cst_178 : f32 to vector<1x32xf32>
    %886 = arith.cmpf oeq, %884, %885 : vector<1x32xf32>
    %cst_179 = arith.constant 1.000000e+00 : f32
    %887 = vector.broadcast %cst_179 : f32 to vector<1x32xf32>
    %888 = arith.select %886, %887, %884 : vector<1x32xi1>, vector<1x32xf32>
    %cst_180 = arith.constant 0xFF800000 : f32
    %889 = vector.broadcast %cst_180 : f32 to vector<1x32xf32>
    %890 = arith.cmpf oeq, %888, %889 : vector<1x32xf32>
    %cst_181 = arith.constant -1.000000e+00 : f32
    %891 = vector.broadcast %cst_181 : f32 to vector<1x32xf32>
    %892 = arith.select %890, %891, %888 : vector<1x32xi1>, vector<1x32xf32>
    %c0_182 = arith.constant 0 : index
    %c0_183 = arith.constant 0 : index
    %c0_184 = arith.constant 0 : index
    %893 = vector.load %arg7[%c0_182, %c0_183, %c0_184] : memref<1x2x32xf32, #tpu.memory_space<vmem>>, vector<1x1x32xf32>
    %894 = vector.shape_cast %893 : vector<1x1x32xf32> to vector<1x32xf32>
    %895 = vector.shape_cast %892 : vector<1x32xf32> to vector<1x1x32xf32>
    tpu.vector_store %arg7[%c0_182, %c0_183, %c0_184], %895 {strides = array<i32>} : memref<1x2x32xf32, #tpu.memory_space<vmem>>, vector<1x1x32xf32>,
    %896 = vector.extract_strided_slice %858 {offsets = [15, 0], sizes = [1, 32], strides = [1, 1]} : vector<16x32xf32> to vector<1x32xf32>
    %cst_185 = arith.constant dense<0.000000e+00> : vector<1xf32>
    %897 = vector.multi_reduction <add>, %896, %cst_185 [1] : vector<1x32xf32> to vector<1xf32>
    %898 = vector.shape_cast %897 : vector<1xf32> to vector<1x1xf32>
    %cst_186 = arith.constant 3.200000e+01 : f32
    %899 = vector.broadcast %cst_186 : f32 to vector<1x1xf32>
    %900 = arith.divf %898, %899 : vector<1x1xf32>
    %901 = vector.broadcast %900 : vector<1x1xf32> to vector<1x32xf32>
    %902 = arith.subf %896, %901 : vector<1x32xf32>
    %903 = vector.broadcast %900 : vector<1x1xf32> to vector<1x32xf32>
    %904 = arith.subf %896, %903 : vector<1x32xf32>
    %905 = arith.mulf %902, %904 : vector<1x32xf32>
    %cst_187 = arith.constant dense<0.000000e+00> : vector<1xf32>
    %906 = vector.multi_reduction <add>, %905, %cst_187 [1] : vector<1x32xf32> to vector<1xf32>
    %907 = vector.shape_cast %906 : vector<1xf32> to vector<1x1xf32>
    %cst_188 = arith.constant 3.200000e+01 : f32
    %908 = vector.broadcast %cst_188 : f32 to vector<1x1xf32>
    %909 = arith.divf %907, %908 : vector<1x1xf32>
    %910 = vector.broadcast %900 : vector<1x1xf32> to vector<1x32xf32>
    %911 = arith.subf %896, %910 : vector<1x32xf32>
    %cst_189 = arith.constant 9.99999974E-6 : f32
    %912 = vector.broadcast %cst_189 : f32 to vector<1x1xf32>
    %913 = arith.addf %909, %912 : vector<1x1xf32>
    %914 = math.rsqrt %913 : vector<1x1xf32>
    %915 = vector.broadcast %914 : vector<1x1xf32> to vector<1x32xf32>
    %916 = arith.mulf %911, %915 : vector<1x32xf32>
    %917 = arith.mulf %916, %3 : vector<1x32xf32>
    %918 = arith.addf %917, %4 : vector<1x32xf32>
    %919 = arith.cmpf one, %918, %918 : vector<1x32xf32>
    %cst_190 = arith.constant 0.000000e+00 : f32
    %920 = vector.broadcast %cst_190 : f32 to vector<1x32xf32>
    %921 = arith.select %919, %920, %918 : vector<1x32xi1>, vector<1x32xf32>
    %cst_191 = arith.constant 0x7F800000 : f32
    %922 = vector.broadcast %cst_191 : f32 to vector<1x32xf32>
    %923 = arith.cmpf oeq, %921, %922 : vector<1x32xf32>
    %cst_192 = arith.constant 1.000000e+00 : f32
    %924 = vector.broadcast %cst_192 : f32 to vector<1x32xf32>
    %925 = arith.select %923, %924, %921 : vector<1x32xi1>, vector<1x32xf32>
    %cst_193 = arith.constant 0xFF800000 : f32
    %926 = vector.broadcast %cst_193 : f32 to vector<1x32xf32>
    %927 = arith.cmpf oeq, %925, %926 : vector<1x32xf32>
    %cst_194 = arith.constant -1.000000e+00 : f32
    %928 = vector.broadcast %cst_194 : f32 to vector<1x32xf32>
    %929 = arith.select %927, %928, %925 : vector<1x32xi1>, vector<1x32xf32>
    %c0_195 = arith.constant 0 : index
    %c1_196 = arith.constant 1 : index
    %c0_197 = arith.constant 0 : index
    %930 = vector.load %arg7[%c0_195, %c1_196, %c0_197] : memref<1x2x32xf32, #tpu.memory_space<vmem>>, vector<1x1x32xf32>
    %931 = vector.shape_cast %930 : vector<1x1x32xf32> to vector<1x32xf32>
    %932 = vector.shape_cast %929 : vector<1x32xf32> to vector<1x1x32xf32>
    tpu.vector_store %arg7[%c0_195, %c1_196, %c0_197], %932 {strides = array<i32>} : memref<1x2x32xf32, #tpu.memory_space<vmem>>, vector<1x1x32xf32>,
    return
  }
  func.func @transform_0(%arg0: i32) -> (i32, i32, i32) {
    %c0_i32 = arith.constant 0 : i32
    %c0_i32_0 = arith.constant 0 : i32
    %c0_i32_1 = arith.constant 0 : i32
    return %arg0, %c0_i32, %c0_i32_0 : i32, i32, i32
  }
  func.func @transform_1(%arg0: i32) -> (i32, i32) {
    %c0_i32 = arith.constant 0 : i32
    %c0_i32_0 = arith.constant 0 : i32
    %c0_i32_1 = arith.constant 0 : i32
    return %c0_i32, %c0_i32_0 : i32, i32
  }
  func.func @transform_2(%arg0: i32) -> (i32, i32, i32) {
    %c0_i32 = arith.constant 0 : i32
    %c0_i32_0 = arith.constant 0 : i32
    %c0_i32_1 = arith.constant 0 : i32
    %c0_i32_2 = arith.constant 0 : i32
    return %c0_i32, %c0_i32_0, %c0_i32_1 : i32, i32, i32
  }
  func.func @transform_3(%arg0: i32) -> (i32, i32, i32) {
    %c0_i32 = arith.constant 0 : i32
    %c0_i32_0 = arith.constant 0 : i32
    %c0_i32_1 = arith.constant 0 : i32
    %c0_i32_2 = arith.constant 0 : i32
    return %c0_i32, %c0_i32_0, %c0_i32_1 : i32, i32, i32
  }
  func.func @transform_4(%arg0: i32) -> (i32, i32, i32) {
    %c0_i32 = arith.constant 0 : i32
    %c0_i32_0 = arith.constant 0 : i32
    %c0_i32_1 = arith.constant 0 : i32
    %c0_i32_2 = arith.constant 0 : i32
    return %c0_i32, %c0_i32_0, %c0_i32_1 : i32, i32, i32
  }
  func.func @transform_5(%arg0: i32) -> (i32, i32, i32) {
    %c0_i32 = arith.constant 0 : i32
    %c0_i32_0 = arith.constant 0 : i32
    %c0_i32_1 = arith.constant 0 : i32
    %c0_i32_2 = arith.constant 0 : i32
    return %c0_i32, %c0_i32_0, %c0_i32_1 : i32, i32, i32
  }
  func.func @transform_6(%arg0: i32) -> (i32, i32, i32) {
    %c0_i32 = arith.constant 0 : i32
    %c0_i32_0 = arith.constant 0 : i32
    %c0_i32_1 = arith.constant 0 : i32
    return %arg0, %c0_i32, %c0_i32_0 : i32, i32, i32
  }
}

</mosaic_0001>

<bundles_post_ra>
// kernel: tpu_custom_call.1
= control target key start
LH: loop header
LB: loop body
LE: loop exit
PB: predicated region body
PF: predicated region fallthrough
CT: control target
= control target key end

     0   :  { %11 = vsyncpa [#allocation4], 0  ;;  %s8780_s0 = inlined_call_operand.vmem [shape: f32[2,16,4], index: 0, kind: input, shape index: {}]   ;;  %s8781_s1 = inlined_call_operand.vmem [shape: f32[10,32], index: 1, kind: input, shape index: {}]   ;;  %s8782_s2 = inlined_call_operand.vmem [shape: f32[2,32,128], index: 2, kind: input, shape index: {}]   ;;  %s8783_s3 = inlined_call_operand.vmem [shape: f32[2,64,80], index: 3, kind: input, shape index: {}]   ;;  %s8784_s4 = inlined_call_operand.vmem [shape: f32[2,64,32], index: 4, kind: input, shape index: {}]   ;;  %s8785_s5 = inlined_call_operand.vmem [shape: f32[2,15,64], index: 5, kind: input, shape index: {}]   ;;  %s8786_s6 = inlined_call_operand.hbm [shape: f32[2,2,32], index: 6, kind: output, shape index: {}]  }
   0x1   :  { %13 = vsyncpa [#allocation4 + $0x1], 0  ;;  %s7313_s21 = smov 0   ;;  %s7315_s22 = smov 0  }
   0x2   :  { %s7317_s23 = smov 0   ;;  %s7319_s24 = smov 0  }
   0x3 LB: > { %s7334_s25 = sadd.s32 4294967295, %s7257_s24   ;;  %s5443_s26 = sadd.s32 4294967294, %s7257_s24   ;;  %s7257_s24 = sphi %s7319_s24, %s8944_s24   ;;  %s7253_s23 = sphi %s7317_s23, %s8943_s23   ;;  %s7249_s22 = sphi %s7315_s22, %s8942_s22   ;;  %s7245_s21 = sphi %s7313_s21, %s8941_s21  }
   0x4   : > { %s7338_s27 = sadd.s32 1, %s7257_s24   ;;  %s157_s28 = sadd.s32 1, %s7253_s23 }
   0x5   : > { %s154_s29 = ssub.s32 %s7257_s24, %s7338_s27  ;;  %p167_p0 = scmp.ne.s32.totalorder %s7253_s23, %s7249_s22 }
   0x6   : > { %p155_p1 = scmp.eq.s32.totalorder %s154_s29, 0  ;;  %p168_p2 = scmp.eq.s32.totalorder %s7334_s25, 1 }
   0x7   : > { %p173_p3 = scmp.ne.s32.totalorder %s7249_s22, %s7245_s21  ;;  %p174_p4 = scmp.eq.s32.totalorder %s5443_s26, 1 }
   0x8   : > { %s7349_s30 = scalar_select %p155_p1, %s7253_s23, %s157_s28  }
   0x9   : > { %p7351_p5 = por %p168_p2, %p167_p0  ;;  %p7355_p6 = por %p174_p4, %p173_p3 }
   0xa   : > { %p5446_p7 = scmp.ge.s32.totalorder %s7257_s24, 1  ;;  %p215_p8 = scmp.lt.s32.totalorder %s7257_s24, 3 }
   0xc   : > { %p216_p9 = pnand %p5446_p7, %p215_p8 }
   0xe   : > { %219 = sbr.rel (%p216_p9) target bundleno = 3840 (0xf00), region = 44 }
  0x15   : > { %p245_p10 = scmp.lt.s32.totalorder %s7334_s25, 1  ;;  %v8808_v0 = vmov 1   ;;  %v8787_v1 = vmov 0   ;;  %v8800_v8 = vmov 2   ;;  %v8816_v9 = vmov 3   ;;  %v250_v13 = vld [vmem:[%s8781_s1] sm:$0xff] }
  0x16   : > { %6986 = vset.pattern.permute.xlu1 %v8808_v0  ;;  %6985 = vset.pattern.permute.xlu0 %v8787_v1  ;;  %v272_v10 = vlaneseq  ;;  %vm334_vm2 = vcmask 261120   ;;  %vm1080_vm14 = vcmask 523264   ;;  %s7264_s14 = smov 64   ;;  %s242_s12 = sand.u32 1, %s7249_s22  }
  0x17   : > { %s246_s9 = scalar_select %p245_p10, %s7334_s25, 1 }
  0x18   : > { %v7373_v11 = vshrl.u32 %v272_v10, 7  ;;  %s5483_s15 = sshll.u32 %s7334_s25, 5  ;;  %s5371_s25 = scalar_lea.sflag [#allocation4], %s242_s12 }
  0x19   : > { %s5486_s10 = sshll.u32 %s246_s9, 4  ;;  %s8737_s20 = scalar_lea.hbm %s8786_s6, %s5483_s15 }
  0x1a   : > { %s249_s13 = scalar_lea.vmem %s8780_s0, %s5486_s10  ;;  %8869 = vst [vmem:[#allocation6_spill] sm:$0xff] %v7373_v11  ;;  %v7376_v12 = vsub.s32 4, %v7373_v11  ;;  %v7383_v17 = vsub.s32 0, %v7373_v11  ;;  %v7386_v18 = vsub.s32 5, %v7373_v11  ;;  %v7389_v19 = vsub.s32 6, %v7373_v11  ;;  %s7277_s28 = smov [#allocation3]  }
  0x1b   : > { %v252_v2 = vld [vmem:[%s249_s13] sm:$0xff]  ;;  %v253_v3 = vld [vmem:[%s249_s13 + $0x8] sm:$0xff]  ;;  %v7393_v25 = vsub.s32 7, %v7373_v11  ;;  %v7401_v57 = vsub.s32 1, %v7373_v11  ;;  %vm413_vm5 = vcmp.ge.s32.totalorder %v7373_v11, 1  ;;  %vm1015_vm6 = vcmp.lt.s32.totalorder %v7373_v11, 1 }
  0x1c   : > { %vm254_vm0 = vcmp.ne.f32.partialorder %v252_v2, %v252_v2  ;;  %vm255_vm1 = vcmp.ne.f32.partialorder %v253_v3, %v253_v3  ;;  %v275_v16 = vrot.slane %v250_v13, %v7376_v12  ;;  %8870 = vst [vmem:[#allocation7_spill] sm:$0xff] %v7383_v17  ;;  %v281_v22 = vrot.slane %v250_v13, %v7383_v17  ;;  %s5447_s13 = sshll.u32 %s242_s12, 1  ;;  %s7199_s29 = sshll.u32 %s7277_s28, 4  ;;  %s7200_s29 = int_to_ptr.vmem [resolvable:$false] %s7199_s29 }
  0x1d   : > { %v256_v4 = vsel %vm254_vm0, 0.0, %v252_v2  ;;  %v257_v5 = vsel %vm255_vm1, 0.0, %v253_v3  ;;  %v295_v26 = vrot.slane %v250_v13, %v7386_v18  ;;  %v311_v28 = vrot.slane %v250_v13, %v7389_v19  ;;  %8871 = vst [vmem:[#allocation8_spill] sm:$0xff] %v7401_v57  ;;  %s244_s16 = scalar_lea.vmem [#allocation3], %s5447_s13  ;;  %s7201_s9 = scalar_lea.vmem %s7200_s29, 64 }
  0x1e   : > { %v5450_v6 = vclamps-f32 %v256_v4, 3.4028235e+38  ;;  %v5451_v7 = vclamps-f32 %v257_v5, 3.4028235e+38  ;;  %v327_v33 = vrot.slane %v250_v13, %v7393_v25  ;;  %v353_v58 = vrot.slane %v250_v13, %v7401_v57  ;;  %s5384_s17 = sshll.u32 %s244_s16, 4  ;;  %s8739_s17 = int_to_ptr.vmem [resolvable:$true] %s5384_s17 }
  0x1f   : > { %vm1030_vm7 = vcmp.lt.s32.totalorder %v7373_v11, 2  ;;  %vm1045_vm8 = vcmp.lt.s32.totalorder %v7373_v11, 3  ;;  %vm423_vm10 = vcmp.ge.s32.totalorder %v7373_v11, 2  ;;  %vm431_vm13 = vcmp.ge.s32.totalorder %v7373_v11, 3  ;;  %s7195_s26 = scalar_lea.vmem %s8739_s17, 32  ;;  %p7202_p0 = scmp.lt.s32.totalorder %s8739_s17, %s7200_s29 }
  0x20   : > { %285 = vperm.xlu1 %6986, %v5450_v6   ;;  %264 = vperm.xlu0 %6985, %v5450_v6   ;;  %p7196_p11 = scmp.ne.s32.totalorder %s8739_s17, %s7195_s26  ;;  %p7203_p1 = scmp.lt.s32.totalorder %s7201_s9, %s7195_s26 }
  0x22   : > { %p7197_p12 = pnand %p7196_p11, %p7351_p5  ;;  %p7204_p2 = por %p7203_p1, %p7202_p0 }
  0x24   : > { %289 = vperm.xlu1 %6986, %v5451_v7   ;;  %269 = vperm.xlu0 %6985, %v5451_v7   ;;  %p7198_p13 = pneg %p7197_p12 }
  0x26   : > { %p7205_p3 = pnand %p7204_p2, %p7198_p13 }
  0x28   : > { %6988 = vset.pattern.permute.xlu1 %v8800_v8  ;;  %6987 = vset.pattern.permute.xlu0 %v8800_v8 }
  0x29   : > { %305 = vperm.xlu1 %6988, %v5451_v7   ;;  %301 = vperm.xlu0 %6987, %v5450_v6  }
  0x2d   : > { %6989 = vset.pattern.permute.xlu1 %v8816_v9  ;;  %6990 = vset.pattern.permute.xlu0 %v8816_v9 }
  0x2e   : > { %317 = vperm.xlu1 %6989, %v5450_v6   ;;  %321 = vperm.xlu0 %6990, %v5451_v7  }
  0x32   : > { %6991 = vset.pattern.permute.xlu0 %v8787_v1 }
  0x9f   : > { %v286_v14 = vpop.permute.xlu1 %285  ;;  %v265_v15 = vpop.permute.xlu0 %264 }
  0xa0   : > { %v276_v23 = vmul.f32 %v275_v16, %v265_v15  ;;  %v296_v34 = vmul.f32 %v295_v26, %v286_v14 }
  0xa2   : > { %v282_v29 = vadd.f32 %v281_v22, %v276_v23 }
  0xa3   : > { %v290_v20 = vpop.permute.xlu1 %289  ;;  %v270_v21 = vpop.permute.xlu0 %269 }
  0xa4   : > { %v277_v24 = vmul.f32 %v275_v16, %v270_v21  ;;  %v297_v30 = vmul.f32 %v295_v26, %v290_v20  ;;  %v298_v38 = vadd.f32 %v296_v34, %v282_v29 }
  0xa6   : > { %v283_v27 = vadd.f32 %v281_v22, %v277_v24 }
  0xa8   : > { %v306_v31 = vpop.permute.xlu1 %305  ;;  %v302_v32 = vpop.permute.xlu0 %301  ;;  %v299_v35 = vadd.f32 %v297_v30, %v283_v27 }
  0xa9   : > { %v313_v36 = vmul.f32 %v311_v28, %v306_v31  ;;  %v312_v37 = vmul.f32 %v311_v28, %v302_v32 }
  0xab   : > { %v315_v41 = vadd.f32 %v313_v36, %v299_v35  ;;  %v314_v42 = vadd.f32 %v312_v37, %v298_v38 }
  0xad   : > { %v318_v39 = vpop.permute.xlu1 %317  ;;  %v322_v40 = vpop.permute.xlu0 %321 }
  0xae   : > { %v328_v43 = vmul.f32 %v327_v33, %v318_v39  ;;  %v329_v44 = vmul.f32 %v327_v33, %v322_v40 }
  0xb0   : > { %v330_v45 = vadd.f32 %v328_v43, %v314_v42  ;;  %v331_v46 = vadd.f32 %v329_v44, %v315_v41 }
  0xb2   : > { %v332_v47 = vmul.f32 %v330_v45, %v330_v45  ;;  %v333_v48 = vmul.f32 %v331_v46, %v331_v46 }
  0xb4   : > { %v335_v49 = vsel %vm334_vm2, %v332_v47, 0.0  ;;  %v338_v50 = vsel %vm334_vm2, %v333_v48, 0.0 }
  0xb5   : > { %336 = vadd.xlane.f32.xlu1 %v335_v49  ;;  %339 = vadd.xlane.f32.xlu0 %v338_v50  ;;  %v7263_v50 = vmov -1.0  }
 0x142   : > { %v337_v51 = vpop.xlane.xlu1 %336  ;;  %v340_v52 = vpop.xlane.xlu0 %339 }
 0x143   : > { %v342_v53 = vmul.f32 0.03125, %v337_v51  ;;  %v343_v54 = vmul.f32 0.03125, %v340_v52 }
 0x145   : > { %v344_v55 = vadd.f32 1e-05, %v342_v53  ;;  %v345_v56 = vadd.f32 1e-05, %v343_v54 }
 0x147   : > { %7055 = vrsqrt.f32 %v344_v55 }
 0x148   : > { %7057 = vrsqrt.f32 %v345_v56 }
 0x151   : > { %v7056_v59 = vpop.eup %7055 }
 0x152   : > { %v7058_v60 = vpop.eup %7057  ;;  %v348_v61 = vmul.f32 %v7056_v59, %v330_v45 }
 0x153   : > { %v349_v62 = vmul.f32 %v7058_v60, %v331_v46 }
 0x154   : > { %v354_v63 = vmul.f32 %v353_v58, %v348_v61 }
 0x155   : > { %v355_v2 = vmul.f32 %v353_v58, %v349_v62 }
 0x156   : > { %v358_v3 = vmul.f32 0.70710677, %v354_v63  ;;  %v356_v56 = vmul.f32 0.5, %v354_v63  ;;  %v463_v63 = vld [vmem:[%s8782_s2] sm:$0xff] }
 0x157   : > { %v359_v4 = vmul.f32 0.70710677, %v355_v2  ;;  %v357_v59 = vmul.f32 0.5, %v355_v2  ;;  %v464_v2 = vld [vmem:[%s8782_s2 + $0x8] sm:$0xff] }
 0x158   : > { %v364_v5 = vand.u32 2147483647, %v358_v3  ;;  %vm360_vm3 = vcmp.ge.f32.partialorder %v358_v3, 0.0 }
 0x159   : > { %v365_v6 = vand.u32 2147483647, %v359_v4  ;;  %vm361_vm4 = vcmp.ge.f32.partialorder %v359_v4, 0.0  ;;  %v362_v51 = vsel %vm360_vm3, 1.0, %v7263_v50 }
 0x15a   : > { %v366_v7 = vmul.f32 0.3275911, %v364_v5  ;;  %v392_v16 = vsub.f32 0.0, %v364_v5  ;;  %v363_v54 = vsel %vm361_vm4, 1.0, %v7263_v50  ;;  %vm2023_vm4 = vcmask 516096  }
 0x15b   : > { %v367_v10 = vmul.f32 0.3275911, %v365_v6  ;;  %v393_v20 = vsub.f32 0.0, %v365_v6 }
 0x15c   : > { %v368_v14 = vadd.f32 1.0, %v366_v7  ;;  %v394_v13 = vmul.f32 %v392_v16, %v364_v5  ;;  %v465_v7 = vld [vmem:[%s8782_s2 + $0x10] sm:$0xff] }
 0x15d   : > { %v369_v15 = vadd.f32 1.0, %v367_v10  ;;  %v395_v24 = vmul.f32 %v393_v20, %v365_v6  ;;  %v474_v10 = vand.u32 4294901760, %v463_v63  ;;  %v480_v16 = vand.u32 4294901760, %v465_v7 }
 0x15e   : > { %7059 = vrcp.f32 %v368_v14  ;;  %v396_v28 = vmul.f32 1.442695, %v394_v13  ;;  %v477_v14 = vand.u32 4294901760, %v464_v2 }
 0x15f   : > { %7061 = vrcp.f32 %v369_v15  ;;  %v398_v31 = vmul.f32 1.442695, %v395_v24  ;;  %v466_v15 = vld [vmem:[%s8782_s2 + $0x18] sm:$0xff] }
 0x160   : > { %7063 = vpow2.f32 %v396_v28  ;;  %v483_v20 = vand.u32 4294901760, %v466_v15 }
 0x161   : > { %7065 = vpow2.f32 %v398_v31 }
 0x162   : > { %v7428_v13 = vpack.c.bf16 %v483_v20, %v480_v16 }
 0x168   : > { %v7060_v21 = vpop.eup %7059 }
 0x169   : > { %v7062_v22 = vpop.eup %7061  ;;  %v374_v23 = vmul.f32 1.0614054, %v7060_v21 }
 0x16a   : > { %v375_v26 = vmul.f32 1.0614054, %v7062_v22  ;;  %v7064_v44 = vpop.eup %7063 }
 0x16b   : > { %v376_v27 = vadd.f32 -1.4531521, %v374_v23  ;;  %v7066_v46 = vpop.eup %7065  ;;  %v571_v23 = vsub.f32 %v464_v2, %v477_v14 }
 0x16c   : > { %v377_v29 = vadd.f32 -1.4531521, %v375_v26 }
 0x16d   : > { %v378_v30 = vmul.f32 %v7060_v21, %v376_v27  ;;  %v572_v26 = vand.u32 4294901760, %v571_v23 }
 0x16e   : > { %v379_v32 = vmul.f32 %v7062_v22, %v377_v29  ;;  %v578_v29 = vsub.f32 %v465_v7, %v480_v16 }
 0x16f   : > { %v380_v33 = vadd.f32 1.4214138, %v378_v30  ;;  %v573_v28 = vsub.f32 %v571_v23, %v572_v26  ;;  %v585_v30 = vsub.f32 %v466_v15, %v483_v20  ;;  %v1072_v20 = vld [vmem:[%s8783_s3] sm:$0xff] }
 0x170   : > { %v381_v34 = vadd.f32 1.4214138, %v379_v32 }
 0x171   : > { %v382_v35 = vmul.f32 %v7060_v21, %v380_v33  ;;  %v574_v32 = vand.u32 4294901760, %v573_v28  ;;  %v579_v33 = vand.u32 4294901760, %v578_v29  ;;  %v1077_v28 = vld [vmem:[%s8783_s3 + $0x28] sm:$0xff] }
 0x172   : > { %v383_v36 = vmul.f32 %v7062_v22, %v381_v34  ;;  %v586_v34 = vand.u32 4294901760, %v585_v30 }
 0x173   : > { %v384_v37 = vadd.f32 -0.28449672, %v382_v35 }
 0x174   : > { %v385_v38 = vadd.f32 -0.28449672, %v383_v36  ;;  %v580_v36 = vsub.f32 %v578_v29, %v579_v33 }
 0x175   : > { %v386_v39 = vmul.f32 %v7060_v21, %v384_v37  ;;  %v587_v37 = vsub.f32 %v585_v30, %v586_v34 }
 0x176   : > { %v387_v40 = vmul.f32 %v7062_v22, %v385_v38  ;;  %v581_v38 = vand.u32 4294901760, %v580_v36 }
 0x177   : > { %v388_v41 = vadd.f32 0.2548296, %v386_v39  ;;  %v588_v39 = vand.u32 4294901760, %v587_v37 }
 0x178   : > { %v389_v42 = vadd.f32 0.2548296, %v387_v40 }
 0x179   : > { %v390_v43 = vmul.f32 %v7060_v21, %v388_v41  ;;  %v7426_v21 = vpack.c.bf16 %v477_v14, %v474_v10  ;;  %v6399_v40 = vpack.c.bf16 %v588_v39, %v581_v38 }
 0x17a   : > { %v391_v45 = vmul.f32 %v7062_v22, %v389_v42  ;;  %v564_v22 = vsub.f32 %v463_v63, %v474_v10  ;;  %v6407_v42 = vpack.c.bf16 %v585_v30, %v578_v29 }
 0x17b   : > { %v400_v47 = vmul.f32 %v7064_v44, %v390_v43  ;;  %6388 = vmatprep.subr.bf16.mxu0 %v7426_v21  ;;  %v6423_v44 = vpack.c.bf16 %v586_v34, %v579_v33  ;;  %v1078_v34 = vld [vmem:[%s8783_s3 + $0x30] sm:$0xff] }
 0x17c   : > { %v401_v48 = vmul.f32 %v7066_v46, %v391_v45  ;;  %6390 = vmatpush3.bf16.msra.mxu0 %v7426_v21  ;;  %v565_v24 = vand.u32 4294901760, %v564_v22  ;;  %v6403_v41 = vpack.c.bf16 %v571_v23, %v564_v22  ;;  %v1074_v23 = vld [vmem:[%s8783_s3 + $0x10] sm:$0xff]  ;;  %v1106_v37 = vand.u32 4294901760, %v1078_v34 }
 0x17d   : > { %v402_v49 = vsub.f32 1.0, %v400_v47  ;;  %6392 = vmatprep.subr.bf16.mxu0 %v7428_v13 }
 0x17e   : > { %v403_v52 = vsub.f32 1.0, %v401_v48  ;;  %v566_v27 = vsub.f32 %v564_v22, %v565_v24  ;;  %v6419_v43 = vpack.c.bf16 %v572_v26, %v565_v24  ;;  %v1073_v22 = vld [vmem:[%s8783_s3 + $0x8] sm:$0xff]  ;;  %v1088_v24 = vand.u32 4294901760, %v1072_v20  ;;  %v1075_v26 = vld [vmem:[%s8783_s3 + $0x18] sm:$0xff] }
 0x17f   : > { %v404_v53 = vmul.f32 %v402_v49, %v362_v51  ;;  %v251_v51 = vld [vmem:[%s8781_s1 + $0x8] sm:$0x3]  ;;  %v1097_v29 = vand.u32 4294901760, %v1075_v26 }
 0x180   : > { %v405_v55 = vmul.f32 %v403_v52, %v363_v54  ;;  %6394 = vmatpush3.bf16.msra.mxu0 %v7428_v13  ;;  %v567_v31 = vand.u32 4294901760, %v566_v27  ;;  %v460_v52 = vrot.slane %v251_v51, %v7383_v17  ;;  %v1076_v27 = vld [vmem:[%s8783_s3 + $0x20] sm:$0xff] }
 0x181   : > { %v406_v58 = vadd.f32 1.0, %v404_v53 }
 0x182   : > { %v407_v60 = vadd.f32 1.0, %v405_v55  ;;  %v6395_v35 = vpack.c.bf16 %v574_v32, %v567_v31  ;;  %v1100_v31 = vand.u32 4294901760, %v1076_v27  ;;  %v1103_v32 = vand.u32 4294901760, %v1077_v28 }
 0x183   : > { %v7404_v61 = vmul.f32 %v406_v58, %v356_v56 }
 0x184   : > { %v7406_v62 = vmul.f32 %v407_v60, %v357_v59  ;;  %6396 = vmatprep.subr.bf16.mxu0 %v6395_v35  ;;  %v7481_v36 = vpack.c.bf16 %v1103_v32, %v1100_v31 }
 0x185   : > { %8872 = vst [vmem:[#allocation9_spill] sm:$0xff] %v7404_v61  ;;  %v441_v3 = vmul.f32 %v7404_v61, %v7404_v61 }
 0x186   : > { %8873 = vst [vmem:[#allocation10_spill] sm:$0xff] %v7406_v62  ;;  %v442_v4 = vmul.f32 %v7406_v62, %v7406_v62 }
 0x187   : > { %v443_v5 = vsel %vm334_vm2, %v441_v3, 0.0 }
 0x188   : > { %444 = vadd.xlane.f32.xlu1 %v443_v5  ;;  %v446_v6 = vsel %vm334_vm2, %v442_v4, 0.0 }
 0x189   : > { %447 = vadd.xlane.f32.xlu0 %v446_v6 }
 0x215   : > { %v445_v45 = vpop.xlane.xlu1 %444 }
 0x216   : > { %v449_v46 = vmul.f32 0.03125, %v445_v45  ;;  %v448_v47 = vpop.xlane.xlu0 %447 }
 0x217   : > { %v450_v48 = vmul.f32 0.03125, %v448_v47  ;;  %v1203_v47 = vsub.f32 %v1075_v26, %v1097_v29 }
 0x218   : > { %v451_v49 = vadd.f32 1e-05, %v449_v46 }
 0x219   : > { %v452_v50 = vadd.f32 1e-05, %v450_v48  ;;  %v1204_v51 = vand.u32 4294901760, %v1203_v47 }
 0x21a   : > { %7067 = vrsqrt.f32 %v451_v49 }
 0x21b   : > { %7069 = vrsqrt.f32 %v452_v50 }
 0x224   : > { %v7068_v53 = vpop.eup %7067 }
 0x225   : > { %v7070_v54 = vpop.eup %7069  ;;  %v455_v55 = vmul.f32 %v7068_v53, %v7404_v61 }
 0x226   : > { %v456_v56 = vmul.f32 %v7070_v54, %v7406_v62  ;;  %v1205_v54 = vsub.f32 %v1203_v47, %v1204_v51 }
 0x227   : > { %v461_v58 = vmul.f32 %v460_v52, %v455_v55  ;;  %v1210_v55 = vsub.f32 %v1076_v27, %v1100_v31 }
 0x228   : > { %v462_v59 = vmul.f32 %v460_v52, %v456_v56  ;;  %v1217_v56 = vsub.f32 %v1077_v28, %v1103_v32 }
 0x229   : > { %v468_v60 = vsel %vm334_vm2, %v461_v58, 0 }
 0x22a   : > { %v542_v3 = vand.u32 4294901760, %v468_v60  ;;  %v471_v4 = vsel %vm334_vm2, %v462_v59, 0  ;;  %v1206_v59 = vand.u32 4294901760, %v1205_v54  ;;  %v7503_v27 = vpack.c.bf16 %v1217_v56, %v1210_v55 }
 0x22b   : > { %v552_v5 = vand.u32 4294901760, %v471_v4 }
 0x22c   : > { %v543_v6 = vsub.f32 %v468_v60, %v542_v3  ;;  %v1211_v60 = vand.u32 4294901760, %v1210_v55 }
 0x22d   : > { %v553_v63 = vsub.f32 %v471_v4, %v552_v5 }
 0x22e   : > { %v544_v2 = vand.u32 4294901760, %v543_v6 }
 0x22f   : > { %v554_v7 = vand.u32 4294901760, %v553_v63 }
 0x230   : > { %v545_v10 = vsub.f32 %v543_v6, %v544_v2 }
 0x231   : > { %v555_v14 = vsub.f32 %v553_v63, %v554_v7 }
 0x232   : > { %v546_v15 = vand.u32 4294901760, %v545_v10 }
 0x233   : > { %v556_v16 = vand.u32 4294901760, %v555_v14 }
 0x234   : > { %5807 = vmatprep.mubr.f32.mxu0 %v546_v15 }
 0x235   : > { %5808 = vmatmul.mubr.f32.vlgmr.msra.gmra.mrb[0].mxu0 %v556_v16 }
 0x236   : > { %6398 = vmatpush3.bf16.msra.mxu0 %v6395_v35  ;;  %5818 = vmatprep.mubr.f32.mxu0 %v542_v3  ;;  %v1079_v35 = vld [vmem:[%s8783_s3 + $0x38] sm:$0xff] }
 0x237   : > { %6400 = vmatprep.subr.bf16.mxu0 %v6399_v40  ;;  %v1109_v38 = vand.u32 4294901760, %v1079_v35 }
 0x239   : > { %v7485_v39 = vpack.c.bf16 %v1109_v38, %v1106_v37 }
 0x23a   : > { %6402 = vmatpush3.bf16.msra.mxu0 %v6399_v40  ;;  %v1182_v40 = vsub.f32 %v1072_v20, %v1088_v24 }
 0x23b   : > { %6404 = vmatprep.subr.bf16.mxu0 %v6403_v41 }
 0x23d   : > { %5819 = vmatmul.mubr.f32.vlgmr.msra.gmra.mrb[0].mxu0 %v552_v5 }
 0x23e   : > { %6406 = vmatpush3.bf16.msra.mxu0 %v6403_v41  ;;  %5829 = vmatprep.mubr.f32.mxu0 %v543_v6  ;;  %v1224_v6 = vsub.f32 %v1078_v34, %v1106_v37  ;;  %v7521_v37 = vld [vmem:[%s8785_s5 + $0x8] sm:$0x7f] }
 0x23f   : > { %6408 = vmatprep.subr.bf16.mxu0 %v6407_v42 }
 0x240   : > { %v1225_v10 = vand.u32 4294901760, %v1224_v6 }
 0x242   : > { %6410 = vmatpush3.bf16.msra.mxu0 %v6407_v42  ;;  %v1183_v42 = vand.u32 4294901760, %v1182_v40  ;;  %v1226_v16 = vsub.f32 %v1224_v6, %v1225_v10 }
 0x243   : > { %6412 = vmatprep.subr.bf16.mxu0 %v7426_v21 }
 0x245   : > { %5830 = vmatmul.mubr.f32.vlgmr.msra.gmra.mrb[0].mxu0 %v553_v63  ;;  %v1231_v63 = vsub.f32 %v1079_v35, %v1109_v38  ;;  %v7516_v35 = vsub.s32 3, %v7373_v11  ;;  %v7524_v38 = vadd.s32 8, %v7373_v11 }
 0x246   : > { %6414 = vmatpush3.bf16.msra.mxu0 %v7426_v21  ;;  %5840 = vmatprep.mubr.f32.mxu0 %v544_v2 }
 0x247   : > { %6416 = vmatprep.subr.bf16.mxu0 %v7428_v13  ;;  %v1232_v14 = vand.u32 4294901760, %v1231_v63  ;;  %v7505_v28 = vpack.c.bf16 %v1231_v63, %v1224_v6  ;;  %8874 = vst [vmem:[#allocation11_spill] sm:$0xff] %v7516_v35  ;;  %8875 = vst [vmem:[#allocation12_spill] sm:$0xff] %v7524_v38  ;;  %vm418_vm9 = vcmp.ge.s32.totalorder %v7524_v38, 9  ;;  %vm426_vm11 = vcmp.ge.s32.totalorder %v7524_v38, 10 }
 0x248   : > { %vm434_vm12 = vcmp.ge.s32.totalorder %v7524_v38, 11 }
 0x249   : > { %v1233_v20 = vsub.f32 %v1231_v63, %v1232_v14  ;;  %v7513_v34 = vpack.c.bf16 %v1232_v14, %v1225_v10 }
 0x24a   : > { %6418 = vmatpush3.bf16.msra.mxu0 %v7428_v13 }
 0x24b   : > { %6420 = vmatprep.subr.bf16.mxu0 %v6419_v43 }
 0x24d   : > { %5841 = vmatmul.mubr.f32.vlgmr.msra.gmra.mrb[0].mxu0 %v554_v7 }
 0x24e   : > { %6422 = vmatpush3.bf16.msra.mxu0 %v6419_v43  ;;  %5851 = vmatprep.mubr.f32.mxu0 %v542_v3 }
 0x24f   : > { %6424 = vmatprep.subr.bf16.mxu0 %v6423_v44 }
 0x252   : > { %6426 = vmatpush3.bf16.msra.mxu0 %v6423_v44  ;;  %v1184_v44 = vsub.f32 %v1182_v40, %v1183_v42 }
 0x253   : > { %6428 = vmatprep.subr.bf16.mxu0 %v7426_v21 }
 0x254   : > { %v1185_v48 = vand.u32 4294901760, %v1184_v44 }
 0x255   : > { %5852 = vmatmul.mubr.f32.vlgmr.msra.gmra.mrb[0].mxu0 %v552_v5 }
 0x256   : > { %6430 = vmatpush3.bf16.msra.mxu0 %v7426_v21  ;;  %5862 = vmatprep.mubr.f32.mxu0 %v542_v3  ;;  %v1091_v21 = vand.u32 4294901760, %v1073_v22  ;;  %v1218_v3 = vand.u32 4294901760, %v1217_v56 }
 0x257   : > { %6432 = vmatprep.subr.bf16.mxu0 %v7428_v13 }
 0x258   : > { %v7468_v30 = vpack.c.bf16 %v1091_v21, %v1088_v24  ;;  %v1189_v41 = vsub.f32 %v1073_v22, %v1091_v21  ;;  %v1219_v2 = vsub.f32 %v1217_v56, %v1218_v3  ;;  %v1234_v24 = vand.u32 4294901760, %v1233_v20 }
 0x259   : > { %v7511_v32 = vpack.c.bf16 %v1218_v3, %v1211_v60  ;;  %v1053_v56 = vrot.slane %v7521_v37, %v7383_v17 }
 0x25a   : > { %6434 = vmatpush3.bf16.msra.mxu0 %v7428_v13  ;;  %v1094_v13 = vand.u32 4294901760, %v1074_v23  ;;  %6436 = vmatprep.subr.bf16.mxu1 %v7468_v30  ;;  %v1190_v43 = vand.u32 4294901760, %v1189_v41  ;;  %v1220_v15 = vand.u32 4294901760, %v1219_v2  ;;  %v7499_v26 = vpack.c.bf16 %v1189_v41, %v1182_v40 }
 0x25b   : > { %6438 = vmatpush3.bf16.msra.mxu1 %v7468_v30  ;;  %v1004_v40 = vrot.slane %v7521_v37, %v7516_v35 }
 0x25c   : > { %v7470_v33 = vpack.c.bf16 %v1097_v29, %v1094_v13  ;;  %v1191_v45 = vsub.f32 %v1189_v41, %v1190_v43  ;;  %v1196_v46 = vsub.f32 %v1074_v23, %v1094_v13  ;;  %v1227_v23 = vand.u32 4294901760, %v1226_v16 }
 0x25d   : > { %5863 = vmatmul.mubr.f32.vlgmr.msra.gmra.mrb[0].mxu0 %v552_v5  ;;  %v1212_v5 = vsub.f32 %v1210_v55, %v1211_v60  ;;  %v7507_v29 = vpack.c.bf16 %v1190_v43, %v1183_v42  ;;  %v7529_v41 = vsub.s32 2, %v7373_v11  ;;  %v1010_v42 = vrot.slane %v7521_v37, %v7376_v12 }
 0x25e   : > { %6440 = vmatprep.subr.bf16.mxu1 %v7470_v33  ;;  %v1192_v49 = vand.u32 4294901760, %v1191_v45  ;;  %v1197_v50 = vand.u32 4294901760, %v1196_v46  ;;  %v7497_v21 = vpack.c.bf16 %v1234_v24, %v1227_v23  ;;  %v7501_v13 = vpack.c.bf16 %v1203_v47, %v1196_v46 }
 0x25f   : > { %6442 = vmatpush3.bf16.msra.mxu1 %v7470_v33  ;;  %v1213_v7 = vand.u32 4294901760, %v1212_v5  ;;  %8876 = vst [vmem:[#allocation13_spill] sm:$0xff] %v7529_v41 }
 0x260   : > { %6444 = vmatprep.subr.bf16.mxu1 %v7481_v36  ;;  %v7490_v52 = vpack.c.bf16 %v1192_v49, %v1185_v48  ;;  %v1198_v53 = vsub.f32 %v1196_v46, %v1197_v50  ;;  %v7509_v31 = vpack.c.bf16 %v1204_v51, %v1197_v50  ;;  %v1023_v48 = vrot.slane %v7521_v37, %v7529_v41 }
 0x261   : > { %v7495_v22 = vpack.c.bf16 %v1220_v15, %v1213_v7 }
 0x262   : > { %v1199_v58 = vand.u32 4294901760, %v1198_v53  ;;  %v1038_v53 = vrot.slane %v7521_v37, %v7401_v57 }
 0x263   : > { %6446 = vmatpush3.bf16.msra.mxu1 %v7481_v36 }
 0x264   : > { %6448 = vmatprep.subr.bf16.mxu1 %v7485_v39  ;;  %v7493_v4 = vpack.c.bf16 %v1206_v59, %v1199_v58 }
 0x267   : > { %6450 = vmatpush3.bf16.msra.mxu1 %v7485_v39 }
 0x268   : > { %6452 = vmatprep.subr.bf16.mxu1 %v7490_v52 }
 0x330   : > { %v7537_v43 = vpop.f32.mrb[0].mxu0 }
 0x331   : > { %v1006_v44 = vmul.f32 %v7537_v43, %v1004_v40  ;;  %v1014_v45 = vrot.slane %v7537_v43, 7  ;;  %v1029_v46 = vrot.slane %v7537_v43, 6  ;;  %v7546_v47 = vpop.f32.mrb[1].mxu0  ;;  %v1044_v54 = vrot.slane %v7537_v43, 5 }
 0x332   : > { %v1005_v49 = vmul.f32 %v1004_v40, %v7546_v47  ;;  %v1013_v50 = vrot.slane %v7546_v47, 7  ;;  %v1028_v51 = vrot.slane %v7546_v47, 6  ;;  %v1043_v55 = vrot.slane %v7546_v47, 5 }
 0x333   : > { %v1012_v58 = vadd.f32 %v1010_v42, %v1006_v44 }
 0x334   : > { %v1011_v59 = vadd.f32 %v1010_v42, %v1005_v49  ;;  %v1016_v60 = vsel %vm1015_vm6, %v1013_v50, %v1014_v45  ;;  %v1017_v3 = vsel %vm1015_vm6, %v1014_v45, %v1013_v50  ;;  %v1031_v63 = vsel %vm1030_vm7, %v1028_v51, %v1029_v46 }
 0x335   : > { %v1018_v5 = vsel %vm413_vm5, %v1017_v3, 0.0  ;;  %v1019_v6 = vsel %vm418_vm9, %v1016_v60, 0.0  ;;  %v1032_v2 = vsel %vm1030_vm7, %v1029_v46, %v1028_v51  ;;  %v1034_v15 = vsel %vm426_vm11, %v1031_v63, 0.0 }
 0x336   : > { %v1024_v7 = vmul.f32 %v1023_v48, %v1018_v5  ;;  %v1025_v10 = vmul.f32 %v1023_v48, %v1019_v6  ;;  %v1033_v14 = vsel %vm423_vm10, %v1032_v2, 0.0  ;;  %v1040_v16 = vmul.f32 %v1038_v53, %v1034_v15 }
 0x337   : > { %v1046_v20 = vsel %vm1045_vm8, %v1043_v55, %v1044_v54  ;;  %v1047_v23 = vsel %vm1045_vm8, %v1044_v54, %v1043_v55  ;;  %v1039_v44 = vmul.f32 %v1038_v53, %v1033_v14 }
 0x338   : > { %v1026_v24 = vadd.f32 %v1024_v7, %v1011_v59  ;;  %v1027_v40 = vadd.f32 %v1025_v10, %v1012_v58  ;;  %v1049_v42 = vsel %vm434_vm12, %v1046_v20, 0.0  ;;  %v1048_v45 = vsel %vm431_vm13, %v1047_v23, 0.0 }
 0x339   : > { %v1054_v48 = vmul.f32 %v1053_v56, %v1048_v45  ;;  %v1055_v50 = vmul.f32 %v1053_v56, %v1049_v42  ;;  %v5455_v45 = vmul.f32 -1.442695, %v7537_v43 }
 0x33a   : > { %v1041_v46 = vadd.f32 %v1039_v44, %v1026_v24  ;;  %v1042_v49 = vadd.f32 %v1040_v16, %v1027_v40 }
 0x33c   : > { %v1056_v51 = vadd.f32 %v1054_v48, %v1041_v46  ;;  %v1057_v60 = vadd.f32 %v1055_v50, %v1042_v49  ;;  %v5454_v46 = vmul.f32 -1.442695, %v7546_v47  ;;  %v8810_v48 = vmov 6  }
 0x33d   : > { %v1670_v49 = vrot.slane %v7521_v37, %v7386_v18  ;;  %v8802_v50 = vmov 15  }
 0x33e   : > { %v5452_v3 = vmul.f32 -1.442695, %v1056_v51  ;;  %v5453_v5 = vmul.f32 -1.442695, %v1057_v60 }
 0x340   : > { %7071 = vpow2.f32 %v5452_v3 }
 0x341   : > { %7073 = vpow2.f32 %v5453_v5 }
 0x34a   : > { %v7072_v54 = vpop.eup %7071 }
 0x34b   : > { %v7074_v55 = vpop.eup %7073  ;;  %v1064_v58 = vadd.f32 1.0, %v7072_v54 }
 0x34c   : > { %v1065_v59 = vadd.f32 1.0, %v7074_v55 }
 0x34d   : > { %7075 = vrcp.f32 %v1064_v58 }
 0x34e   : > { %7077 = vrcp.f32 %v1065_v59 }
 0x34f   : > { %7079 = vpow2.f32 %v5455_v45 }
 0x350   : > { %7081 = vpow2.f32 %v5454_v46 }
 0x357   : > { %v7076_v53 = vpop.eup %7075 }
 0x358   : > { %v7078_v6 = vpop.eup %7077  ;;  %v7584_v63 = vmul.f32 %v7076_v53, %v1056_v51 }
 0x359   : > { %v7586_v2 = vmul.f32 %v7078_v6, %v1057_v60  ;;  %v7080_v37 = vpop.eup %7079 }
 0x35a   : > { %v1082_v56 = vsel %vm1080_vm14, %v7584_v63, 0  ;;  %v7082_v3 = vpop.eup %7081  ;;  %v2267_v5 = vadd.f32 1.0, %v7080_v37 }
 0x35b   : > { %v1160_v7 = vand.u32 4294901760, %v1082_v56  ;;  %v1085_v10 = vsel %vm1080_vm14, %v7586_v2, 0  ;;  %v2266_v55 = vadd.f32 1.0, %v7082_v3 }
 0x35c   : > { %v1170_v14 = vand.u32 4294901760, %v1085_v10  ;;  %7083 = vrcp.f32 %v2267_v5  ;;  %v2284_v5 = vld [vmem:[%s8784_s4] sm:$0xff] }
 0x35d   : > { %v1161_v15 = vsub.f32 %v1082_v56, %v1160_v7  ;;  %7085 = vrcp.f32 %v2266_v55  ;;  %v2286_v55 = vld [vmem:[%s8784_s4 + $0x10] sm:$0xff] }
 0x35e   : > { %v1171_v16 = vsub.f32 %v1085_v10, %v1170_v14 }
 0x35f   : > { %v1162_v20 = vand.u32 4294901760, %v1161_v15 }
 0x360   : > { %v1172_v23 = vand.u32 4294901760, %v1171_v16 }
 0x361   : > { %v1163_v24 = vsub.f32 %v1161_v15, %v1162_v20 }
 0x362   : > { %v1173_v40 = vsub.f32 %v1171_v16, %v1172_v23 }
 0x363   : > { %v1164_v42 = vand.u32 4294901760, %v1163_v24 }
 0x364   : > { %v1174_v44 = vand.u32 4294901760, %v1173_v40 }
 0x365   : > { %5881 = vmatprep.mubr.f32.mxu1 %v1164_v42 }
 0x366   : > { %5882 = vmatmul.mubr.f32.vlgmr.msra.gmra.mrb[0].mxu1 %v1174_v44  ;;  %v7084_v56 = vpop.eup %7083 }
 0x367   : > { %6454 = vmatpush3.bf16.msra.mxu1 %v7490_v52  ;;  %5900 = vmatprep.mubr.f32.mxu1 %v1160_v7  ;;  %v7086_v10 = vpop.eup %7085 }
 0x368   : > { %6456 = vmatprep.subr.bf16.mxu1 %v7493_v4 }
 0x36b   : > { %6458 = vmatpush3.bf16.msra.mxu1 %v7493_v4 }
 0x36c   : > { %6460 = vmatprep.subr.bf16.mxu1 %v7495_v22 }
 0x36f   : > { %6462 = vmatpush3.bf16.msra.mxu1 %v7495_v22  ;;  %v8790_v22 = vmov 5  }
 0x370   : > { %6464 = vmatprep.subr.bf16.mxu1 %v7497_v21 }
 0x373   : > { %6466 = vmatpush3.bf16.msra.mxu1 %v7497_v21  ;;  %v8812_v21 = vmov 8  }
 0x374   : > { %6468 = vmatprep.subr.bf16.mxu1 %v7499_v26 }
 0x376   : > { %5901 = vmatmul.mubr.f32.vlgmr.msra.gmra.mrb[0].mxu1 %v1170_v14 }
 0x377   : > { %6470 = vmatpush3.bf16.msra.mxu1 %v7499_v26  ;;  %5919 = vmatprep.mubr.f32.mxu1 %v1161_v15  ;;  %v8814_v26 = vmov 13   ;;  %v2273_v15 = vmul.f32 %v7084_v56, %v7537_v43  ;;  %v2288_v56 = vld [vmem:[%s8784_s4 + $0x20] sm:$0xff] }
 0x378   : > { %6472 = vmatprep.subr.bf16.mxu1 %v7501_v13 }
 0x37b   : > { %6474 = vmatpush3.bf16.msra.mxu1 %v7501_v13  ;;  %v8788_v13 = vmov 14  }
 0x37c   : > { %6476 = vmatprep.subr.bf16.mxu1 %v7503_v27 }
 0x37f   : > { %6478 = vmatpush3.bf16.msra.mxu1 %v7503_v27  ;;  %v8804_v27 = vmov 9  }
 0x380   : > { %6480 = vmatprep.subr.bf16.mxu1 %v7505_v28 }
 0x383   : > { %6482 = vmatpush3.bf16.msra.mxu1 %v7505_v28  ;;  %v8806_v28 = vmov 7  }
 0x384   : > { %6484 = vmatprep.subr.bf16.mxu1 %v7468_v30 }
 0x386   : > { %5920 = vmatmul.mubr.f32.vlgmr.msra.gmra.mrb[0].mxu1 %v1171_v16  ;;  %v2272_v16 = vmul.f32 %v7086_v10, %v7546_v47 }
 0x387   : > { %6486 = vmatpush3.bf16.msra.mxu1 %v7468_v30  ;;  %5938 = vmatprep.mubr.f32.mxu1 %v1162_v20 }
 0x388   : > { %6488 = vmatprep.subr.bf16.mxu1 %v7470_v33 }
 0x38b   : > { %6490 = vmatpush3.bf16.msra.mxu1 %v7470_v33 }
 0x38c   : > { %6492 = vmatprep.subr.bf16.mxu1 %v7481_v36 }
 0x38f   : > { %6494 = vmatpush3.bf16.msra.mxu1 %v7481_v36 }
 0x390   : > { %6496 = vmatprep.subr.bf16.mxu1 %v7485_v39 }
 0x393   : > { %6498 = vmatpush3.bf16.msra.mxu1 %v7485_v39 }
 0x394   : > { %6500 = vmatprep.subr.bf16.mxu1 %v7507_v29 }
 0x396   : > { %5939 = vmatmul.mubr.f32.vlgmr.msra.gmra.mrb[0].mxu1 %v1172_v23 }
 0x397   : > { %6502 = vmatpush3.bf16.msra.mxu1 %v7507_v29  ;;  %5957 = vmatprep.mubr.f32.mxu1 %v1160_v7 }
 0x398   : > { %6504 = vmatprep.subr.bf16.mxu1 %v7509_v31 }
 0x39b   : > { %6506 = vmatpush3.bf16.msra.mxu1 %v7509_v31  ;;  %v8796_v31 = vmov 11  }
 0x39c   : > { %6508 = vmatprep.subr.bf16.mxu1 %v7511_v32 }
 0x39f   : > { %6510 = vmatpush3.bf16.msra.mxu1 %v7511_v32  ;;  %v8794_v32 = vmov 4  }
 0x3a0   : > { %6512 = vmatprep.subr.bf16.mxu1 %v7513_v34 }
 0x3a3   : > { %6514 = vmatpush3.bf16.msra.mxu1 %v7513_v34  ;;  %v8792_v34 = vmov 12  }
 0x3a4   : > { %6516 = vmatprep.subr.bf16.mxu1 %v7468_v30 }
 0x3a6   : > { %5958 = vmatmul.mubr.f32.vlgmr.msra.gmra.mrb[0].mxu1 %v1170_v14 }
 0x3a7   : > { %6518 = vmatpush3.bf16.msra.mxu1 %v7468_v30  ;;  %5976 = vmatprep.mubr.f32.mxu1 %v1160_v7 }
 0x3a8   : > { %6520 = vmatprep.subr.bf16.mxu1 %v7470_v33 }
 0x3ab   : > { %6522 = vmatpush3.bf16.msra.mxu1 %v7470_v33 }
 0x3ac   : > { %6524 = vmatprep.subr.bf16.mxu1 %v7481_v36 }
 0x3af   : > { %6526 = vmatpush3.bf16.msra.mxu1 %v7481_v36  ;;  %v8798_v36 = vmov 10  }
 0x3b0   : > { %6528 = vmatprep.subr.bf16.mxu1 %v7485_v39 }
 0x3b3   : > { %6530 = vmatpush3.bf16.msra.mxu1 %v7485_v39 }
 0x3b6   : > { %5977 = vmatmul.mubr.f32.vlgmr.msra.gmra.mrb[0].mxu1 %v1170_v14 }
 0x489   : > { %v7631_v52 = vpop.f32.mrb[0].mxu1 }
 0x48a   : > { %1713 = vrot.lane.b32.xlu0 %v7631_v52, %s7264_s14  ;;  %v7635_v30 = vpop.f32.mrb[1].mxu1  ;;  %v7685_v58 = vadd.f32 %v7631_v52, %v1670_v49 }
 0x48b   : > { %1711 = vrot.lane.b32.xlu1 %v7635_v30, %s7264_s14  ;;  %v7673_v51 = vadd.f32 %v1670_v49, %v7635_v30 }
 0x48c   : > { %v1680_v53 = vand.u32 2147483647, %v7685_v58  ;;  %v1674_v10 = vmax.f32 %v7685_v58, 0.0  ;;  %vm1676_vm3 = vcmp.ne.f32.partialorder %v7685_v58, %v7685_v58 }
 0x48d   : > { %v1679_v60 = vand.u32 2147483647, %v7673_v51  ;;  %vm1675_vm0 = vcmp.ne.f32.partialorder %v7673_v51, %v7673_v51 }
 0x48e   : > { %v1682_v6 = vsub.f32 0.0, %v1680_v53  ;;  %v2287_v53 = vld [vmem:[%s8784_s4 + $0x18] sm:$0xff] }
 0x48f   : > { %v1681_v54 = vsub.f32 0.0, %v1679_v60 }
 0x490   : > { %v1685_v7 = vmul.f32 1.442695, %v1682_v6  ;;  %v2305_v6 = vand.u32 4294901760, %v2286_v55 }
 0x491   : > { %v1683_v59 = vmul.f32 1.442695, %v1681_v54  ;;  %v2285_v54 = vld [vmem:[%s8784_s4 + $0x8] sm:$0xff] }
 0x493   : > { %7087 = vpow2.f32 %v1683_v59  ;;  %v2299_v59 = vand.u32 4294901760, %v2284_v5 }
 0x494   : > { %7089 = vpow2.f32 %v1685_v7  ;;  %v2289_v7 = vld [vmem:[%s8784_s4 + $0x28] sm:$0xff] }
 0x49d   : > { %v7088_v14 = vpop.eup %7087 }
 0x49e   : > { %v1687_v20 = vadd.f32 1.0, %v7088_v14  ;;  %v7090_v23 = vpop.eup %7089  ;;  %v1690_v40 = vmul.f32 -0.5, %v7088_v14  ;;  %v1693_v52 = vand.u32 2147483647, %v7088_v14 }
 0x49f   : > { %v1696_v24 = vadd.f32 1.0, %v7090_v23  ;;  %v1699_v43 = vmul.f32 -0.5, %v7090_v23  ;;  %v1702_v46 = vand.u32 2147483647, %v7090_v23 }
 0x4a0   : > { %7091 = vlog2.f32 %v1687_v20  ;;  %v1691_v44 = vadd.f32 1.0, %v1690_v40  ;;  %vm1694_vm15 = vcmp.lt.f32.partialorder %v1693_v52, 0.0004427343  ;;  %v7741_v20 = vld [vmem:[%s8785_s5] sm:$0xff]  ;;  %v2314_v40 = vand.u32 4294901760, %v2289_v7 }
 0x4a1   : > { %7093 = vlog2.f32 %v1696_v24  ;;  %v1700_v45 = vadd.f32 1.0, %v1699_v43  ;;  %vm7711_vm1 = vcmp.lt.f32.partialorder %v1702_v46, 0.0004427343  ;;  %v2311_v24 = vand.u32 4294901760, %v2288_v56 }
 0x4a2   : > { %v7751_v52 = vsub.f32 %v2284_v5, %v2299_v59 }
 0x4a3   : > { %v1701_v37 = vmul.f32 %v7090_v23, %v1700_v45  ;;  %v7763_v46 = vpack.c.bf16 %v2314_v40, %v2311_v24 }
 0x4a5   : > { %8881 = vst [vmem:[#allocation16_spill] sm:$0xff] %v7763_v46 }
 0x4aa   : > { %v7092_v42 = vpop.eup %7091 }
 0x4ab   : > { %v1689_v30 = vmul.f32 0.6931472, %v7092_v42  ;;  %v2290_v42 = vld [vmem:[%s8784_s4 + $0x30] sm:$0xff] }
 0x4fc   : > { %v1714_v4 = vpop.permute.xlu0 %1713 }
 0x4fd   : > { %v1712_v33 = vpop.permute.xlu1 %1711 }
 0x4fe   : > { %1717 = vxpose.xlu1.b32.start [1/2] (short) (narrow) %v1712_v33, 16  ;;  %v1692_v33 = vmul.f32 %v7088_v14, %v1691_v44  ;;  %v2291_v44 = vld [vmem:[%s8784_s4 + $0x38] sm:$0xff] }
 0x500   : > { %v1695_v47 = vsel %vm1694_vm15, %v1692_v33, %v1689_v30 }
 0x502   : > { %1718 = vxpose.xlu1.b32.end [2/2] (short) (narrow) %v1714_v4, 16  ;;  %v1673_v4 = vmax.f32 %v7673_v51, 0.0 }
 0x520   : > { %6996 = vset.pattern.permute.xlu1 %v8798_v36 }
 0x57e   : > { %v1733_v39 = vpop.trf.xlu1 }
 0x57f   : > { %1959 = vperm.xlu1 %6996, %v1733_v39   ;;  %1869 = vperm.xlu0 %6991, %v1733_v39  }
 0x582   : > { %v7648_v29 = vpop.trf.xlu1 }
 0x583   : > { %7001 = vset.pattern.permute.xlu1 %v8790_v22  ;;  %6992 = vset.pattern.permute.xlu0 %v8812_v21 }
 0x584   : > { %1914 = vperm.xlu1 %7001, %v1733_v39   ;;  %1941 = vperm.xlu0 %6992, %v1733_v39  }
 0x588   : > { %7002 = vset.pattern.permute.xlu1 %v8814_v26  ;;  %6993 = vset.pattern.permute.xlu0 %v8808_v0 }
 0x589   : > { %1986 = vperm.xlu1 %7002, %v1733_v39   ;;  %1878 = vperm.xlu0 %6993, %v1733_v39  }
 0x58d   : > { %7004 = vset.pattern.permute.xlu1 %v8788_v13  ;;  %6994 = vset.pattern.permute.xlu0 %v8804_v27 }
 0x58e   : > { %1995 = vperm.xlu1 %7004, %v1733_v39   ;;  %1950 = vperm.xlu0 %6994, %v1733_v39  }
 0x592   : > { %7005 = vset.pattern.permute.xlu1 %v8806_v28  ;;  %6995 = vset.pattern.permute.xlu0 %v8800_v8 }
 0x593   : > { %1932 = vperm.xlu1 %7005, %v1733_v39   ;;  %1887 = vperm.xlu0 %6995, %v1733_v39  }
 0x597   : > { %7007 = vset.pattern.permute.xlu1 %v8787_v1  ;;  %6997 = vset.pattern.permute.xlu0 %v8816_v9 }
 0x598   : > { %1896 = vperm.xlu0 %6997, %v1733_v39   ;;  %2012 = vperm.xlu1 %7007, %v7648_v29  }
 0x59c   : > { %6998 = vset.pattern.permute.xlu0 %v8796_v31  ;;  %7008 = vset.pattern.permute.xlu1 %v8808_v0 }
 0x59d   : > { %1968 = vperm.xlu0 %6998, %v1733_v39   ;;  %2028 = vperm.xlu1 %7008, %v7648_v29  }
 0x5a1   : > { %6999 = vset.pattern.permute.xlu0 %v8794_v32  ;;  %7010 = vset.pattern.permute.xlu1 %v8816_v9 }
 0x5a2   : > { %1905 = vperm.xlu0 %6999, %v1733_v39   ;;  %2058 = vperm.xlu1 %7010, %v7648_v29  }
 0x5a6   : > { %7000 = vset.pattern.permute.xlu0 %v8792_v34  ;;  %7011 = vset.pattern.permute.xlu1 %v8794_v32 }
 0x5a7   : > { %1977 = vperm.xlu0 %7000, %v1733_v39   ;;  %2073 = vperm.xlu1 %7011, %v7648_v29  }
 0x5ab   : > { %7003 = vset.pattern.permute.xlu0 %v8810_v48  ;;  %7013 = vset.pattern.permute.xlu1 %v8810_v48 }
 0x5ac   : > { %1923 = vperm.xlu0 %7003, %v1733_v39   ;;  %2103 = vperm.xlu1 %7013, %v7648_v29  }
 0x5b0   : > { %7006 = vset.pattern.permute.xlu0 %v8802_v50  ;;  %7014 = vset.pattern.permute.xlu1 %v8806_v28 }
 0x5b1   : > { %2004 = vperm.xlu0 %7006, %v1733_v39   ;;  %2118 = vperm.xlu1 %7014, %v7648_v29   ;;  %v7094_v39 = vpop.eup %7093 }
 0x5b2   : > { %v1698_v49 = vmul.f32 0.6931472, %v7094_v39  ;;  %v2317_v39 = vand.u32 4294901760, %v2290_v42 }
 0x5b4   : > { %v1704_v14 = vsel %vm7711_vm1, %v1701_v37, %v1698_v49  ;;  %v7768_v37 = vsub.f32 %v2286_v55, %v2305_v6 }
 0x5b5   : > { %7009 = vset.pattern.permute.xlu0 %v8800_v8  ;;  %7016 = vset.pattern.permute.xlu1 %v8804_v27  ;;  %v1706_v43 = vadd.f32 %v1704_v14, %v1674_v10 }
 0x5b6   : > { %2043 = vperm.xlu0 %7009, %v7648_v29   ;;  %2148 = vperm.xlu1 %7016, %v7648_v29  }
 0x5ba   : > { %7012 = vset.pattern.permute.xlu0 %v8790_v22  ;;  %7017 = vset.pattern.permute.xlu1 %v8798_v36 }
 0x5bb   : > { %2088 = vperm.xlu0 %7012, %v7648_v29   ;;  %2163 = vperm.xlu1 %7017, %v7648_v29  }
 0x5bf   : > { %7015 = vset.pattern.permute.xlu0 %v8812_v21  ;;  %7019 = vset.pattern.permute.xlu1 %v8792_v34 }
 0x5c0   : > { %2133 = vperm.xlu0 %7015, %v7648_v29   ;;  %2193 = vperm.xlu1 %7019, %v7648_v29  }
 0x5c4   : > { %7018 = vset.pattern.permute.xlu0 %v8796_v31  ;;  %7020 = vset.pattern.permute.xlu1 %v8814_v26 }
 0x5c5   : > { %2178 = vperm.xlu0 %7018, %v7648_v29   ;;  %2208 = vperm.xlu1 %7020, %v7648_v29  }
 0x5c9   : > { %7021 = vset.pattern.permute.xlu0 %v8788_v13  ;;  %7022 = vset.pattern.permute.xlu1 %v8802_v50 }
 0x5ca   : > { %2223 = vperm.xlu0 %7021, %v7648_v29   ;;  %2238 = vperm.xlu1 %7022, %v7648_v29   ;;  %v1705_v29 = vadd.f32 %v1695_v47, %v1673_v4  ;;  %v8825_v47 = vand.u32 4294901760, %v7751_v52 }
 0x5cc   : > { %v7709_v60 = vsel %vm1675_vm0, %v7673_v51, %v1705_v29  ;;  %v2302_v51 = vand.u32 4294901760, %v2285_v54  ;;  %v2320_v29 = vand.u32 4294901760, %v2291_v44  ;;  %v2395_v49 = vsub.f32 %v7751_v52, %v8825_v47 }
 0x5cd   : > { %v1775_v31 = vrot.slane %v7709_v60, %v7516_v35 }
 0x5ce   : > { %2278 = vrot.lane.b32.xlu0 %v2273_v15, %s7264_s14  ;;  %2276 = vrot.lane.b32.xlu1 %v2272_v16, %s7264_s14  ;;  %v1754_v15 = vrot.slane %v7709_v60, %v7383_v17  ;;  %v2308_v16 = vand.u32 4294901760, %v2287_v53  ;;  %v7743_v23 = vpack.c.bf16 %v2302_v51, %v2299_v59  ;;  %v7755_v33 = vsub.f32 %v2285_v54, %v2302_v51 }
 0x5cf   : > { %7023 = vset.pattern.permute.xlu0 %v8787_v1  ;;  %v7778_v54 = vsel %vm1676_vm3, %v7685_v58, %v1706_v43  ;;  %v1761_v59 = vrot.slane %v7709_v60, %v7401_v57  ;;  %v8823_v51 = vand.u32 4294901760, %v7768_v37  ;;  %v2396_v10 = vand.u32 4294901760, %v2395_v49 }
 0x5d0   : > { %8879 = vst [vmem:[#allocation14_spill] sm:$0xff] %v7743_v23  ;;  %v7753_v30 = vpack.c.bf16 %v2308_v16, %v2305_v6  ;;  %6532 = vmatprep.subr.bf16.mxu0 %v7743_v23  ;;  %v1755_v4 = vmul.f32 %v1754_v15, %v7741_v20  ;;  %v8824_v45 = vand.u32 4294901760, %v7755_v33  ;;  %v7770_v3 = vsub.f32 %v2287_v53, %v2308_v16 }
 0x5d1   : > { %6534 = vmatpush3.bf16.msra.mxu0 %v7743_v23  ;;  %v7785_v53 = vpack.c.bf16 %v2320_v29, %v2317_v39  ;;  %v2409_v58 = vsub.f32 %v7768_v37, %v8823_v51  ;;  %v7794_v16 = vsub.f32 %v2288_v56, %v2311_v24  ;;  %v7796_v43 = vsub.f32 %v2289_v7, %v2314_v40 }
 0x5d2   : > { %8880 = vst [vmem:[#allocation15_spill] sm:$0xff] %v7753_v30  ;;  %6536 = vmatprep.subr.bf16.mxu0 %v7753_v30  ;;  %v2402_v5 = vsub.f32 %v7755_v33, %v8824_v45  ;;  %v8822_v55 = vand.u32 4294901760, %v7770_v3  ;;  %v1756_v6 = vmul.f32 1.442695, %v1755_v4  ;;  %v1762_v22 = vmul.f32 %v1761_v59, %v7741_v20 }
 0x5d3   : > { %8882 = vst [vmem:[#allocation17_spill] sm:$0xff] %v7785_v53  ;;  %v2410_v4 = vand.u32 4294901760, %v2409_v58  ;;  %v8821_v13 = vand.u32 4294901760, %v7794_v16  ;;  %v8820_v49 = vand.u32 4294901760, %v7796_v43  ;;  %v7815_v40 = vsub.f32 %v2290_v42, %v2317_v39 }
 0x5d4   : > { %v2403_v14 = vand.u32 4294901760, %v2402_v5  ;;  %v2416_v15 = vsub.f32 %v7770_v3, %v8822_v55  ;;  %7095 = vpow2.f32 %v1756_v6  ;;  %v1810_v5 = vrot.slane %v7778_v54, %v7383_v17 }
 0x5d5   : > { %6538 = vmatpush3.bf16.msra.mxu0 %v7753_v30  ;;  %v2423_v7 = vsub.f32 %v7794_v16, %v8821_v13  ;;  %v2430_v24 = vsub.f32 %v7796_v43, %v8820_v49  ;;  %v1768_v59 = vrot.slane %v7709_v60, %v7529_v41  ;;  %v7819_v6 = vsub.f32 %v2291_v44, %v2320_v29 }
 0x5d6   : > { %6540 = vmatprep.subr.bf16.mxu0 %v7763_v46  ;;  %v2417_v1 = vand.u32 4294901760, %v2416_v15  ;;  %v7804_v34 = vpack.c.bf16 %v2403_v14, %v2396_v10  ;;  %v7828_v42 = vmul.f32 %v7709_v60, %v7584_v63  ;;  %v1811_v39 = vmul.f32 %v1810_v5, %v7741_v20 }
 0x5d7   : > { %v2424_v10 = vand.u32 4294901760, %v2423_v7  ;;  %v2431_v14 = vand.u32 4294901760, %v2430_v24  ;;  %v8818_v32 = vand.u32 4294901760, %v7819_v6  ;;  %v1817_v50 = vrot.slane %v7778_v54, %v7401_v57 }
 0x5d8   : > { %v7807_v56 = vpack.c.bf16 %v2417_v1, %v2410_v4  ;;  %v8819_v1 = vand.u32 4294901760, %v7815_v40  ;;  %v1763_v4 = vmul.f32 1.442695, %v1762_v22  ;;  %v1769_v22 = vmul.f32 %v1768_v59, %v7741_v20 }
 0x5d9   : > { %6542 = vmatpush3.bf16.msra.mxu0 %v7763_v46  ;;  %v7832_v44 = vpack.c.bf16 %v2431_v14, %v2424_v10  ;;  %v2444_v7 = vsub.f32 %v7819_v6, %v8818_v32  ;;  %v7845_v10 = vpack.c.bf16 %v7755_v33, %v7751_v52  ;;  %v1866_v14 = vrot.slane %v7828_v42, %v7383_v17 }
 0x5da   : > { %6544 = vmatprep.subr.bf16.mxu0 %v7785_v53  ;;  %v2437_v29 = vsub.f32 %v7815_v40, %v8819_v1  ;;  %7097 = vpow2.f32 %v1763_v4  ;;  %v1812_v36 = vmul.f32 1.442695, %v1811_v39  ;;  %v7855_v4 = vpack.c.bf16 %v7770_v3, %v7768_v37 }
 0x5db   : > { %v2445_v5 = vand.u32 4294901760, %v2444_v7  ;;  %v1770_v7 = vmul.f32 1.442695, %v1769_v22  ;;  %v1776_v0 = vmul.f32 %v1775_v31, %v7741_v20  ;;  %v1818_v39 = vmul.f32 %v1817_v50, %v7741_v20 }
 0x5dc   : > { %v2438_v24 = vand.u32 4294901760, %v2437_v29  ;;  %7099 = vpow2.f32 %v1812_v36  ;;  %v7863_v21 = vpack.c.bf16 %v7796_v43, %v7794_v16  ;;  %v1876_v22 = vrot.slane %v7828_v42, %v7401_v57 }
 0x5dd   : > { %6546 = vmatpush3.bf16.msra.mxu0 %v7785_v53  ;;  %7101 = vpow2.f32 %v1770_v7  ;;  %v1777_v31 = vmul.f32 1.442695, %v1776_v0  ;;  %v1782_v36 = vrot.slane %v7709_v60, %v7376_v12  ;;  %v1831_v49 = vrot.slane %v7778_v54, %v7516_v35 }
 0x5de   : > { %6548 = vmatprep.subr.bf16.mxu0 %v7804_v34  ;;  %v7096_v29 = vpop.eup %7095  ;;  %v7857_v27 = vpack.c.bf16 %v2445_v5, %v2438_v24  ;;  %v1819_v24 = vmul.f32 1.442695, %v1818_v39  ;;  %v7875_v5 = vpack.c.bf16 %v7819_v6, %v7815_v40  ;;  %v1789_v39 = vrot.slane %v7709_v60, %v7386_v18 }
 0x5df   : > { %v2008_v48 = vmul.f32 0.0, %v7096_v29  ;;  %7103 = vpow2.f32 %v1777_v31  ;;  %v1783_v0 = vmul.f32 %v1782_v36, %v7741_v20  ;;  %v1832_v38 = vmul.f32 %v1831_v49, %v7741_v20 }
 0x5e0   : > { %7105 = vpow2.f32 %v1819_v24  ;;  %v1790_v45 = vmul.f32 %v1789_v39, %v7741_v20  ;;  %v8884_v30 = vand.u32 4294901760, %v7755_v33  ;;  %v8885_v23 = vand.u32 4294901760, %v7768_v37 }
 0x5e2   : > { %v1791_v39 = vmul.f32 1.442695, %v1790_v45 }
 0x5fe   : > { %v1870_v58 = vpop.permute.xlu0 %1869  ;;  %v7822_v15 = vpop.permute.xlu1 %1959 }
 0x5ff   : > { %v1872_v28 = vmul.f32 %v1870_v58, %v1866_v14  ;;  %v1824_v58 = vrot.slane %v7778_v54, %v7529_v41  ;;  %v7098_v14 = vpop.eup %7097 }
 0x601   : > { %v2009_v32 = vadd.f32 %v2008_v48, %v1872_v28  ;;  %v7879_v28 = vmul.f32 %v7778_v54, %v7586_v2  ;;  %v1825_v29 = vmul.f32 %v1824_v58, %v7741_v20  ;;  %v1885_v58 = vrot.slane %v7828_v42, %v7529_v41 }
 0x603   : > { %v1942_v8 = vpop.permute.xlu0 %1941  ;;  %v7849_v59 = vpop.permute.xlu1 %1914  ;;  %v2025_v48 = vmul.f32 %v7098_v14, %v2009_v32  ;;  %v1826_v13 = vmul.f32 1.442695, %v1825_v29  ;;  %v1796_v29 = vrot.slane %v7709_v60, %v7389_v19 }
 0x604   : > { %v7100_v14 = vpop.eup %7099 }
 0x605   : > { %v7102_v55 = vpop.eup %7101  ;;  %v2130_v47 = vmul.f32 0.0, %v7100_v14  ;;  %7107 = vpow2.f32 %v1826_v13  ;;  %v1838_v13 = vrot.slane %v7778_v54, %v7376_v12 }
 0x606   : > { %v7104_v49 = vpop.eup %7103 }
 0x607   : > { %v1839_v62 = vmul.f32 %v1838_v13, %v7741_v20  ;;  %v1966_v13 = vrot.slane %v7879_v28, %v7516_v35 }
 0x608   : > { %v1879_v26 = vpop.permute.xlu0 %1878  ;;  %v7865_v9 = vpop.permute.xlu1 %1986 }
 0x609   : > { %v1881_v50 = vmul.f32 %v1879_v26, %v1876_v22  ;;  %v1939_v22 = vrot.slane %v7879_v28, %v7383_v17 }
 0x60b   : > { %v2026_v26 = vadd.f32 %v2025_v48, %v1881_v50  ;;  %v1944_v31 = vmul.f32 %v1942_v8, %v1939_v22  ;;  %v1784_v50 = vmul.f32 1.442695, %v1783_v0  ;;  %v1948_v8 = vrot.slane %v7879_v28, %v7401_v57 }
 0x60d   : > { %v1951_v7 = vpop.permute.xlu0 %1950  ;;  %v7882_v1 = vpop.permute.xlu1 %1995  ;;  %v2040_v48 = vmul.f32 %v7102_v55, %v2026_v26  ;;  %v7901_v17 = vadd.f32 %v2130_v47, %v1944_v31  ;;  %7109 = vpow2.f32 %v1784_v50  ;;  %v1803_v47 = vrot.slane %v7709_v60, %v7393_v25 }
 0x60e   : > { %v1953_v22 = vmul.f32 %v1951_v7, %v1948_v8  ;;  %v7106_v31 = vpop.eup %7105  ;;  %7111 = vpow2.f32 %v1791_v39  ;;  %v1912_v39 = vrot.slane %v7828_v42, %v7386_v18 }
 0x60f   : > { %v2145_v57 = vmul.f32 %v7106_v31, %v7901_v17  ;;  %v1804_v8 = vmul.f32 %v1803_v47, %v7741_v20 }
 0x612   : > { %v1888_v51 = vpop.permute.xlu0 %1887  ;;  %v7893_v36 = vpop.permute.xlu1 %1932 }
 0x613   : > { %v1890_v24 = vmul.f32 %v1888_v51, %v1885_v58  ;;  %v1894_v51 = vrot.slane %v7828_v42, %v7516_v35  ;;  %v1833_v58 = vmul.f32 1.442695, %v1832_v38  ;;  %v1845_v38 = vrot.slane %v7778_v54, %v7386_v18 }
 0x615   : > { %v7897_v11 = vadd.f32 %v2040_v48, %v1890_v24  ;;  %v1797_v48 = vmul.f32 %v1796_v29, %v7741_v20  ;;  %7113 = vpow2.f32 %v1833_v58 }
 0x617   : > { %v1897_v0 = vpop.permute.xlu0 %1896  ;;  %v2013_v55 = vpop.permute.xlu1 %2012  ;;  %v2055_v50 = vmul.f32 %v7104_v49, %v7897_v11  ;;  %v1957_v49 = vrot.slane %v7879_v28, %v7529_v41 }
 0x618   : > { %v2015_v14 = vmul.f32 %v2013_v55, %v2009_v32  ;;  %v1899_v24 = vmul.f32 %v1897_v0, %v1894_v51  ;;  %v7918_v32 = vadd.f32 %v2145_v57, %v1953_v22  ;;  %v1798_v55 = vmul.f32 1.442695, %v1797_v48  ;;  %v7108_v22 = vpop.eup %7107 }
 0x619   : > { %v1903_v57 = vrot.slane %v7828_v42, %v7376_v12  ;;  %v7110_v47 = vpop.eup %7109  ;;  %v1852_v48 = vrot.slane %v7778_v54, %v7389_v19 }
 0x61a   : > { %v2016_v45 = vsel %vm1080_vm14, %v2015_v14, 0.0  ;;  %v2056_v51 = vadd.f32 %v2055_v50, %v1899_v24  ;;  %v2160_v31 = vmul.f32 %v7108_v22, %v7918_v32  ;;  %v1805_v50 = vmul.f32 1.442695, %v1804_v8 }
 0x61b   : > { %v2017_v61 = vrot.slane %v2016_v45, 4  ;;  %7115 = vpow2.f32 %v1798_v55 }
 0x61c   : > { %v1969_v60 = vpop.permute.xlu0 %1968  ;;  %v2029_v7 = vpop.permute.xlu1 %2028  ;;  %v2070_v53 = vmul.f32 %v7110_v47, %v2056_v51 }
 0x61d   : > { %v2018_v0 = vadd.f32 %v2017_v61, %v2016_v45  ;;  %v2031_v29 = vmul.f32 %v2029_v7, %v2026_v26  ;;  %v1840_v61 = vmul.f32 1.442695, %v1839_v62  ;;  %v1846_v26 = vmul.f32 %v1845_v38, %v7741_v20 }
 0x61e   : > { %v1962_v45 = vmul.f32 %v7822_v15, %v1957_v49  ;;  %v8883_v38 = vand.u32 4294901760, %v7751_v52  ;;  %v8886_v15 = vand.u32 4294901760, %v7770_v3  ;;  %v7112_v52 = vpop.eup %7111 }
 0x61f   : > { %v2019_v14 = vrot.slane %v2018_v0, 2  ;;  %v2032_v58 = vsel %vm1080_vm14, %v2031_v29, 0.0  ;;  %7117 = vpow2.f32 %v1840_v61 }
 0x620   : > { %v2033_v24 = vrot.slane %v2032_v58, 4  ;;  %v7939_v22 = vpack.c.bf16 %v8884_v30, %v8883_v38  ;;  %v7947_v49 = vadd.f32 %v2160_v31, %v1962_v45  ;;  %7119 = vpow2.f32 %v1805_v50 }
 0x621   : > { %v2020_v7 = vadd.f32 %v2019_v14, %v2018_v0  ;;  %v1906_v41 = vpop.permute.xlu0 %1905  ;;  %v2059_v35 = vpop.permute.xlu1 %2058  ;;  %v7945_v0 = vpack.c.bf16 %v8886_v15, %v8885_v23  ;;  %v1847_v30 = vmul.f32 1.442695, %v1846_v26  ;;  %v1917_v14 = vmul.f32 %v7849_v59, %v1912_v39 }
 0x622   : > { %v2034_v46 = vadd.f32 %v2033_v24, %v2032_v58  ;;  %v1908_v29 = vmul.f32 %v1906_v41, %v1903_v57  ;;  %v2061_v62 = vmul.f32 %v2059_v35, %v2056_v51  ;;  %v7114_v57 = vpop.eup %7113  ;;  %v1971_v58 = vmul.f32 %v1969_v60, %v1966_v13 }
 0x623   : > { %v2021_v8 = vrot.slane %v2020_v7, 1  ;;  %v8887_v24 = vand.u32 4294901760, %v7794_v16  ;;  %v2175_v26 = vmul.f32 %v7114_v57, %v7947_v49  ;;  %v1975_v59 = vrot.slane %v7879_v28, %v7376_v12 }
 0x624   : > { %v2035_v55 = vrot.slane %v2034_v46, 2  ;;  %v2062_v35 = vsel %vm1080_vm14, %v2061_v62, 0.0  ;;  %v2071_v41 = vadd.f32 %v2070_v53, %v1908_v29  ;;  %v8888_v53 = vand.u32 4294901760, %v7796_v43 }
 0x625   : > { %v2022_v51 = vadd.f32 %v2021_v8, %v2020_v7  ;;  %v2063_v33 = vrot.slane %v2062_v35, 4  ;;  %7121 = vpow2.f32 %v1847_v30  ;;  %v1853_v13 = vmul.f32 %v1852_v48, %v7741_v20  ;;  %v7116_v62 = vpop.eup %7115 }
 0x626   : > { %v2036_v37 = vadd.f32 %v2035_v55, %v2034_v46  ;;  %v1978_v61 = vpop.permute.xlu0 %1977  ;;  %v2074_v3 = vpop.permute.xlu1 %2073  ;;  %v2085_v23 = vmul.f32 %v7112_v52, %v2071_v41  ;;  %v7956_v45 = vpack.c.bf16 %v8888_v53, %v8887_v24  ;;  %v7965_v7 = vadd.f32 %v2175_v26, %v1971_v58 }
 0x627   : > { %2024 = vst.msk [vmem:[#allocation2] sm:$0x1] %vm2023_vm4, %v2022_v51  ;;  %v2064_v47 = vadd.f32 %v2063_v33, %v2062_v35  ;;  %v2076_v31 = vmul.f32 %v2074_v3, %v2071_v41  ;;  %v1921_v29 = vrot.slane %v7828_v42, %v7389_v19  ;;  %v1859_v55 = vrot.slane %v7778_v54, %v7393_v25 }
 0x628   : > { %v2037_v50 = vrot.slane %v2036_v37, 1  ;;  %v7961_v46 = vadd.f32 %v2085_v23, %v1917_v14  ;;  %v8889_v35 = vand.u32 4294901760, %v7815_v40  ;;  %v8890_v41 = vand.u32 4294901760, %v7819_v6 }
 0x629   : > { %v2065_v60 = vrot.slane %v2064_v47, 2  ;;  %v2077_v39 = vsel %vm1080_vm14, %v2076_v31, 0.0  ;;  %v1980_v48 = vmul.f32 %v1978_v61, %v1975_v59  ;;  %v7118_v57 = vpop.eup %7117  ;;  %v1930_v14 = vrot.slane %v7828_v42, %v7393_v25 }
 0x62a   : > { %v2038_v16 = vadd.f32 %v2037_v50, %v2036_v37  ;;  %v2078_v43 = vrot.slane %v2077_v39, 4  ;;  %v7975_v52 = vpack.c.bf16 %v8890_v41, %v8889_v35  ;;  %v2100_v30 = vmul.f32 %v7116_v62, %v7961_v46  ;;  %v7120_v6 = vpop.eup %7119 }
 0x62b   : > { %v2066_v38 = vadd.f32 %v2065_v60, %v2064_v47  ;;  %v1924_v8 = vpop.permute.xlu0 %1923  ;;  %v2104_v15 = vpop.permute.xlu1 %2103  ;;  %v1854_v37 = vmul.f32 1.442695, %v1853_v13  ;;  %v2190_v40 = vmul.f32 %v7118_v57, %v7965_v7  ;;  %v1935_v23 = vmul.f32 %v7893_v36, %v1930_v14 }
 0x62c   : > { %2039 = vst.msk [vmem:[#allocation2 + $0x1] sm:$0x1] %vm2023_vm4, %v2038_v16  ;;  %v2079_v51 = vadd.f32 %v2078_v43, %v2077_v39  ;;  %v1926_v33 = vmul.f32 %v1924_v8, %v1921_v29  ;;  %v1860_v61 = vmul.f32 %v1859_v55, %v7741_v20  ;;  %v1984_v36 = vrot.slane %v7879_v28, %v7386_v18 }
 0x62d   : > { %v2067_v58 = vrot.slane %v2066_v38, 1  ;;  %v2191_v59 = vadd.f32 %v2190_v40, %v1980_v48  ;;  %7123 = vpow2.f32 %v1854_v37 }
 0x62e   : > { %v2080_v54 = vrot.slane %v2079_v51, 2  ;;  %v2101_v3 = vadd.f32 %v2100_v30, %v1926_v33  ;;  %v1861_v62 = vmul.f32 1.442695, %v1860_v61  ;;  %v1989_v55 = vmul.f32 %v7865_v9, %v1984_v36 }
 0x62f   : > { %v2068_v47 = vadd.f32 %v2067_v58, %v2066_v38  ;;  %v7122_v13 = vpop.eup %7121 }
 0x630   : > { %v2081_v31 = vadd.f32 %v2080_v54, %v2079_v51  ;;  %v2106_v24 = vmul.f32 %v2104_v15, %v2101_v3  ;;  %v7984_v53 = vpop.permute.xlu0 %2004  ;;  %v2119_v26 = vpop.permute.xlu1 %2118  ;;  %v2115_v50 = vmul.f32 %v7120_v6, %v2101_v3  ;;  %v2205_v29 = vmul.f32 %v7122_v13, %v2191_v59 }
 0x631   : > { %2069 = vst.msk [vmem:[#allocation2 + $0x3] sm:$0x1] %vm2023_vm4, %v2068_v47  ;;  %7125 = vpow2.f32 %v1861_v62 }
 0x632   : > { %v2082_v42 = vrot.slane %v2081_v31, 1  ;;  %v2107_v60 = vsel %vm1080_vm14, %v2106_v24, 0.0  ;;  %v2116_v39 = vadd.f32 %v2115_v50, %v1935_v23  ;;  %v2206_v14 = vadd.f32 %v2205_v29, %v1989_v55 }
 0x633   : > { %v2108_v16 = vrot.slane %v2107_v60, 4 }
 0x634   : > { %v2083_v20 = vadd.f32 %v2082_v42, %v2081_v31  ;;  %v2121_v43 = vmul.f32 %v2119_v26, %v2116_v39 }
 0x635   : > { %v2109_v38 = vadd.f32 %v2108_v16, %v2107_v60  ;;  %v2044_v8 = vpop.permute.xlu0 %2043  ;;  %v2149_v15 = vpop.permute.xlu1 %2148 }
 0x636   : > { %2084 = vst.msk [vmem:[#allocation2 + $0x4] sm:$0x1] %vm2023_vm4, %v2083_v20  ;;  %v2122_v35 = vsel %vm1080_vm14, %v2121_v43, 0.0  ;;  %v2046_v41 = vmul.f32 %v2044_v8, %v7897_v11  ;;  %v2151_v48 = vmul.f32 %v2149_v15, %v7918_v32  ;;  %v1993_v32 = vrot.slane %v7879_v28, %v7389_v19 }
 0x637   : > { %v2110_v51 = vrot.slane %v2109_v38, 2  ;;  %v2123_v33 = vrot.slane %v2122_v35, 4  ;;  %v7124_v6 = vpop.eup %7123 }
 0x638   : > { %v2047_v30 = vsel %vm1080_vm14, %v2046_v41, 0.0  ;;  %v2152_v57 = vsel %vm1080_vm14, %v2151_v48, 0.0  ;;  %v2220_v26 = vmul.f32 %v7124_v6, %v2206_v14  ;;  %v1998_v13 = vmul.f32 %v7882_v1, %v1993_v32 }
 0x639   : > { %v2111_v58 = vadd.f32 %v2110_v51, %v2109_v38  ;;  %v2124_v37 = vadd.f32 %v2123_v33, %v2122_v35  ;;  %v2048_v54 = vrot.slane %v2047_v30, 4  ;;  %v2153_v9 = vrot.slane %v2152_v57, 4 }
 0x63a   : > { %v2089_v3 = vpop.permute.xlu0 %2088  ;;  %v2164_v40 = vpop.permute.xlu1 %2163  ;;  %v2221_v55 = vadd.f32 %v2220_v26, %v1998_v13 }
 0x63b   : > { %v2112_v23 = vrot.slane %v2111_v58, 1  ;;  %v2125_v47 = vrot.slane %v2124_v37, 2  ;;  %v2049_v11 = vadd.f32 %v2048_v54, %v2047_v30  ;;  %v2154_v61 = vadd.f32 %v2153_v9, %v2152_v57  ;;  %v7126_v51 = vpop.eup %7125 }
 0x63c   : > { %v2091_v31 = vmul.f32 %v2089_v3, %v7961_v46  ;;  %v2166_v24 = vmul.f32 %v2164_v40, %v7947_v49 }
 0x63d   : > { %v2113_v50 = vadd.f32 %v2112_v23, %v2111_v58  ;;  %v2126_v42 = vadd.f32 %v2125_v47, %v2124_v37  ;;  %v2050_v60 = vrot.slane %v2049_v11, 2  ;;  %v2155_v39 = vrot.slane %v2154_v61, 2 }
 0x63e   : > { %v2092_v36 = vsel %vm1080_vm14, %v2091_v31, 0.0  ;;  %v2167_v16 = vsel %vm1080_vm14, %v2166_v24, 0.0  ;;  %v2235_v23 = vmul.f32 %v7126_v51, %v2221_v55 }
 0x63f   : > { %2114 = vst.msk [vmem:[#allocation2 + $0x6] sm:$0x1] %vm2023_vm4, %v2113_v50  ;;  %v2127_v20 = vrot.slane %v2126_v42, 1  ;;  %v2051_v43 = vadd.f32 %v2050_v60, %v2049_v11  ;;  %v2156_v29 = vadd.f32 %v2155_v39, %v2154_v61  ;;  %v2093_v62 = vrot.slane %v2092_v36, 4  ;;  %v2134_v46 = vpop.permute.xlu0 %2133  ;;  %v2194_v38 = vpop.permute.xlu1 %2193 }
 0x640   : > { %v2168_v49 = vrot.slane %v2167_v16, 4  ;;  %v2136_v8 = vmul.f32 %v2134_v46, %v7901_v17  ;;  %v2196_v15 = vmul.f32 %v2194_v38, %v2191_v59  ;;  %v2002_v17 = vrot.slane %v7879_v28, %v7393_v25 }
 0x641   : > { %v2128_v35 = vadd.f32 %v2127_v20, %v2126_v42  ;;  %v2052_v41 = vrot.slane %v2051_v43, 1  ;;  %v2157_v1 = vrot.slane %v2156_v29, 1  ;;  %v2094_v48 = vadd.f32 %v2093_v62, %v2092_v36 }
 0x642   : > { %v2169_v33 = vadd.f32 %v2168_v49, %v2167_v16  ;;  %v2137_v30 = vsel %vm1080_vm14, %v2136_v8, 0.0  ;;  %v2197_v57 = vsel %vm1080_vm14, %v2196_v15, 0.0  ;;  %v2007_v31 = vmul.f32 %v7984_v53, %v2002_v17 }
 0x643   : > { %2129 = vst.msk [vmem:[#allocation2 + $0x7] sm:$0x1] %vm2023_vm4, %v2128_v35  ;;  %v2053_v58 = vadd.f32 %v2052_v41, %v2051_v43  ;;  %v2158_v37 = vadd.f32 %v2157_v1, %v2156_v29  ;;  %v2095_v54 = vrot.slane %v2094_v48, 2  ;;  %v2138_v9 = vrot.slane %v2137_v30, 4 }
 0x644   : > { %v2170_v59 = vrot.slane %v2169_v33, 2  ;;  %v2198_v3 = vrot.slane %v2197_v57, 4  ;;  %v2179_v40 = vpop.permute.xlu0 %2178  ;;  %v2209_v6 = vpop.permute.xlu1 %2208  ;;  %v2236_v62 = vadd.f32 %v2235_v23, %v2007_v31 }
 0x645   : > { %2054 = vst.msk [vmem:[#allocation2 + $0x2] sm:$0x1] %vm2023_vm4, %v2053_v58  ;;  %2159 = vst.msk [vmem:[#allocation2 + $0x9] sm:$0x1] %vm2023_vm4, %v2158_v37  ;;  %v2096_v47 = vadd.f32 %v2095_v54, %v2094_v48  ;;  %v2139_v11 = vadd.f32 %v2138_v9, %v2137_v30  ;;  %v2181_v61 = vmul.f32 %v2179_v40, %v7965_v7  ;;  %v7191_v30 = vld [vmem:[%s8785_s5 + $0x8] sm:$0x7f] }
 0x646   : > { %v2211_v32 = vmul.f32 %v2209_v6, %v2206_v14  ;;  %v2171_v24 = vadd.f32 %v2170_v59, %v2169_v33  ;;  %v2199_v26 = vadd.f32 %v2198_v3, %v2197_v57  ;;  %v2255_v57 = vrot.slane %v7191_v30, %v7389_v19 }
 0x647   : > { %v2097_v50 = vrot.slane %v2096_v47, 1  ;;  %v2140_v28 = vrot.slane %v2139_v11, 2  ;;  %v2182_v42 = vsel %vm1080_vm14, %v2181_v61, 0.0 }
 0x648   : > { %v2212_v60 = vsel %vm1080_vm14, %v2211_v32, 0.0  ;;  %v2172_v39 = vrot.slane %v2171_v24, 1  ;;  %v2200_v13 = vrot.slane %v2199_v26, 2  ;;  %v2183_v36 = vrot.slane %v2182_v42, 4 }
 0x649   : > { %v2213_v16 = vrot.slane %v2212_v60, 4  ;;  %v2098_v20 = vadd.f32 %v2097_v50, %v2096_v47  ;;  %v2141_v43 = vadd.f32 %v2140_v28, %v2139_v11  ;;  %v2224_v29 = vpop.permute.xlu0 %2223  ;;  %v2239_v7 = vpop.permute.xlu1 %2238  ;;  %v2256_v6 = vmul.f32 %v2255_v57, %v7584_v63 }
 0x64a   : > { %v2173_v14 = vadd.f32 %v2172_v39, %v2171_v24  ;;  %v2201_v46 = vadd.f32 %v2200_v13, %v2199_v26  ;;  %v2184_v53 = vadd.f32 %v2183_v36, %v2182_v42  ;;  %v2226_v8 = vmul.f32 %v2224_v29, %v2221_v55 }
 0x64b   : > { %v2214_v38 = vadd.f32 %v2213_v16, %v2212_v60  ;;  %2099 = vst.msk [vmem:[#allocation2 + $0x5] sm:$0x1] %vm2023_vm4, %v2098_v20  ;;  %v2142_v49 = vrot.slane %v2141_v43, 1  ;;  %v2241_v15 = vmul.f32 %v2239_v7, %v2236_v62  ;;  %v2257_v62 = vmul.f32 %v2255_v57, %v7586_v2  ;;  %v8891_v2 = vld [vmem:[#allocation14_spill] sm:$0xff] }
 0x64c   : > { %2174 = vst.msk [vmem:[#allocation2 + $0xa] sm:$0x1] %vm2023_vm4, %v2173_v14  ;;  %v2202_v35 = vrot.slane %v2201_v46, 1  ;;  %v2185_v41 = vrot.slane %v2184_v53, 2  ;;  %v2227_v51 = vsel %vm1080_vm14, %v2226_v8, 0.0 }
 0x64d   : > { %v2215_v1 = vrot.slane %v2214_v38, 2  ;;  %v2143_v48 = vadd.f32 %v2142_v49, %v2141_v43  ;;  %v2242_v33 = vsel %vm1080_vm14, %v2241_v15, 0.0  ;;  %v2228_v54 = vrot.slane %v2227_v51, 4  ;;  %v2277_v26 = vpop.permute.xlu1 %2276 }
 0x64e   : > { %v2203_v58 = vadd.f32 %v2202_v35, %v2201_v46  ;;  %v2186_v37 = vadd.f32 %v2185_v41, %v2184_v53  ;;  %v2243_v9 = vrot.slane %v2242_v33, 4  ;;  %v2279_v46 = vpop.permute.xlu0 %2278 }
 0x64f   : > { %v2216_v55 = vadd.f32 %v2215_v1, %v2214_v38  ;;  %2144 = vst.msk [vmem:[#allocation2 + $0x8] sm:$0x1] %vm2023_vm4, %v2143_v48  ;;  %v2229_v3 = vadd.f32 %v2228_v54, %v2227_v51  ;;  %v5458_v48 = vld [vmem:[%s8782_s2 + $0x20] sm:$0xff]  ;;  %v5459_v51 = vld [vmem:[%s8782_s2 + $0x28] sm:$0xff] }
 0x650   : > { %2204 = vst.msk [vmem:[#allocation2 + $0xc] sm:$0x1] %vm2023_vm4, %v2203_v58  ;;  %v2187_v17 = vrot.slane %v2186_v37, 1  ;;  %v2244_v40 = vadd.f32 %v2243_v9, %v2242_v33  ;;  %v5460_v33 = vld [vmem:[%s8782_s2 + $0x30] sm:$0xff]  ;;  %v2917_v30 = vand.u32 4294901760, %v5458_v48  ;;  %v2920_v57 = vand.u32 4294901760, %v5459_v51 }
 0x651   : > { %v2217_v59 = vrot.slane %v2216_v55, 1  ;;  %v2230_v11 = vrot.slane %v2229_v3, 2  ;;  %v5461_v58 = vld [vmem:[%s8782_s2 + $0x38] sm:$0xff] }
 0x652   : > { %v2188_v23 = vadd.f32 %v2187_v17, %v2186_v37  ;;  %v2250_v61 = vld [vmem:[#allocation2] sm:$0xff]  ;;  %v2245_v32 = vrot.slane %v2244_v40, 2  ;;  %v2923_v37 = vand.u32 4294901760, %v5460_v33  ;;  %v8098_v54 = vpack.c.bf16 %v2920_v57, %v2917_v30 }
 0x653   : > { %v2218_v47 = vadd.f32 %v2217_v59, %v2216_v55  ;;  %v2258_v31 = vadd.f32 %v2256_v6, %v2250_v61  ;;  %v2231_v24 = vadd.f32 %v2230_v11, %v2229_v3  ;;  %v2926_v55 = vand.u32 4294901760, %v5461_v58 }
 0x654   : > { %2189 = vst.msk [vmem:[#allocation2 + $0xb] sm:$0x1] %vm2023_vm4, %v2188_v23  ;;  %v2246_v50 = vadd.f32 %v2245_v32, %v2244_v40  ;;  %6628 = vmatprep.subr.bf16.mxu1 %v8098_v54  ;;  %v3007_v17 = vsub.f32 %v5458_v48, %v2917_v30  ;;  %v3014_v59 = vsub.f32 %v5459_v51, %v2920_v57  ;;  %v5464_v51 = vld [vmem:[%s8783_s3 + $0x40] sm:$0xff]  ;;  %v5466_v30 = vld [vmem:[%s8783_s3 + $0x50] sm:$0xff] }
 0x655   : > { %2219 = vst.msk [vmem:[#allocation2 + $0xd] sm:$0x1] %vm2023_vm4, %v2218_v47  ;;  %v2282_v28 = vmul.f32 %v2277_v26, %v2258_v31  ;;  %v2232_v42 = vrot.slane %v2231_v24, 1  ;;  %v8100_v9 = vpack.c.bf16 %v2926_v55, %v2923_v37  ;;  %6630 = vmatpush3.bf16.msra.mxu1 %v8098_v54  ;;  %v3021_v6 = vsub.f32 %v5460_v33, %v2923_v37  ;;  %v5465_v33 = vld [vmem:[%s8783_s3 + $0x48] sm:$0xff]  ;;  %v5467_v37 = vld [vmem:[%s8783_s3 + $0x58] sm:$0xff] }
 0x656   : > { %v2247_v60 = vrot.slane %v2246_v50, 1  ;;  %v3008_v3 = vand.u32 4294901760, %v3007_v17  ;;  %v3015_v40 = vand.u32 4294901760, %v3014_v59  ;;  %v3028_v23 = vsub.f32 %v5461_v58, %v2926_v55 }
 0x657   : > { %v2293_v39 = vsel %vm1080_vm14, %v2282_v28, 0  ;;  %v2233_v13 = vadd.f32 %v2232_v42, %v2231_v24  ;;  %6632 = vmatprep.subr.bf16.mxu1 %v8100_v9  ;;  %v3022_v61 = vand.u32 4294901760, %v3021_v6  ;;  %v6643_v28 = vpack.c.bf16 %v3014_v59, %v3007_v17 }
 0x658   : > { %v2371_v63 = vand.u32 4294901760, %v2293_v39  ;;  %v2248_v36 = vadd.f32 %v2247_v60, %v2246_v50  ;;  %v3009_v47 = vsub.f32 %v3007_v17, %v3008_v3  ;;  %v3016_v11 = vsub.f32 %v3014_v59, %v3015_v40 }
 0x659   : > { %2234 = vst.msk [vmem:[#allocation2 + $0xe] sm:$0x1] %vm2023_vm4, %v2233_v13  ;;  %6634 = vmatpush3.bf16.msra.mxu1 %v8100_v9  ;;  %v3029_v32 = vand.u32 4294901760, %v3028_v23  ;;  %v3023_v26 = vsub.f32 %v3021_v6, %v3022_v61  ;;  %v3528_v57 = vand.u32 4294901760, %v5464_v51  ;;  %v3531_v58 = vand.u32 4294901760, %v5465_v33 }
 0x65a   : > { %v2372_v16 = vsub.f32 %v2293_v39, %v2371_v63  ;;  %2249 = vst.msk [vmem:[#allocation2 + $0xf] sm:$0x1] %vm2023_vm4, %v2248_v36  ;;  %v3010_v31 = vand.u32 4294901760, %v3009_v47  ;;  %v3017_v24 = vand.u32 4294901760, %v3016_v11  ;;  %v6659_v36 = vpack.c.bf16 %v3015_v40, %v3008_v3  ;;  %v5471_v47 = vld [vmem:[%s8783_s3 + $0x78] sm:$0xff] }
 0x65b   : > { %v3030_v50 = vsub.f32 %v3028_v23, %v3029_v32  ;;  %v3024_v60 = vand.u32 4294901760, %v3023_v26  ;;  %v3534_v55 = vand.u32 4294901760, %v5466_v30  ;;  %v3537_v17 = vand.u32 4294901760, %v5467_v37 }
 0x65c   : > { %v2373_v20 = vand.u32 4294901760, %v2372_v16  ;;  %v6635_v42 = vpack.c.bf16 %v3017_v24, %v3010_v31  ;;  %v8140_v59 = vpack.c.bf16 %v3531_v58, %v3528_v57  ;;  %v3622_v24 = vsub.f32 %v5464_v51, %v3528_v57 }
 0x65d   : > { %v3031_v39 = vand.u32 4294901760, %v3030_v50  ;;  %v3629_v26 = vsub.f32 %v5465_v33, %v3531_v58 }
 0x65e   : > { %v2374_v43 = vsub.f32 %v2372_v16, %v2373_v20  ;;  %6636 = vmatprep.subr.bf16.mxu1 %v6635_v42  ;;  %v3623_v50 = vand.u32 4294901760, %v3622_v24 }
 0x65f   : > { %v6639_v13 = vpack.c.bf16 %v3031_v39, %v3024_v60  ;;  %v3643_v60 = vsub.f32 %v5467_v37, %v3537_v17 }
 0x660   : > { %v2375_v29 = vand.u32 4294901760, %v2374_v43  ;;  %v3624_v39 = vsub.f32 %v3622_v24, %v3623_v50 }
 0x661   : > { %v2251_v7 = vld [vmem:[#allocation2 + $0x8] sm:$0xff] }
 0x662   : > { %5995 = vmatprep.mubr.f32.mxu0 %v2375_v29  ;;  %v2259_v14 = vadd.f32 %v2257_v62, %v2251_v7 }
 0x664   : > { %v2283_v53 = vmul.f32 %v2279_v46, %v2259_v14  ;;  %v7192_v46 = vld [vmem:[%s8781_s1 + $0x8] sm:$0x3] }
 0x666   : > { %v2296_v38 = vsel %vm1080_vm14, %v2283_v53, 0  ;;  %v8899_v53 = vld [vmem:[#allocation8_spill] sm:$0xff] }
 0x667   : > { %v2381_v49 = vand.u32 4294901760, %v2296_v38 }
 0x669   : > { %v2382_v8 = vsub.f32 %v2296_v38, %v2381_v49  ;;  %v2902_v38 = vrot.slane %v7192_v46, %v8899_v53 }
 0x66b   : > { %v2383_v15 = vand.u32 4294901760, %v2382_v8 }
 0x66d   : > { %v2384_v35 = vsub.f32 %v2382_v8, %v2383_v15 }
 0x66f   : > { %v2385_v41 = vand.u32 4294901760, %v2384_v35 }
 0x671   : > { %5996 = vmatmul.mubr.f32.vlgmr.msra.gmra.mrb[2].mxu0 %v2385_v41 }
 0x672   : > { %6550 = vmatpush3.bf16.msra.mxu0 %v7804_v34  ;;  %6014 = vmatprep.mubr.f32.mxu0 %v2371_v63  ;;  %v8893_v34 = vld [vmem:[#allocation16_spill] sm:$0xff] }
 0x673   : > { %6552 = vmatprep.subr.bf16.mxu0 %v7807_v56 }
 0x676   : > { %6554 = vmatpush3.bf16.msra.mxu0 %v7807_v56  ;;  %v8894_v56 = vld [vmem:[#allocation17_spill] sm:$0xff] }
 0x677   : > { %6556 = vmatprep.subr.bf16.mxu0 %v7832_v44 }
 0x67a   : > { %6558 = vmatpush3.bf16.msra.mxu0 %v7832_v44  ;;  %v8895_v44 = vld [vmem:[#allocation10_spill] sm:$0xff] }
 0x67b   : > { %6560 = vmatprep.subr.bf16.mxu0 %v7857_v27 }
 0x67e   : > { %6562 = vmatpush3.bf16.msra.mxu0 %v7857_v27  ;;  %v8892_v27 = vld [vmem:[#allocation15_spill] sm:$0xff] }
 0x67f   : > { %6564 = vmatprep.subr.bf16.mxu0 %v7845_v10 }
 0x681   : > { %6015 = vmatmul.mubr.f32.vlgmr.msra.gmra.mrb[2].mxu0 %v2381_v49 }
 0x682   : > { %6566 = vmatpush3.bf16.msra.mxu0 %v7845_v10  ;;  %6033 = vmatprep.mubr.f32.mxu0 %v2372_v16  ;;  %v6663_v16 = vpack.c.bf16 %v3029_v32, %v3022_v61  ;;  %v3549_v32 = vand.u32 4294901760, %v5471_v47 }
 0x683   : > { %6568 = vmatprep.subr.bf16.mxu0 %v7855_v4 }
 0x686   : > { %6570 = vmatpush3.bf16.msra.mxu0 %v7855_v4 }
 0x687   : > { %6572 = vmatprep.subr.bf16.mxu0 %v7863_v21 }
 0x68a   : > { %6574 = vmatpush3.bf16.msra.mxu0 %v7863_v21 }
 0x68b   : > { %6576 = vmatprep.subr.bf16.mxu0 %v7875_v5 }
 0x68e   : > { %6578 = vmatpush3.bf16.msra.mxu0 %v7875_v5  ;;  %v8897_v5 = vld [vmem:[#allocation9_spill] sm:$0xff] }
 0x68f   : > { %6580 = vmatprep.subr.bf16.mxu0 %v8891_v2 }
 0x691   : > { %6034 = vmatmul.mubr.f32.vlgmr.msra.gmra.mrb[2].mxu0 %v2382_v8 }
 0x692   : > { %6582 = vmatpush3.bf16.msra.mxu0 %v8891_v2  ;;  %6052 = vmatprep.mubr.f32.mxu0 %v2373_v20 }
 0x693   : > { %6584 = vmatprep.subr.bf16.mxu0 %v8892_v27 }
 0x696   : > { %6586 = vmatpush3.bf16.msra.mxu0 %v8892_v27 }
 0x697   : > { %6588 = vmatprep.subr.bf16.mxu0 %v8893_v34 }
 0x69a   : > { %6590 = vmatpush3.bf16.msra.mxu0 %v8893_v34 }
 0x69b   : > { %6592 = vmatprep.subr.bf16.mxu0 %v8894_v56 }
 0x69e   : > { %6594 = vmatpush3.bf16.msra.mxu0 %v8894_v56 }
 0x69f   : > { %6596 = vmatprep.subr.bf16.mxu0 %v7939_v22 }
 0x6a1   : > { %6053 = vmatmul.mubr.f32.vlgmr.msra.gmra.mrb[2].mxu0 %v2383_v15 }
 0x6a2   : > { %6598 = vmatpush3.bf16.msra.mxu0 %v7939_v22  ;;  %6071 = vmatprep.mubr.f32.mxu0 %v2371_v63 }
 0x6a3   : > { %6600 = vmatprep.subr.bf16.mxu0 %v7945_v0 }
 0x6a6   : > { %6602 = vmatpush3.bf16.msra.mxu0 %v7945_v0 }
 0x6a7   : > { %6604 = vmatprep.subr.bf16.mxu0 %v7956_v45 }
 0x6aa   : > { %6606 = vmatpush3.bf16.msra.mxu0 %v7956_v45 }
 0x6ab   : > { %6608 = vmatprep.subr.bf16.mxu0 %v7975_v52 }
 0x6ae   : > { %6610 = vmatpush3.bf16.msra.mxu0 %v7975_v52 }
 0x6af   : > { %6612 = vmatprep.subr.bf16.mxu0 %v8891_v2 }
 0x6b1   : > { %6072 = vmatmul.mubr.f32.vlgmr.msra.gmra.mrb[2].mxu0 %v2381_v49 }
 0x6b2   : > { %6614 = vmatpush3.bf16.msra.mxu0 %v8891_v2  ;;  %6090 = vmatprep.mubr.f32.mxu0 %v2371_v63  ;;  %v6647_v63 = vpack.c.bf16 %v3028_v23, %v3021_v6  ;;  %v8142_v6 = vpack.c.bf16 %v3537_v17, %v3534_v55  ;;  %v5470_v23 = vld [vmem:[%s8783_s3 + $0x70] sm:$0xff] }
 0x6b3   : > { %6616 = vmatprep.subr.bf16.mxu0 %v8892_v27  ;;  %v3546_v61 = vand.u32 4294901760, %v5470_v23 }
 0x6b5   : > { %v8157_v31 = vpack.c.bf16 %v3549_v32, %v3546_v61 }
 0x6b6   : > { %6618 = vmatpush3.bf16.msra.mxu0 %v8892_v27 }
 0x6b7   : > { %6620 = vmatprep.subr.bf16.mxu0 %v8893_v34 }
 0x6ba   : > { %6622 = vmatpush3.bf16.msra.mxu0 %v8893_v34 }
 0x6bb   : > { %6624 = vmatprep.subr.bf16.mxu0 %v8894_v56 }
 0x6be   : > { %6626 = vmatpush3.bf16.msra.mxu0 %v8894_v56 }
 0x6bf   : > { %6676 = vmatprep.subr.bf16.mxu0 %v8140_v59 }
 0x6c1   : > { %6091 = vmatmul.mubr.f32.vlgmr.msra.gmra.mrb[2].mxu0 %v2381_v49 }
 0x6c2   : > { %6678 = vmatpush3.bf16.msra.mxu0 %v8140_v59 }
 0x6c3   : > { %6680 = vmatprep.subr.bf16.mxu0 %v8142_v6 }
 0x6c6   : > { %6682 = vmatpush3.bf16.msra.mxu0 %v8142_v6 }
 0x794   : > { %v6092_v21 = vpop.f32.mrb[2].mxu0 }
 0x795   : > { %v8075_v10 = vadd.f32 %v6092_v21, %v8895_v44  ;;  %v2868_v4 = vpop.f32.mrb[3].mxu0 }
 0x796   : > { %v8078_v22 = vadd.f32 %v2868_v4, %v8897_v5 }
 0x797   : > { %8896 = vst [vmem:[#allocation14_spill] sm:$0xff] %v8075_v10  ;;  %v2884_v0 = vmul.f32 %v8075_v10, %v8075_v10 }
 0x798   : > { %8898 = vst [vmem:[#allocation15_spill] sm:$0xff] %v8078_v22  ;;  %v2883_v45 = vmul.f32 %v8078_v22, %v8078_v22 }
 0x799   : > { %v2888_v52 = vsel %vm334_vm2, %v2884_v0, 0.0 }
 0x79a   : > { %2889 = vadd.xlane.f32.xlu0 %v2888_v52  ;;  %v2885_v1 = vsel %vm334_vm2, %v2883_v45, 0.0 }
 0x79b   : > { %2886 = vadd.xlane.f32.xlu1 %v2885_v1 }
 0x827   : > { %v2890_v20 = vpop.xlane.xlu0 %2889 }
 0x828   : > { %v2892_v43 = vmul.f32 0.03125, %v2890_v20  ;;  %v2887_v29 = vpop.xlane.xlu1 %2886 }
 0x829   : > { %v2891_v62 = vmul.f32 0.03125, %v2887_v29 }
 0x82a   : > { %v2894_v7 = vadd.f32 1e-05, %v2892_v43 }
 0x82b   : > { %v2893_v14 = vadd.f32 1e-05, %v2891_v62 }
 0x82c   : > { %7127 = vrsqrt.f32 %v2894_v7 }
 0x82d   : > { %7129 = vrsqrt.f32 %v2893_v14 }
 0x836   : > { %v7128_v49 = vpop.eup %7127 }
 0x837   : > { %v7130_v8 = vpop.eup %7129  ;;  %v2898_v15 = vmul.f32 %v7128_v49, %v8075_v10 }
 0x838   : > { %v2897_v35 = vmul.f32 %v7130_v8, %v8078_v22 }
 0x839   : > { %v2904_v41 = vmul.f32 %v2902_v38, %v2898_v15 }
 0x83a   : > { %v2903_v2 = vmul.f32 %v2902_v38, %v2897_v35  ;;  %v3664_v35 = vsub.f32 %v5470_v23, %v3546_v61 }
 0x83b   : > { %v2914_v27 = vsel %vm334_vm2, %v2904_v41, 0  ;;  %v3671_v41 = vsub.f32 %v5471_v47, %v3549_v32 }
 0x83c   : > { %v2911_v34 = vsel %vm334_vm2, %v2903_v2, 0  ;;  %v2995_v56 = vand.u32 4294901760, %v2914_v27 }
 0x83d   : > { %v2985_v21 = vand.u32 4294901760, %v2911_v34 }
 0x83e   : > { %v2996_v44 = vsub.f32 %v2914_v27, %v2995_v56 }
 0x83f   : > { %v2986_v4 = vsub.f32 %v2911_v34, %v2985_v21  ;;  %v3665_v34 = vand.u32 4294901760, %v3664_v35 }
 0x840   : > { %v2997_v5 = vand.u32 4294901760, %v2996_v44 }
 0x841   : > { %v2987_v0 = vand.u32 4294901760, %v2986_v4 }
 0x842   : > { %v2998_v45 = vsub.f32 %v2996_v44, %v2997_v5 }
 0x843   : > { %v2988_v52 = vsub.f32 %v2986_v4, %v2987_v0 }
 0x844   : > { %v2999_v48 = vand.u32 4294901760, %v2998_v45 }
 0x845   : > { %v2989_v1 = vand.u32 4294901760, %v2988_v52 }
 0x847   : > { %6101 = vmatprep.mubr.f32.mxu1 %v2989_v1  ;;  %v8169_v1 = vpack.c.bf16 %v3629_v26, %v3622_v24 }
 0x848   : > { %6102 = vmatmul.mubr.f32.vlgmr.msra.gmra.mrb[2].mxu1 %v2999_v48 }
 0x849   : > { %6638 = vmatpush3.bf16.msra.mxu1 %v6635_v42  ;;  %6112 = vmatprep.mubr.f32.mxu1 %v2985_v21  ;;  %v3636_v42 = vsub.f32 %v5466_v30, %v3534_v55  ;;  %v8177_v30 = vpack.c.bf16 %v3671_v41, %v3664_v35 }
 0x84a   : > { %6640 = vmatprep.subr.bf16.mxu1 %v6639_v13 }
 0x84b   : > { %v8173_v51 = vpack.c.bf16 %v3643_v60, %v3636_v42 }
 0x84d   : > { %6642 = vmatpush3.bf16.msra.mxu1 %v6639_v13 }
 0x84e   : > { %6644 = vmatprep.subr.bf16.mxu1 %v6643_v28 }
 0x850   : > { %6113 = vmatmul.mubr.f32.vlgmr.msra.gmra.mrb[2].mxu1 %v2995_v56 }
 0x851   : > { %6646 = vmatpush3.bf16.msra.mxu1 %v6643_v28  ;;  %6123 = vmatprep.mubr.f32.mxu1 %v2986_v4  ;;  %v3630_v28 = vand.u32 4294901760, %v3629_v26  ;;  %v3666_v4 = vsub.f32 %v3664_v35, %v3665_v34 }
 0x852   : > { %6648 = vmatprep.subr.bf16.mxu1 %v6647_v63 }
 0x853   : > { %v3631_v13 = vsub.f32 %v3629_v26, %v3630_v28  ;;  %v3667_v45 = vand.u32 4294901760, %v3666_v4  ;;  %v8179_v57 = vpack.c.bf16 %v3630_v28, %v3623_v50  ;;  %v8901_v50 = vld [vmem:[#allocation13_spill] sm:$0xff] }
 0x855   : > { %6650 = vmatpush3.bf16.msra.mxu1 %v6647_v63  ;;  %v3637_v63 = vand.u32 4294901760, %v3636_v42  ;;  %v3632_v20 = vand.u32 4294901760, %v3631_v13 }
 0x856   : > { %6652 = vmatprep.subr.bf16.mxu1 %v8098_v54 }
 0x857   : > { %v3638_v43 = vsub.f32 %v3636_v42, %v3637_v63 }
 0x858   : > { %6124 = vmatmul.mubr.f32.vlgmr.msra.gmra.mrb[2].mxu1 %v2996_v44 }
 0x859   : > { %6654 = vmatpush3.bf16.msra.mxu1 %v8098_v54  ;;  %6134 = vmatprep.mubr.f32.mxu1 %v2987_v0  ;;  %v3639_v46 = vand.u32 4294901760, %v3638_v43 }
 0x85a   : > { %6656 = vmatprep.subr.bf16.mxu1 %v8100_v9 }
 0x85d   : > { %6658 = vmatpush3.bf16.msra.mxu1 %v8100_v9 }
 0x85e   : > { %6660 = vmatprep.subr.bf16.mxu1 %v6659_v36 }
 0x860   : > { %6135 = vmatmul.mubr.f32.vlgmr.msra.gmra.mrb[2].mxu1 %v2997_v5 }
 0x861   : > { %6662 = vmatpush3.bf16.msra.mxu1 %v6659_v36  ;;  %6145 = vmatprep.mubr.f32.mxu1 %v2985_v21  ;;  %v3644_v36 = vand.u32 4294901760, %v3643_v60 }
 0x862   : > { %6664 = vmatprep.subr.bf16.mxu1 %v6663_v16 }
 0x863   : > { %v3645_v29 = vsub.f32 %v3643_v60, %v3644_v36  ;;  %v8181_v58 = vpack.c.bf16 %v3644_v36, %v3637_v63  ;;  %v8902_v63 = vld [vmem:[#allocation7_spill] sm:$0xff] }
 0x865   : > { %6666 = vmatpush3.bf16.msra.mxu1 %v6663_v16  ;;  %v3625_v16 = vand.u32 4294901760, %v3624_v39  ;;  %v3646_v38 = vand.u32 4294901760, %v3645_v29 }
 0x866   : > { %6668 = vmatprep.subr.bf16.mxu1 %v8098_v54 }
 0x867   : > { %v8162_v14 = vpack.c.bf16 %v3632_v20, %v3625_v16  ;;  %v8165_v15 = vpack.c.bf16 %v3646_v38, %v3639_v46 }
 0x868   : > { %6146 = vmatmul.mubr.f32.vlgmr.msra.gmra.mrb[2].mxu1 %v2995_v56 }
 0x869   : > { %6670 = vmatpush3.bf16.msra.mxu1 %v8098_v54  ;;  %6156 = vmatprep.mubr.f32.mxu1 %v2985_v21  ;;  %v5468_v54 = vld [vmem:[%s8783_s3 + $0x60] sm:$0xff] }
 0x86a   : > { %6672 = vmatprep.subr.bf16.mxu1 %v8100_v9  ;;  %v3540_v3 = vand.u32 4294901760, %v5468_v54 }
 0x86c   : > { %v3650_v62 = vsub.f32 %v5468_v54, %v3540_v3  ;;  %v8190_v54 = vld [vmem:[%s8785_s5 + $0x18] sm:$0x7f] }
 0x86d   : > { %6674 = vmatpush3.bf16.msra.mxu1 %v8100_v9  ;;  %v5469_v9 = vld [vmem:[%s8783_s3 + $0x68] sm:$0xff]  ;;  %v3465_v28 = vrot.slane %v8190_v54, %v8901_v50  ;;  %v3479_v39 = vrot.slane %v8190_v54, %v8899_v53  ;;  %v3493_v36 = vrot.slane %v8190_v54, %v8902_v63 }
 0x86e   : > { %v3543_v40 = vand.u32 4294901760, %v5469_v9  ;;  %v3651_v49 = vand.u32 4294901760, %v3650_v62 }
 0x870   : > { %6157 = vmatmul.mubr.f32.vlgmr.msra.gmra.mrb[2].mxu1 %v2995_v56  ;;  %v8153_v11 = vpack.c.bf16 %v3543_v40, %v3540_v3  ;;  %v3657_v7 = vsub.f32 %v5469_v9, %v3543_v40  ;;  %v3652_v2 = vsub.f32 %v3650_v62, %v3651_v49  ;;  %v3672_v56 = vand.u32 4294901760, %v3671_v41  ;;  %v8900_v9 = vld [vmem:[#allocation11_spill] sm:$0xff] }
 0x871   : > { %v3447_v17 = vrot.slane %v8190_v54, %v8900_v9  ;;  %v3453_v40 = vrot.slane %v8190_v54, %v7376_v12 }
 0x872   : > { %6684 = vmatprep.subr.bf16.mxu0 %v8153_v11  ;;  %v3658_v8 = vand.u32 4294901760, %v3657_v7  ;;  %v3653_v21 = vand.u32 4294901760, %v3652_v2  ;;  %v3673_v5 = vsub.f32 %v3671_v41, %v3672_v56  ;;  %v8175_v33 = vpack.c.bf16 %v3657_v7, %v3650_v62 }
 0x873   : > { %6686 = vmatpush3.bf16.msra.mxu0 %v8153_v11  ;;  %v8185_v55 = vpack.c.bf16 %v3672_v56, %v3665_v34 }
 0x874   : > { %6688 = vmatprep.subr.bf16.mxu0 %v8157_v31  ;;  %v3659_v27 = vsub.f32 %v3657_v7, %v3658_v8  ;;  %v3674_v52 = vand.u32 4294901760, %v3673_v5  ;;  %v8183_v37 = vpack.c.bf16 %v3658_v8, %v3651_v49 }
 0x876   : > { %v3660_v44 = vand.u32 4294901760, %v3659_v27  ;;  %v8171_v48 = vpack.c.bf16 %v3674_v52, %v3667_v45 }
 0x877   : > { %6690 = vmatpush3.bf16.msra.mxu0 %v8157_v31 }
 0x878   : > { %6692 = vmatprep.subr.bf16.mxu0 %v8162_v14  ;;  %v8167_v0 = vpack.c.bf16 %v3660_v44, %v3653_v21 }
 0x943   : > { %v8194_v3 = vpop.f32.mrb[2].mxu1 }
 0x944   : > { %v3449_v23 = vmul.f32 %v8194_v3, %v3447_v17  ;;  %v3457_v47 = vrot.slane %v8194_v3, 7  ;;  %v3471_v61 = vrot.slane %v8194_v3, 6  ;;  %v8201_v32 = vpop.f32.mrb[3].mxu1  ;;  %v3485_v60 = vrot.slane %v8194_v3, 5 }
 0x945   : > { %v3448_v24 = vmul.f32 %v3447_v17, %v8201_v32  ;;  %v3456_v26 = vrot.slane %v8201_v32, 7  ;;  %v3470_v42 = vrot.slane %v8201_v32, 6  ;;  %v3484_v13 = vrot.slane %v8201_v32, 5 }
 0x946   : > { %v3455_v16 = vadd.f32 %v3453_v40, %v3449_v23 }
 0x947   : > { %v3454_v20 = vadd.f32 %v3453_v40, %v3448_v24  ;;  %v3458_v29 = vsel %vm1015_vm6, %v3456_v26, %v3457_v47  ;;  %v3459_v62 = vsel %vm1015_vm6, %v3457_v47, %v3456_v26  ;;  %v3472_v49 = vsel %vm1030_vm7, %v3470_v42, %v3471_v61 }
 0x948   : > { %v3460_v7 = vsel %vm413_vm5, %v3459_v62, 0.0  ;;  %v3461_v38 = vsel %vm418_vm9, %v3458_v29, 0.0  ;;  %v3473_v8 = vsel %vm1030_vm7, %v3471_v61, %v3470_v42  ;;  %v3475_v27 = vsel %vm426_vm11, %v3472_v49, 0.0 }
 0x949   : > { %v3466_v35 = vmul.f32 %v3465_v28, %v3460_v7  ;;  %v3467_v41 = vmul.f32 %v3465_v28, %v3461_v38  ;;  %v3474_v2 = vsel %vm423_vm10, %v3473_v8, 0.0  ;;  %v3481_v56 = vmul.f32 %v3479_v39, %v3475_v27 }
 0x94a   : > { %v3480_v34 = vmul.f32 %v3479_v39, %v3474_v2  ;;  %v3486_v21 = vsel %vm1045_vm8, %v3484_v13, %v3485_v60  ;;  %v3487_v44 = vsel %vm1045_vm8, %v3485_v60, %v3484_v13  ;;  %vm5320_vm8 = vcmask 261127  }
 0x94b   : > { %v3468_v4 = vadd.f32 %v3466_v35, %v3454_v20  ;;  %v3469_v5 = vadd.f32 %v3467_v41, %v3455_v16  ;;  %v3488_v45 = vsel %vm431_vm13, %v3487_v44, 0.0  ;;  %v3489_v52 = vsel %vm434_vm12, %v3486_v21, 0.0 }
 0x94c   : > { %v3494_v23 = vmul.f32 %v3493_v36, %v3488_v45  ;;  %v3495_v47 = vmul.f32 %v3493_v36, %v3489_v52  ;;  %v8916_v21 = vmov 4   ;;  %v5472_v44 = vmul.f32 -1.442695, %v8201_v32 }
 0x94d   : > { %v3482_v17 = vadd.f32 %v3480_v34, %v3468_v4  ;;  %v3483_v40 = vadd.f32 %v3481_v56, %v3469_v5  ;;  %v8915_v56 = vmov 11   ;;  %v8917_v4 = vmov 12  }
 0x94e   : > { %v8918_v5 = vmov 5   ;;  %v5473_v45 = vmul.f32 -1.442695, %v8194_v3  ;;  %v4110_v52 = vrot.slane %v8190_v54, %v7386_v18 }
 0x94f   : > { %v3496_v61 = vadd.f32 %v3494_v23, %v3482_v17  ;;  %v3497_v24 = vadd.f32 %v3495_v47, %v3483_v40  ;;  %v8919_v17 = vmov 14   ;;  %v8920_v47 = vmov 0  }
 0x951   : > { %v5462_v26 = vmul.f32 -1.442695, %v3496_v61  ;;  %v5463_v28 = vmul.f32 -1.442695, %v3497_v24 }
 0x953   : > { %7131 = vpow2.f32 %v5462_v26 }
 0x954   : > { %7133 = vpow2.f32 %v5463_v28 }
 0x95d   : > { %v7132_v42 = vpop.eup %7131 }
 0x95e   : > { %v7134_v60 = vpop.eup %7133  ;;  %v3504_v39 = vadd.f32 1.0, %v7132_v42 }
 0x95f   : > { %v3505_v13 = vadd.f32 1.0, %v7134_v60 }
 0x960   : > { %7135 = vrcp.f32 %v3504_v39 }
 0x961   : > { %7137 = vrcp.f32 %v3505_v13 }
 0x962   : > { %7139 = vpow2.f32 %v5472_v44  ;;  %v5481_v44 = vld [vmem:[%s8784_s4 + $0x78] sm:$0xff] }
 0x963   : > { %7141 = vpow2.f32 %v5473_v45 }
 0x96a   : > { %v7136_v16 = vpop.eup %7135 }
 0x96b   : > { %v7138_v20 = vpop.eup %7137  ;;  %v8238_v43 = vmul.f32 %v7136_v16, %v3496_v61 }
 0x96c   : > { %v8240_v29 = vmul.f32 %v7138_v20, %v3497_v24  ;;  %v7140_v40 = vpop.eup %7139 }
 0x96d   : > { %v3522_v36 = vsel %vm1080_vm14, %v8238_v43, 0  ;;  %v4705_v61 = vadd.f32 1.0, %v7140_v40  ;;  %v7142_v54 = vpop.eup %7141 }
 0x96e   : > { %v3600_v62 = vand.u32 4294901760, %v3522_v36  ;;  %v3525_v7 = vsel %vm1080_vm14, %v8240_v29, 0  ;;  %v4706_v26 = vadd.f32 1.0, %v7142_v54 }
 0x96f   : > { %v3610_v46 = vand.u32 4294901760, %v3525_v7  ;;  %7143 = vrcp.f32 %v4705_v61 }
 0x970   : > { %v3601_v38 = vsub.f32 %v3522_v36, %v3600_v62  ;;  %7145 = vrcp.f32 %v4706_v26 }
 0x971   : > { %v3611_v49 = vsub.f32 %v3525_v7, %v3610_v46 }
 0x972   : > { %v3602_v8 = vand.u32 4294901760, %v3601_v38 }
 0x973   : > { %v3612_v35 = vand.u32 4294901760, %v3611_v49 }
 0x974   : > { %v3603_v41 = vsub.f32 %v3601_v38, %v3602_v8 }
 0x975   : > { %v3613_v2 = vsub.f32 %v3611_v49, %v3612_v35 }
 0x976   : > { %v3604_v27 = vand.u32 4294901760, %v3603_v41 }
 0x977   : > { %v3614_v34 = vand.u32 4294901760, %v3613_v2  ;;  %v5475_v2 = vld [vmem:[%s8784_s4 + $0x48] sm:$0xff] }
 0x978   : > { %6175 = vmatprep.mubr.f32.mxu0 %v3604_v27 }
 0x979   : > { %6176 = vmatmul.mubr.f32.vlgmr.msra.gmra.mrb[4].mxu0 %v3614_v34  ;;  %v7144_v39 = vpop.eup %7143 }
 0x97a   : > { %6694 = vmatpush3.bf16.msra.mxu0 %v8162_v14  ;;  %6194 = vmatprep.mubr.f32.mxu0 %v3600_v62  ;;  %v4711_v16 = vmul.f32 %v7144_v39, %v8201_v32  ;;  %v7146_v20 = vpop.eup %7145 }
 0x97b   : > { %6696 = vmatprep.subr.bf16.mxu0 %v8165_v15 }
 0x97e   : > { %6698 = vmatpush3.bf16.msra.mxu0 %v8165_v15 }
 0x97f   : > { %6700 = vmatprep.subr.bf16.mxu0 %v8167_v0 }
 0x982   : > { %6702 = vmatpush3.bf16.msra.mxu0 %v8167_v0  ;;  %v8905_v0 = vmov 3  }
 0x983   : > { %6704 = vmatprep.subr.bf16.mxu0 %v8171_v48 }
 0x986   : > { %6706 = vmatpush3.bf16.msra.mxu0 %v8171_v48  ;;  %v8908_v48 = vmov 6  }
 0x987   : > { %6708 = vmatprep.subr.bf16.mxu0 %v8169_v1 }
 0x989   : > { %6195 = vmatmul.mubr.f32.vlgmr.msra.gmra.mrb[4].mxu0 %v3610_v46 }
 0x98a   : > { %6710 = vmatpush3.bf16.msra.mxu0 %v8169_v1  ;;  %6213 = vmatprep.mubr.f32.mxu0 %v3601_v38  ;;  %v8906_v1 = vmov 13  }
 0x98b   : > { %6712 = vmatprep.subr.bf16.mxu0 %v8173_v51 }
 0x98e   : > { %6714 = vmatpush3.bf16.msra.mxu0 %v8173_v51  ;;  %v8909_v51 = vmov 1  }
 0x98f   : > { %6716 = vmatprep.subr.bf16.mxu0 %v8175_v33 }
 0x992   : > { %6718 = vmatpush3.bf16.msra.mxu0 %v8175_v33  ;;  %v8910_v33 = vmov 7  }
 0x993   : > { %6720 = vmatprep.subr.bf16.mxu0 %v8177_v30 }
 0x996   : > { %6722 = vmatpush3.bf16.msra.mxu0 %v8177_v30  ;;  %v8911_v30 = vmov 9  }
 0x997   : > { %6724 = vmatprep.subr.bf16.mxu0 %v8140_v59 }
 0x999   : > { %6214 = vmatmul.mubr.f32.vlgmr.msra.gmra.mrb[4].mxu0 %v3611_v49 }
 0x99a   : > { %6726 = vmatpush3.bf16.msra.mxu0 %v8140_v59  ;;  %6232 = vmatprep.mubr.f32.mxu0 %v3602_v8 }
 0x99b   : > { %6728 = vmatprep.subr.bf16.mxu0 %v8142_v6 }
 0x99e   : > { %6730 = vmatpush3.bf16.msra.mxu0 %v8142_v6 }
 0x99f   : > { %6732 = vmatprep.subr.bf16.mxu0 %v8153_v11 }
 0x9a2   : > { %6734 = vmatpush3.bf16.msra.mxu0 %v8153_v11 }
 0x9a3   : > { %6736 = vmatprep.subr.bf16.mxu0 %v8157_v31 }
 0x9a6   : > { %6738 = vmatpush3.bf16.msra.mxu0 %v8157_v31 }
 0x9a7   : > { %6740 = vmatprep.subr.bf16.mxu0 %v8179_v57 }
 0x9a9   : > { %6233 = vmatmul.mubr.f32.vlgmr.msra.gmra.mrb[4].mxu0 %v3612_v35 }
 0x9aa   : > { %6742 = vmatpush3.bf16.msra.mxu0 %v8179_v57  ;;  %6251 = vmatprep.mubr.f32.mxu0 %v3600_v62  ;;  %v8912_v57 = vmov 15  }
 0x9ab   : > { %6744 = vmatprep.subr.bf16.mxu0 %v8181_v58 }
 0x9ae   : > { %6746 = vmatpush3.bf16.msra.mxu0 %v8181_v58  ;;  %v8913_v58 = vmov 2  }
 0x9af   : > { %6748 = vmatprep.subr.bf16.mxu0 %v8183_v37 }
 0x9b2   : > { %6750 = vmatpush3.bf16.msra.mxu0 %v8183_v37 }
 0x9b3   : > { %6752 = vmatprep.subr.bf16.mxu0 %v8185_v55 }
 0x9b6   : > { %6754 = vmatpush3.bf16.msra.mxu0 %v8185_v55  ;;  %v8914_v55 = vmov 10  }
 0x9b7   : > { %6756 = vmatprep.subr.bf16.mxu0 %v8140_v59 }
 0x9b9   : > { %6252 = vmatmul.mubr.f32.vlgmr.msra.gmra.mrb[4].mxu0 %v3610_v46 }
 0x9ba   : > { %6758 = vmatpush3.bf16.msra.mxu0 %v8140_v59  ;;  %6270 = vmatprep.mubr.f32.mxu0 %v3600_v62  ;;  %v4712_v62 = vmul.f32 %v7146_v20, %v8194_v3  ;;  %v5474_v3 = vld [vmem:[%s8784_s4 + $0x40] sm:$0xff] }
 0x9bb   : > { %6760 = vmatprep.subr.bf16.mxu0 %v8142_v6  ;;  %v4739_v34 = vand.u32 4294901760, %v5474_v3 }
 0x9be   : > { %6762 = vmatpush3.bf16.msra.mxu0 %v8142_v6 }
 0x9bf   : > { %6764 = vmatprep.subr.bf16.mxu0 %v8153_v11 }
 0x9c2   : > { %6766 = vmatpush3.bf16.msra.mxu0 %v8153_v11 }
 0x9c3   : > { %6768 = vmatprep.subr.bf16.mxu0 %v8157_v31 }
 0x9c6   : > { %6770 = vmatpush3.bf16.msra.mxu0 %v8157_v31  ;;  %v8907_v31 = vmov 8  }
 0x9c9   : > { %6271 = vmatmul.mubr.f32.vlgmr.msra.gmra.mrb[4].mxu0 %v3610_v46 }
 0xa9c   : > { %v8285_v14 = vpop.f32.mrb[4].mxu0 }
 0xa9d   : > { %4153 = vrot.lane.b32.xlu1 %v8285_v14, %s7264_s14  ;;  %v4097_v59 = vpop.f32.mrb[5].mxu0  ;;  %v8337_v60 = vadd.f32 %v8285_v14, %v4110_v52  ;;  %v4742_v14 = vand.u32 4294901760, %v5475_v2 }
 0xa9e   : > { %4151 = vrot.lane.b32.xlu0 %v4097_v59, %s7264_s14  ;;  %v8323_v23 = vadd.f32 %v4110_v52, %v4097_v59 }
 0xa9f   : > { %v4120_v13 = vand.u32 2147483647, %v8337_v60  ;;  %vm4116_vm7 = vcmp.ne.f32.partialorder %v8337_v60, %v8337_v60 }
 0xaa0   : > { %v4119_v24 = vand.u32 2147483647, %v8323_v23  ;;  %vm4115_vm5 = vcmp.ne.f32.partialorder %v8323_v23, %v8323_v23 }
 0xaa1   : > { %v4122_v36 = vsub.f32 0.0, %v4120_v13 }
 0xaa2   : > { %v4121_v28 = vsub.f32 0.0, %v4119_v24 }
 0xaa3   : > { %v4125_v7 = vmul.f32 1.442695, %v4122_v36 }
 0xaa4   : > { %v4123_v42 = vmul.f32 1.442695, %v4121_v28 }
 0xaa6   : > { %7147 = vpow2.f32 %v4123_v42 }
 0xaa7   : > { %7149 = vpow2.f32 %v4125_v7 }
 0xab0   : > { %v7148_v46 = vpop.eup %7147 }
 0xab1   : > { %v4127_v32 = vadd.f32 1.0, %v7148_v46  ;;  %v7150_v38 = vpop.eup %7149  ;;  %v4130_v49 = vmul.f32 -0.5, %v7148_v46  ;;  %v4133_v27 = vand.u32 2147483647, %v7148_v46 }
 0xab2   : > { %v4136_v8 = vadd.f32 1.0, %v7150_v38  ;;  %v4142_v42 = vand.u32 2147483647, %v7150_v38 }
 0xab3   : > { %7151 = vlog2.f32 %v4127_v32  ;;  %v4131_v41 = vadd.f32 1.0, %v4130_v49  ;;  %vm4134_vm2 = vcmp.lt.f32.partialorder %v4133_v27, 0.0004427343  ;;  %v4114_v32 = vmax.f32 %v8337_v60, 0.0 }
 0xab4   : > { %7153 = vlog2.f32 %v4136_v8  ;;  %vm4143_vm6 = vcmp.lt.f32.partialorder %v4142_v42, 0.0004427343 }
 0xabd   : > { %v7152_v35 = vpop.eup %7151 }
 0xabe   : > { %v4129_v59 = vmul.f32 0.6931472, %v7152_v35 }
 0xb0f   : > { %v4154_v6 = vpop.permute.xlu1 %4153 }
 0xb10   : > { %v4152_v15 = vpop.permute.xlu0 %4151 }
 0xb11   : > { %4157 = vxpose.xlu1.b32.start [1/2] (short) (narrow) %v4152_v15, 16  ;;  %v8360_v15 = vpack.c.bf16 %v4742_v14, %v4739_v34 }
 0xb13   : > { %8921 = vst [vmem:[#allocation16_spill] sm:$0xff] %v8360_v15  ;;  %6772 = vmatprep.subr.bf16.mxu1 %v8360_v15 }
 0xb14   : > { %6774 = vmatpush3.bf16.msra.mxu1 %v8360_v15 }
 0xb15   : > { %4158 = vxpose.xlu1.b32.end [2/2] (short) (narrow) %v4154_v6, 16  ;;  %v4132_v6 = vmul.f32 %v7148_v46, %v4131_v41 }
 0xb33   : > { %7029 = vset.pattern.permute.xlu1 %v8905_v0 }
 0xb91   : > { %v4173_v11 = vpop.trf.xlu1 }
 0xb92   : > { %4336 = vperm.xlu1 %7029, %v4173_v11   ;;  %4309 = vperm.xlu0 %7023, %v4173_v11  }
 0xb95   : > { %v8299_v37 = vpop.trf.xlu1 }
 0xb96   : > { %7034 = vset.pattern.permute.xlu1 %v8906_v1  ;;  %7024 = vset.pattern.permute.xlu0 %v8907_v31 }
 0xb97   : > { %4426 = vperm.xlu1 %7034, %v4173_v11   ;;  %4381 = vperm.xlu0 %7024, %v4173_v11  }
 0xb9b   : > { %7035 = vset.pattern.permute.xlu1 %v8908_v48  ;;  %7025 = vset.pattern.permute.xlu0 %v8909_v51 }
 0xb9c   : > { %4363 = vperm.xlu1 %7035, %v4173_v11   ;;  %4318 = vperm.xlu0 %7025, %v4173_v11  }
 0xba0   : > { %7037 = vset.pattern.permute.xlu1 %v8910_v33  ;;  %7026 = vset.pattern.permute.xlu0 %v8911_v30 }
 0xba1   : > { %4372 = vperm.xlu1 %7037, %v4173_v11   ;;  %4390 = vperm.xlu0 %7026, %v4173_v11  }
 0xba5   : > { %7038 = vset.pattern.permute.xlu1 %v8912_v57  ;;  %7027 = vset.pattern.permute.xlu0 %v8913_v58 }
 0xba6   : > { %4444 = vperm.xlu1 %7038, %v4173_v11   ;;  %4327 = vperm.xlu0 %7027, %v4173_v11  }
 0xbaa   : > { %7040 = vset.pattern.permute.xlu1 %v8909_v51  ;;  %7028 = vset.pattern.permute.xlu0 %v8914_v55  ;;  %v5478_v51 = vld [vmem:[%s8784_s4 + $0x60] sm:$0xff] }
 0xbab   : > { %4399 = vperm.xlu0 %7028, %v4173_v11   ;;  %4467 = vperm.xlu1 %7040, %v8299_v37  }
 0xbaf   : > { %7030 = vset.pattern.permute.xlu0 %v8915_v56  ;;  %7041 = vset.pattern.permute.xlu1 %v8913_v58 }
 0xbb0   : > { %4408 = vperm.xlu0 %7030, %v4173_v11   ;;  %4482 = vperm.xlu1 %7041, %v8299_v37  }
 0xbb4   : > { %7031 = vset.pattern.permute.xlu0 %v8916_v21  ;;  %7043 = vset.pattern.permute.xlu1 %v8916_v21  ;;  %v5480_v21 = vld [vmem:[%s8784_s4 + $0x70] sm:$0xff] }
 0xbb5   : > { %4345 = vperm.xlu0 %7031, %v4173_v11   ;;  %4512 = vperm.xlu1 %7043, %v8299_v37   ;;  %v4757_v52 = vand.u32 4294901760, %v5480_v21 }
 0xbb9   : > { %7032 = vset.pattern.permute.xlu0 %v8917_v4  ;;  %7044 = vset.pattern.permute.xlu1 %v8918_v5 }
 0xbba   : > { %4417 = vperm.xlu0 %7032, %v4173_v11   ;;  %4527 = vperm.xlu1 %7044, %v8299_v37  }
 0xbbe   : > { %7033 = vset.pattern.permute.xlu0 %v8918_v5  ;;  %7046 = vset.pattern.permute.xlu1 %v8910_v33  ;;  %v8374_v33 = vsub.f32 %v5474_v3, %v4739_v34 }
 0xbbf   : > { %4354 = vperm.xlu0 %7033, %v4173_v11   ;;  %4557 = vperm.xlu1 %7046, %v8299_v37  }
 0xbc0   : > { %v8855_v5 = vand.u32 4294901760, %v8374_v33 }
 0xbc2   : > { %v4835_v54 = vsub.f32 %v8374_v33, %v8855_v5 }
 0xbc3   : > { %7036 = vset.pattern.permute.xlu0 %v8919_v17  ;;  %7047 = vset.pattern.permute.xlu1 %v8907_v31  ;;  %v5476_v31 = vld [vmem:[%s8784_s4 + $0x50] sm:$0xff] }
 0xbc4   : > { %4435 = vperm.xlu0 %7036, %v4173_v11   ;;  %4572 = vperm.xlu1 %7047, %v8299_v37   ;;  %v4113_v11 = vmax.f32 %v8323_v23, 0.0  ;;  %v4745_v58 = vand.u32 4294901760, %v5476_v31 }
 0xbc8   : > { %7039 = vset.pattern.permute.xlu0 %v8920_v47  ;;  %7049 = vset.pattern.permute.xlu1 %v8914_v55  ;;  %v5479_v55 = vld [vmem:[%s8784_s4 + $0x68] sm:$0xff]  ;;  %v7154_v47 = vpop.eup %7153 }
 0xbc9   : > { %4602 = vperm.xlu1 %7049, %v8299_v37   ;;  %4452 = vperm.xlu0 %7039, %v8299_v37   ;;  %v4138_v39 = vmul.f32 0.6931472, %v7154_v47  ;;  %v8464_v47 = vsub.f32 %v5480_v21, %v4757_v52 }
 0xbcd   : > { %7050 = vset.pattern.permute.xlu1 %v8915_v56  ;;  %7042 = vset.pattern.permute.xlu0 %v8905_v0  ;;  %v4135_v0 = vsel %vm4134_vm2, %v4132_v6, %v4129_v59  ;;  %v4751_v56 = vand.u32 4294901760, %v5478_v51 }
 0xbce   : > { %4617 = vperm.xlu1 %7050, %v8299_v37   ;;  %4497 = vperm.xlu0 %7042, %v8299_v37  }
 0xbcf   : > { %v8443_v6 = vsub.f32 %v5478_v51, %v4751_v56 }
 0xbd2   : > { %7052 = vset.pattern.permute.xlu1 %v8906_v1  ;;  %7045 = vset.pattern.permute.xlu0 %v8908_v48  ;;  %v4139_v1 = vmul.f32 -0.5, %v7150_v38  ;;  %v5477_v48 = vld [vmem:[%s8784_s4 + $0x58] sm:$0xff] }
 0xbd3   : > { %4647 = vperm.xlu1 %7052, %v8299_v37   ;;  %4542 = vperm.xlu0 %7045, %v8299_v37  }
 0xbd4   : > { %v4140_v24 = vadd.f32 1.0, %v4139_v1 }
 0xbd6   : > { %v4141_v36 = vmul.f32 %v7150_v38, %v4140_v24  ;;  %v8424_v38 = vsub.f32 %v5476_v31, %v4745_v58 }
 0xbd7   : > { %7053 = vset.pattern.permute.xlu1 %v8919_v17  ;;  %7048 = vset.pattern.permute.xlu0 %v8911_v30  ;;  %v8376_v30 = vsub.f32 %v5475_v2, %v4742_v14  ;;  %v4760_v17 = vand.u32 4294901760, %v5481_v44 }
 0xbd8   : > { %4662 = vperm.xlu1 %7053, %v8299_v37   ;;  %4587 = vperm.xlu0 %7048, %v8299_v37   ;;  %v4144_v7 = vsel %vm4143_vm6, %v4141_v36, %v4138_v39  ;;  %v8853_v2 = vand.u32 4294901760, %v8424_v38 }
 0xbd9   : > { %v8854_v40 = vand.u32 4294901760, %v8376_v30  ;;  %v8407_v13 = vpack.c.bf16 %v4760_v17, %v4757_v52  ;;  %v4146_v8 = vadd.f32 %v4144_v7, %v4114_v32  ;;  %v8466_v24 = vsub.f32 %v5481_v44, %v4760_v17 }
 0xbda   : > { %v4849_v14 = vsub.f32 %v8424_v38, %v8853_v2 }
 0xbdb   : > { %v4842_v28 = vsub.f32 %v8376_v30, %v8854_v40  ;;  %8924 = vst [vmem:[#allocation9_spill] sm:$0xff] %v8407_v13  ;;  %v8435_v34 = vsel %vm4116_vm7, %v8337_v60, %v4146_v8  ;;  %v8851_v60 = vand.u32 4294901760, %v8443_v6 }
 0xbdc   : > { %4715 = vrot.lane.b32.xlu1 %v4711_v16, %s7264_s14  ;;  %7051 = vset.pattern.permute.xlu0 %v8917_v4  ;;  %v4754_v4 = vand.u32 4294901760, %v5479_v55  ;;  %v4836_v16 = vand.u32 4294901760, %v4835_v54  ;;  %v4850_v1 = vand.u32 4294901760, %v4849_v14 }
 0xbdd   : > { %4632 = vperm.xlu0 %7051, %v8299_v37   ;;  %v4843_v20 = vand.u32 4294901760, %v4842_v28 }
 0xbde   : > { %v8393_v61 = vpack.c.bf16 %v4754_v4, %v4751_v56  ;;  %v4863_v56 = vsub.f32 %v8443_v6, %v8851_v60 }
 0xbdf   : > { %v8418_v46 = vpack.c.bf16 %v4843_v20, %v4836_v16  ;;  %v8849_v16 = vand.u32 4294901760, %v8464_v47 }
 0xbe0   : > { %4717 = vrot.lane.b32.xlu1 %v4712_v62, %s7264_s14  ;;  %8923 = vst [vmem:[#allocation10_spill] sm:$0xff] %v8393_v61  ;;  %v8414_v62 = vld [vmem:[%s8785_s5 + $0x10] sm:$0xff]  ;;  %v4864_v42 = vand.u32 4294901760, %v4863_v56 }
 0xbe1   : > { %7054 = vset.pattern.permute.xlu0 %v8912_v57  ;;  %v4145_v57 = vadd.f32 %v4135_v0, %v4113_v11  ;;  %v8445_v0 = vsub.f32 %v5479_v55, %v4754_v4  ;;  %v4877_v21 = vsub.f32 %v8464_v47, %v8849_v16 }
 0xbe2   : > { %4677 = vperm.xlu0 %7054, %v8299_v37   ;;  %v4748_v37 = vand.u32 4294901760, %v5477_v48 }
 0xbe3   : > { %v8399_v26 = vsel %vm4115_vm5, %v8323_v23, %v4145_v57  ;;  %v4250_v57 = vrot.slane %v8435_v34, %v8902_v63  ;;  %v4878_v8 = vand.u32 4294901760, %v4877_v21 }
 0xbe4   : > { %v8388_v45 = vpack.c.bf16 %v4748_v37, %v4745_v58  ;;  %v4194_v23 = vrot.slane %v8399_v26, %v8902_v63  ;;  %v8426_v35 = vsub.f32 %v5477_v48, %v4748_v37  ;;  %v4201_v3 = vrot.slane %v8399_v26, %v8899_v53 }
 0xbe5   : > { %v8850_v48 = vand.u32 4294901760, %v8445_v0  ;;  %v4208_v58 = vrot.slane %v8399_v26, %v8901_v50  ;;  %v8470_v28 = vmul.f32 %v8399_v26, %v8238_v43  ;;  %v4251_v36 = vmul.f32 %v8414_v62, %v4250_v57 }
 0xbe6   : > { %8922 = vst [vmem:[#allocation17_spill] sm:$0xff] %v8388_v45  ;;  %6776 = vmatprep.subr.bf16.mxu1 %v8388_v45  ;;  %v4195_v49 = vmul.f32 %v8414_v62, %v4194_v23  ;;  %v8852_v27 = vand.u32 4294901760, %v8426_v35  ;;  %v4202_v11 = vmul.f32 %v8414_v62, %v4201_v3  ;;  %v8848_v23 = vand.u32 4294901760, %v8466_v24 }
 0xbe7   : > { %6778 = vmatpush3.bf16.msra.mxu1 %v8388_v45  ;;  %v4870_v4 = vsub.f32 %v8445_v0, %v8850_v48  ;;  %v4209_v20 = vmul.f32 %v8414_v62, %v4208_v58  ;;  %v4215_v17 = vrot.slane %v8399_v26, %v8900_v9  ;;  %v4257_v3 = vrot.slane %v8435_v34, %v8899_v53 }
 0xbe8   : > { %6780 = vmatprep.subr.bf16.mxu1 %v8393_v61  ;;  %v4196_v41 = vmul.f32 1.442695, %v4195_v49  ;;  %v4856_v59 = vsub.f32 %v8426_v35, %v8852_v27  ;;  %v4203_v54 = vmul.f32 1.442695, %v4202_v11  ;;  %v4884_v32 = vsub.f32 %v8466_v24, %v8848_v23 }
 0xbe9   : > { %v4871_v39 = vand.u32 4294901760, %v4870_v4  ;;  %v4306_v49 = vrot.slane %v8470_v28, %v8902_v63  ;;  %v4210_v14 = vmul.f32 1.442695, %v4209_v20  ;;  %v8494_v11 = vpack.c.bf16 %v8376_v30, %v8374_v33 }
 0xbea   : > { %7155 = vpow2.f32 %v4196_v41  ;;  %v4857_v31 = vand.u32 4294901760, %v4856_v59  ;;  %v4885_v59 = vand.u32 4294901760, %v4884_v32  ;;  %v8498_v57 = vpack.c.bf16 %v8426_v35, %v8424_v38 }
 0xbeb   : > { %6782 = vmatpush3.bf16.msra.mxu1 %v8393_v61  ;;  %v8476_v7 = vpack.c.bf16 %v4871_v39, %v4864_v42  ;;  %7157 = vpow2.f32 %v4203_v54  ;;  %v4216_v58 = vmul.f32 %v8414_v62, %v4215_v17  ;;  %v4258_v39 = vmul.f32 %v8414_v62, %v4257_v3 }
 0xbec   : > { %6784 = vmatprep.subr.bf16.mxu1 %v8407_v13  ;;  %v8456_v55 = vpack.c.bf16 %v4857_v31, %v4850_v1  ;;  %v4252_v31 = vmul.f32 1.442695, %v4251_v36  ;;  %v8501_v56 = vpack.c.bf16 %v4885_v59, %v4878_v8  ;;  %7159 = vpow2.f32 %v4210_v14 }
 0xbed   : > { %v8512_v36 = vpack.c.bf16 %v8445_v0, %v8443_v6  ;;  %v4217_v21 = vmul.f32 1.442695, %v4216_v58  ;;  %v4222_v17 = vrot.slane %v8399_v26, %v7376_v12  ;;  %v4259_v14 = vmul.f32 1.442695, %v4258_v39 }
 0xbee   : > { %7161 = vpow2.f32 %v4252_v31  ;;  %v8527_v31 = vmul.f32 %v8435_v34, %v8240_v29  ;;  %v4271_v23 = vrot.slane %v8435_v34, %v8900_v9 }
 0xbef   : > { %6786 = vmatpush3.bf16.msra.mxu1 %v8407_v13  ;;  %7163 = vpow2.f32 %v4217_v21  ;;  %v4223_v58 = vmul.f32 %v8414_v62, %v4222_v17 }
 0xbf0   : > { %6788 = vmatprep.subr.bf16.mxu1 %v8418_v46  ;;  %7165 = vpow2.f32 %v4259_v14  ;;  %v4379_v48 = vrot.slane %v8527_v31, %v8902_v63  ;;  %v4272_v14 = vmul.f32 %v8414_v62, %v4271_v23  ;;  %v4236_v63 = vrot.slane %v8399_v26, %v7389_v19 }
 0xbf1   : > { %v4224_v60 = vmul.f32 1.442695, %v4223_v58 }
 0xbf3   : > { %7167 = vpow2.f32 %v4224_v60 }
 0xbf4   : > { %v7156_v41 = vpop.eup %7155 }
 0xbf5   : > { %v4448_v4 = vmul.f32 0.0, %v7156_v41  ;;  %v7158_v8 = vpop.eup %7157 }
 0xbf6   : > { %v7160_v16 = vpop.eup %7159 }
 0xbf8   : > { %v7162_v17 = vpop.eup %7161 }
 0xbf9   : > { %v4569_v40 = vmul.f32 0.0, %v7162_v17  ;;  %v7164_v58 = vpop.eup %7163 }
 0xc11   : > { %v4310_v37 = vpop.permute.xlu0 %4309  ;;  %v8454_v51 = vpop.permute.xlu1 %4336 }
 0xc12   : > { %v4312_v1 = vmul.f32 %v4310_v37, %v4306_v49  ;;  %v4316_v37 = vrot.slane %v8470_v28, %v8899_v53  ;;  %v4264_v49 = vrot.slane %v8435_v34, %v8901_v50 }
 0xc14   : > { %v8506_v20 = vadd.f32 %v4448_v4, %v4312_v1  ;;  %v8523_v1 = vpack.c.bf16 %v8466_v24, %v8464_v47  ;;  %v4265_v4 = vmul.f32 %v8414_v62, %v4264_v49 }
 0xc16   : > { %v4382_v44 = vpop.permute.xlu0 %4381  ;;  %v8481_v52 = vpop.permute.xlu1 %4426  ;;  %v4464_v59 = vmul.f32 %v7158_v8, %v8506_v20  ;;  %8925 = vst [vmem:[#allocation8_spill] sm:$0xff] %v8523_v1  ;;  %v4266_v27 = vmul.f32 1.442695, %v4265_v4 }
 0xc18   : > { %7169 = vpow2.f32 %v4266_v27 }
 0xc1b   : > { %v4319_v54 = vpop.permute.xlu0 %4318  ;;  %v8503_v42 = vpop.permute.xlu1 %4363 }
 0xc1c   : > { %v4321_v32 = vmul.f32 %v4319_v54, %v4316_v37  ;;  %v4325_v37 = vrot.slane %v8470_v28, %v8901_v50 }
 0xc1e   : > { %v4465_v54 = vadd.f32 %v4464_v59, %v4321_v32  ;;  %v4384_v32 = vmul.f32 %v4382_v44, %v4379_v48  ;;  %v4229_v59 = vrot.slane %v8399_v26, %v7386_v18  ;;  %v4388_v44 = vrot.slane %v8527_v31, %v8899_v53 }
 0xc1f   : > { %v4243_v53 = vrot.slane %v8399_v26, %v7393_v25  ;;  %v4343_v26 = vrot.slane %v8470_v28, %v7376_v12 }
 0xc20   : > { %v4391_v41 = vpop.permute.xlu0 %4390  ;;  %v8518_v3 = vpop.permute.xlu1 %4372  ;;  %v4479_v49 = vmul.f32 %v7160_v16, %v4465_v54  ;;  %v4334_v16 = vrot.slane %v8470_v28, %v8900_v9  ;;  %v8546_v48 = vadd.f32 %v4569_v40, %v4384_v32  ;;  %v4230_v23 = vmul.f32 %v8414_v62, %v4229_v59 }
 0xc21   : > { %v4393_v27 = vmul.f32 %v4391_v41, %v4388_v44 }
 0xc25   : > { %v4328_v39 = vpop.permute.xlu0 %4327  ;;  %v8533_v8 = vpop.permute.xlu1 %4444 }
 0xc26   : > { %v4330_v21 = vmul.f32 %v4328_v39, %v4325_v37  ;;  %v4273_v37 = vmul.f32 1.442695, %v4272_v14  ;;  %v7166_v39 = vpop.eup %7165  ;;  %v4231_v14 = vmul.f32 1.442695, %v4230_v23  ;;  %v4285_v23 = vrot.slane %v8435_v34, %v7386_v18 }
 0xc27   : > { %v4584_v32 = vmul.f32 %v7166_v39, %v8546_v48 }
 0xc28   : > { %v4480_v2 = vadd.f32 %v4479_v49, %v4330_v21  ;;  %v4339_v21 = vmul.f32 %v8454_v51, %v4334_v16  ;;  %v4237_v49 = vmul.f32 %v8414_v62, %v4236_v63  ;;  %7171 = vpow2.f32 %v4273_v37 }
 0xc29   : > { %v8562_v44 = vadd.f32 %v4584_v32, %v4393_v27  ;;  %v4397_v51 = vrot.slane %v8527_v31, %v8901_v50  ;;  %7173 = vpow2.f32 %v4231_v14  ;;  %v4286_v1 = vmul.f32 %v8414_v62, %v4285_v23 }
 0xc2a   : > { %v4400_v5 = vpop.permute.xlu0 %4399  ;;  %v4468_v22 = vpop.permute.xlu1 %4467  ;;  %v4494_v60 = vmul.f32 %v7164_v58, %v4480_v2 }
 0xc2b   : > { %v4470_v10 = vmul.f32 %v4468_v22, %v4465_v54  ;;  %v4278_v22 = vrot.slane %v8435_v34, %v7376_v12  ;;  %v4402_v37 = vmul.f32 %v4400_v5, %v4397_v51 }
 0xc2c   : > { %v8559_v58 = vadd.f32 %v4494_v60, %v4339_v21 }
 0xc2d   : > { %v4471_v4 = vsel %vm1080_vm14, %v4470_v10, 0.0  ;;  %v4279_v41 = vmul.f32 %v8414_v62, %v4278_v22 }
 0xc2e   : > { %v4472_v54 = vrot.slane %v4471_v4, 4 }
 0xc2f   : > { %v4409_v17 = vpop.permute.xlu0 %4408  ;;  %v4483_v40 = vpop.permute.xlu1 %4482  ;;  %v4280_v32 = vmul.f32 1.442695, %v4279_v41 }
 0xc30   : > { %v4473_v10 = vadd.f32 %v4472_v54, %v4471_v4  ;;  %v4485_v59 = vmul.f32 %v4483_v40, %v4480_v2  ;;  %v4244_v2 = vmul.f32 %v8414_v62, %v4243_v53  ;;  %v7168_v4 = vpop.eup %7167  ;;  %v4238_v54 = vmul.f32 1.442695, %v4237_v49 }
 0xc31   : > { %v7170_v50 = vpop.eup %7169  ;;  %v4509_v40 = vmul.f32 %v7168_v4, %v8559_v58  ;;  %v8926_v49 = vand.u32 4294901760, %v8374_v33  ;;  %v4406_v33 = vrot.slane %v8527_v31, %v8900_v9  ;;  %v8931_v9 = vand.u32 4294901760, %v8445_v0 }
 0xc32   : > { %v4474_v16 = vrot.slane %v4473_v10, 2  ;;  %v4486_v63 = vsel %vm1080_vm14, %v4485_v59, 0.0  ;;  %v4599_v59 = vmul.f32 %v7170_v50, %v8562_v44  ;;  %v4245_v15 = vmul.f32 1.442695, %v4244_v2 }
 0xc33   : > { %v4487_v13 = vrot.slane %v4486_v63, 4  ;;  %7175 = vpow2.f32 %v4238_v54  ;;  %v8929_v2 = vand.u32 4294901760, %v8426_v35  ;;  %v4352_v54 = vrot.slane %v8470_v28, %v7386_v18 }
 0xc34   : > { %v4475_v60 = vadd.f32 %v4474_v16, %v4473_v10  ;;  %v4346_v22 = vpop.permute.xlu0 %4345  ;;  %v4513_v27 = vpop.permute.xlu1 %4512  ;;  %v8575_v5 = vadd.f32 %v4599_v59, %v4402_v37  ;;  %7177 = vpow2.f32 %v4280_v32  ;;  %v4287_v37 = vmul.f32 1.442695, %v4286_v1 }
 0xc35   : > { %v4488_v39 = vadd.f32 %v4487_v13, %v4486_v63  ;;  %v4348_v21 = vmul.f32 %v4346_v22, %v4343_v26  ;;  %v8927_v13 = vand.u32 4294901760, %v8376_v30  ;;  %v8928_v26 = vand.u32 4294901760, %v8424_v38 }
 0xc36   : > { %v4476_v61 = vrot.slane %v4475_v60, 1  ;;  %v4411_v38 = vmul.f32 %v4409_v17, %v4406_v33  ;;  %7179 = vpow2.f32 %v4245_v15  ;;  %v8930_v50 = vand.u32 4294901760, %v8443_v6 }
 0xc37   : > { %v4489_v53 = vrot.slane %v4488_v39, 2  ;;  %v4510_v45 = vadd.f32 %v4509_v40, %v4348_v21  ;;  %v8581_v14 = vpack.c.bf16 %v8927_v13, %v8926_v49  ;;  %v8587_v23 = vpack.c.bf16 %v8929_v2, %v8928_v26 }
 0xc38   : > { %v4477_v10 = vadd.f32 %v4476_v61, %v4475_v60  ;;  %v7172_v61 = vpop.eup %7171  ;;  %v4292_v60 = vrot.slane %v8435_v34, %v7389_v19  ;;  %7181 = vpow2.f32 %v4287_v37  ;;  %v4415_v6 = vrot.slane %v8527_v31, %v7376_v12 }
 0xc39   : > { %v4490_v51 = vadd.f32 %v4489_v53, %v4488_v39  ;;  %v4515_v41 = vmul.f32 %v4513_v27, %v4510_v45  ;;  %v4418_v16 = vpop.permute.xlu0 %4417  ;;  %v4528_v63 = vpop.permute.xlu1 %4527  ;;  %v4614_v22 = vmul.f32 %v7172_v61, %v8575_v5  ;;  %v8602_v39 = vpack.c.bf16 %v8931_v9, %v8930_v50 }
 0xc3a   : > { %4478 = vst.msk [vmem:[#allocation2 + $0x1] sm:$0x1] %vm2023_vm4, %v4477_v10  ;;  %v7174_v21 = vpop.eup %7173  ;;  %v4293_v15 = vmul.f32 %v8414_v62, %v4292_v60  ;;  %v4299_v0 = vrot.slane %v8435_v34, %v7393_v25  ;;  %v4361_v49 = vrot.slane %v8470_v28, %v7389_v19  ;;  %v4420_v33 = vmul.f32 %v4418_v16, %v4415_v6 }
 0xc3b   : > { %v4491_v30 = vrot.slane %v4490_v51, 1  ;;  %v4516_v4 = vsel %vm1080_vm14, %v4515_v41, 0.0  ;;  %v4524_v17 = vmul.f32 %v7174_v21, %v4510_v45  ;;  %v8606_v53 = vadd.f32 %v4614_v22, %v4411_v38 }
 0xc3c   : > { %v4517_v27 = vrot.slane %v4516_v4, 4  ;;  %v8933_v45 = vand.u32 4294901760, %v8466_v24  ;;  %v4294_v60 = vmul.f32 1.442695, %v4293_v15  ;;  %v4300_v24 = vmul.f32 %v8414_v62, %v4299_v0 }
 0xc3d   : > { %v4492_v35 = vadd.f32 %v4491_v30, %v4490_v51  ;;  %v8932_v51 = vand.u32 4294901760, %v8464_v47  ;;  %v7176_v26 = vpop.eup %7175  ;;  %v4366_v30 = vmul.f32 %v8503_v42, %v4361_v49 }
 0xc3e   : > { %v4518_v1 = vadd.f32 %v4517_v27, %v4516_v4  ;;  %v4355_v40 = vpop.permute.xlu0 %4354  ;;  %v4558_v32 = vpop.permute.xlu1 %4557  ;;  %v4370_v27 = vrot.slane %v8470_v28, %v7393_v25  ;;  %7183 = vpow2.f32 %v4294_v60 }
 0xc3f   : > { %4493 = vst.msk [vmem:[#allocation2 + $0x2] sm:$0x1] %vm2023_vm4, %v4492_v35  ;;  %v4357_v59 = vmul.f32 %v4355_v40, %v4352_v54  ;;  %v8618_v41 = vpack.c.bf16 %v8933_v45, %v8932_v51  ;;  %v7178_v61 = vpop.eup %7177 }
 0xc40   : > { %v4519_v10 = vrot.slane %v4518_v1, 2  ;;  %v4629_v38 = vmul.f32 %v7178_v61, %v8606_v53  ;;  %v7180_v42 = vpop.eup %7179  ;;  %v4375_v21 = vmul.f32 %v8518_v3, %v4370_v27  ;;  %v4424_v3 = vrot.slane %v8527_v31, %v7386_v18 }
 0xc41   : > { %v4525_v13 = vadd.f32 %v4524_v17, %v4357_v59  ;;  %v4301_v59 = vmul.f32 1.442695, %v4300_v24  ;;  %v4433_v61 = vrot.slane %v8527_v31, %v7389_v19 }
 0xc42   : > { %v4520_v2 = vadd.f32 %v4519_v10, %v4518_v1  ;;  %v8629_v54 = vadd.f32 %v4629_v38, %v4420_v33  ;;  %v7182_v17 = vpop.eup %7181 }
 0xc43   : > { %v4530_v12 = vmul.f32 %v4528_v63, %v4525_v13  ;;  %v4539_v4 = vmul.f32 %v7176_v26, %v4525_v13  ;;  %v4436_v37 = vpop.permute.xlu0 %4435  ;;  %v4573_v34 = vpop.permute.xlu1 %4572  ;;  %7185 = vpow2.f32 %v4301_v59 }
 0xc44   : > { %v4521_v22 = vrot.slane %v4520_v2, 1  ;;  %v4575_v47 = vmul.f32 %v4573_v34, %v8546_v48  ;;  %v4644_v13 = vmul.f32 %v7182_v17, %v8629_v54 }
 0xc45   : > { %v4531_v16 = vsel %vm1080_vm14, %v4530_v12, 0.0  ;;  %v8627_v35 = vadd.f32 %v4539_v4, %v4366_v30 }
 0xc46   : > { %v4522_v63 = vadd.f32 %v4521_v22, %v4520_v2  ;;  %v4532_v50 = vrot.slane %v4531_v16, 4  ;;  %v4576_v9 = vsel %vm1080_vm14, %v4575_v47, 0.0 }
 0xc47   : > { %v4554_v48 = vmul.f32 %v7180_v42, %v8627_v35  ;;  %v4577_v1 = vrot.slane %v4576_v9, 4 }
 0xc48   : > { %4523 = vst.msk [vmem:[#allocation2 + $0x4] sm:$0x1] %vm2023_vm4, %v4522_v63  ;;  %v4533_v62 = vadd.f32 %v4532_v50, %v4531_v16  ;;  %v4453_v28 = vpop.permute.xlu0 %4452  ;;  %v4603_v40 = vpop.permute.xlu1 %4602 }
 0xc49   : > { %v4555_v15 = vadd.f32 %v4554_v48, %v4375_v21  ;;  %v4578_v10 = vadd.f32 %v4577_v1, %v4576_v9  ;;  %v4455_v6 = vmul.f32 %v4453_v28, %v8506_v20  ;;  %v4605_v0 = vmul.f32 %v4603_v40, %v8575_v5 }
 0xc4a   : > { %v4534_v49 = vrot.slane %v4533_v62, 2  ;;  %v4429_v5 = vmul.f32 %v8481_v52, %v4424_v3  ;;  %v4438_v9 = vmul.f32 %v4436_v37, %v4433_v61 }
 0xc4b   : > { %v4560_v51 = vmul.f32 %v4558_v32, %v4555_v15  ;;  %v4579_v45 = vrot.slane %v4578_v10, 2  ;;  %v4456_v26 = vsel %vm1080_vm14, %v4455_v6, 0.0  ;;  %v4606_v2 = vsel %vm1080_vm14, %v4605_v0, 0.0 }
 0xc4c   : > { %v4535_v33 = vadd.f32 %v4534_v49, %v4533_v62  ;;  %v4457_v30 = vrot.slane %v4456_v26, 4  ;;  %v4607_v20 = vrot.slane %v4606_v2, 4  ;;  %v4645_v16 = vadd.f32 %v4644_v13, %v4429_v5  ;;  %v7184_v62 = vpop.eup %7183 }
 0xc4d   : > { %v4561_v12 = vsel %vm1080_vm14, %v4560_v51, 0.0  ;;  %v4580_v18 = vadd.f32 %v4579_v45, %v4578_v10  ;;  %v4498_v4 = vpop.permute.xlu0 %4497  ;;  %v4618_v34 = vpop.permute.xlu1 %4617 }
 0xc4e   : > { %v4536_v32 = vrot.slane %v4535_v33, 1  ;;  %v4562_v60 = vrot.slane %v4561_v12, 4  ;;  %v4458_v22 = vadd.f32 %v4457_v30, %v4456_v26  ;;  %v4608_v38 = vadd.f32 %v4607_v20, %v4606_v2  ;;  %v7186_v5 = vpop.eup %7185 }
 0xc4f   : > { %v4581_v47 = vrot.slane %v4580_v18, 1  ;;  %v4500_v24 = vmul.f32 %v4498_v4, %v8559_v58  ;;  %v4620_v27 = vmul.f32 %v4618_v34, %v8606_v53  ;;  %v4659_v6 = vmul.f32 %v7184_v62, %v4645_v16 }
 0xc50   : > { %v4537_v42 = vadd.f32 %v4536_v32, %v4535_v33  ;;  %v4563_v63 = vadd.f32 %v4562_v60, %v4561_v12  ;;  %v4459_v50 = vrot.slane %v4458_v22, 2  ;;  %v4609_v52 = vrot.slane %v4608_v38, 2 }
 0xc51   : > { %v4582_v21 = vadd.f32 %v4581_v47, %v4580_v18  ;;  %v4501_v48 = vsel %vm1080_vm14, %v4500_v24, 0.0  ;;  %v4621_v1 = vsel %vm1080_vm14, %v4620_v27, 0.0  ;;  %v4660_v2 = vadd.f32 %v4659_v6, %v4438_v9 }
 0xc52   : > { %4538 = vst.msk [vmem:[#allocation2 + $0x5] sm:$0x1] %vm2023_vm4, %v4537_v42  ;;  %v4564_v28 = vrot.slane %v4563_v63, 2  ;;  %v4460_v40 = vadd.f32 %v4459_v50, %v4458_v22  ;;  %v4610_v59 = vadd.f32 %v4609_v52, %v4608_v38  ;;  %v4502_v58 = vrot.slane %v4501_v48, 4  ;;  %v4543_v17 = vpop.permute.xlu0 %4542  ;;  %v4648_v53 = vpop.permute.xlu1 %4647 }
 0xc53   : > { %4583 = vst.msk [vmem:[#allocation2 + $0x8] sm:$0x1] %vm2023_vm4, %v4582_v21  ;;  %v4622_v15 = vrot.slane %v4621_v1, 4  ;;  %v4545_v10 = vmul.f32 %v4543_v17, %v8627_v35  ;;  %v4650_v37 = vmul.f32 %v4648_v53, %v4645_v16 }
 0xc54   : > { %v4565_v0 = vadd.f32 %v4564_v28, %v4563_v63  ;;  %v4461_v3 = vrot.slane %v4460_v40, 1  ;;  %v4611_v49 = vrot.slane %v4610_v59, 1  ;;  %v4503_v13 = vadd.f32 %v4502_v58, %v4501_v48 }
 0xc55   : > { %v4623_v51 = vadd.f32 %v4622_v15, %v4621_v1  ;;  %v4546_v45 = vsel %vm1080_vm14, %v4545_v10, 0.0  ;;  %v4651_v26 = vsel %vm1080_vm14, %v4650_v37, 0.0  ;;  %v4442_v48 = vrot.slane %v8527_v31, %v7393_v25 }
 0xc56   : > { %v4566_v33 = vrot.slane %v4565_v0, 1  ;;  %v4462_v61 = vadd.f32 %v4461_v3, %v4460_v40  ;;  %v4612_v30 = vadd.f32 %v4611_v49, %v4610_v59  ;;  %v4504_v20 = vrot.slane %v4503_v13, 2 }
 0xc57   : > { %v4624_v12 = vrot.slane %v4623_v51, 2  ;;  %v4547_v18 = vrot.slane %v4546_v45, 4  ;;  %v4652_v35 = vrot.slane %v4651_v26, 4  ;;  %v4588_v4 = vpop.permute.xlu0 %4587  ;;  %v4663_v34 = vpop.permute.xlu1 %4662  ;;  %v4674_v28 = vmul.f32 %v7186_v5, %v4660_v2  ;;  %v7193_v5 = vld [vmem:[%s8785_s5 + $0x18] sm:$0x7f] }
 0xc58   : > { %v4567_v32 = vadd.f32 %v4566_v33, %v4565_v0  ;;  %4463 = vst.msk [vmem:[#allocation2] sm:$0x1] %vm2023_vm4, %v4462_v61  ;;  %4613 = vst.msk [vmem:[#allocation2 + $0xa] sm:$0x1] %vm2023_vm4, %v4612_v30  ;;  %v4505_v60 = vadd.f32 %v4504_v20, %v4503_v13  ;;  %v4590_v22 = vmul.f32 %v4588_v4, %v8562_v44 }
 0xc59   : > { %v4665_v38 = vmul.f32 %v4663_v34, %v4660_v2  ;;  %v4625_v47 = vadd.f32 %v4624_v12, %v4623_v51  ;;  %v4548_v24 = vadd.f32 %v4547_v18, %v4546_v45  ;;  %v4653_v27 = vadd.f32 %v4652_v35, %v4651_v26 }
 0xc5a   : > { %4568 = vst.msk [vmem:[#allocation2 + $0x7] sm:$0x1] %vm2023_vm4, %v4567_v32  ;;  %v4506_v16 = vrot.slane %v4505_v60, 1  ;;  %v4591_v42 = vsel %vm1080_vm14, %v4590_v22, 0.0  ;;  %v4447_v53 = vmul.f32 %v8533_v8, %v4442_v48  ;;  %v4694_v12 = vrot.slane %v7193_v5, %v7389_v19  ;;  %v7194_v5 = vld [vmem:[%s8781_s1] sm:$0xff] }
 0xc5b   : > { %v4666_v63 = vsel %vm1080_vm14, %v4665_v38, 0.0  ;;  %v4626_v50 = vrot.slane %v4625_v47, 1  ;;  %v4549_v52 = vrot.slane %v4548_v24, 2  ;;  %v4654_v9 = vrot.slane %v4653_v27, 2 }
 0xc5c   : > { %v4592_v21 = vrot.slane %v4591_v42, 4  ;;  %v4507_v1 = vadd.f32 %v4506_v16, %v4505_v60  ;;  %v4667_v44 = vrot.slane %v4666_v63, 4  ;;  %v4633_v62 = vpop.permute.xlu0 %4632  ;;  %v4675_v3 = vadd.f32 %v4674_v28, %v4447_v53 }
 0xc5d   : > { %v4627_v40 = vadd.f32 %v4626_v50, %v4625_v47  ;;  %v4550_v59 = vadd.f32 %v4549_v52, %v4548_v24  ;;  %v4655_v58 = vadd.f32 %v4654_v9, %v4653_v27  ;;  %v4635_v10 = vmul.f32 %v4633_v62, %v8629_v54 }
 0xc5e   : > { %v4593_v17 = vadd.f32 %v4592_v21, %v4591_v42  ;;  %4508 = vst.msk [vmem:[#allocation2 + $0x3] sm:$0x1] %vm2023_vm4, %v4507_v1  ;;  %v4668_v15 = vadd.f32 %v4667_v44, %v4666_v63  ;;  %v4695_v60 = vmul.f32 %v4694_v12, %v8238_v43  ;;  %v4716_v42 = vpop.permute.xlu1 %4715  ;;  %v4696_v1 = vmul.f32 %v4694_v12, %v8240_v29  ;;  %v8934_v29 = vld [vmem:[#allocation8_spill] sm:$0xff] }
 0xc5f   : > { %4628 = vst.msk [vmem:[#allocation2 + $0xb] sm:$0x1] %vm2023_vm4, %v4627_v40  ;;  %v4551_v37 = vrot.slane %v4550_v59, 1  ;;  %v4656_v6 = vrot.slane %v4655_v58, 1  ;;  %v4636_v0 = vsel %vm1080_vm14, %v4635_v10, 0.0  ;;  %v5335_v12 = vrot.slane %v7194_v5, 3 }
 0xc60   : > { %v4594_v25 = vrot.slane %v4593_v17, 2  ;;  %v4669_v31 = vrot.slane %v4668_v15, 2  ;;  %v4637_v45 = vrot.slane %v4636_v0, 4 }
 0xc61   : > { %v4552_v49 = vadd.f32 %v4551_v37, %v4550_v59  ;;  %v4657_v13 = vadd.f32 %v4656_v6, %v4655_v58  ;;  %v4678_v26 = vpop.permute.xlu0 %4677 }
 0xc62   : > { %v4595_v51 = vadd.f32 %v4594_v25, %v4593_v17  ;;  %v4670_v8 = vadd.f32 %v4669_v31, %v4668_v15  ;;  %v4680_v2 = vmul.f32 %v4678_v26, %v4675_v3  ;;  %v4638_v33 = vadd.f32 %v4637_v45, %v4636_v0  ;;  %v4718_v40 = vpop.permute.xlu1 %4717 }
 0xc63   : > { %4553 = vst.msk [vmem:[#allocation2 + $0x6] sm:$0x1] %vm2023_vm4, %v4552_v49  ;;  %4658 = vst.msk [vmem:[#allocation2 + $0xd] sm:$0x1] %vm2023_vm4, %v4657_v13 }
 0xc64   : > { %v4596_v54 = vrot.slane %v4595_v51, 1  ;;  %v4671_v61 = vrot.slane %v4670_v8, 1  ;;  %v4681_v30 = vsel %vm1080_vm14, %v4680_v2, 0.0  ;;  %v4639_v18 = vrot.slane %v4638_v33, 2 }
 0xc65   : > { %v4682_v35 = vrot.slane %v4681_v30, 4 }
 0xc66   : > { %v4597_v20 = vadd.f32 %v4596_v54, %v4595_v51  ;;  %v4672_v4 = vadd.f32 %v4671_v61, %v4670_v8  ;;  %v4640_v34 = vadd.f32 %v4639_v18, %v4638_v33 }
 0xc67   : > { %v4683_v32 = vadd.f32 %v4682_v35, %v4681_v30 }
 0xc68   : > { %4598 = vst.msk [vmem:[#allocation2 + $0x9] sm:$0x1] %vm2023_vm4, %v4597_v20  ;;  %4673 = vst.msk [vmem:[#allocation2 + $0xe] sm:$0x1] %vm2023_vm4, %v4672_v4  ;;  %v4641_v22 = vrot.slane %v4640_v34, 1  ;;  %v5338_v4 = vrot.slane %v7194_v5, 4 }
 0xc69   : > { %v4684_v38 = vrot.slane %v4683_v32, 2 }
 0xc6a   : > { %v4689_v47 = vld [vmem:[#allocation2] sm:$0xff]  ;;  %v4642_v27 = vadd.f32 %v4641_v22, %v4640_v34 }
 0xc6b   : > { %v4697_v24 = vadd.f32 %v4695_v60, %v4689_v47  ;;  %v4685_v16 = vadd.f32 %v4684_v38, %v4683_v32 }
 0xc6c   : > { %4643 = vst.msk [vmem:[#allocation2 + $0xc] sm:$0x1] %vm2023_vm4, %v4642_v27 }
 0xc6d   : > { %v4721_v63 = vmul.f32 %v4716_v42, %v4697_v24  ;;  %v4686_v19 = vrot.slane %v4685_v16, 1 }
 0xc6f   : > { %v4733_v50 = vsel %vm1080_vm14, %v4721_v63, 0  ;;  %v4687_v52 = vadd.f32 %v4686_v19, %v4685_v16 }
 0xc70   : > { %v4811_v9 = vand.u32 4294901760, %v4733_v50 }
 0xc71   : > { %4688 = vst.msk [vmem:[#allocation2 + $0xf] sm:$0x1] %vm2023_vm4, %v4687_v52 }
 0xc72   : > { %v4812_v21 = vsub.f32 %v4733_v50, %v4811_v9 }
 0xc74   : > { %v4813_v48 = vand.u32 4294901760, %v4812_v21 }
 0xc76   : > { %v4814_v43 = vsub.f32 %v4812_v21, %v4813_v48 }
 0xc78   : > { %v4815_v44 = vand.u32 4294901760, %v4814_v43  ;;  %v4690_v62 = vld [vmem:[#allocation2 + $0x8] sm:$0xff] }
 0xc79   : > { %v4698_v28 = vadd.f32 %v4696_v1, %v4690_v62 }
 0xc7a   : > { %6289 = vmatprep.mubr.f32.mxu1 %v4815_v44 }
 0xc7b   : > { %v4722_v59 = vmul.f32 %v4718_v40, %v4698_v28 }
 0xc7d   : > { %v4736_v58 = vsel %vm1080_vm14, %v4722_v59, 0 }
 0xc7e   : > { %v4821_v17 = vand.u32 4294901760, %v4736_v58 }
 0xc80   : > { %v4822_v53 = vsub.f32 %v4736_v58, %v4821_v17 }
 0xc82   : > { %v4823_v15 = vand.u32 4294901760, %v4822_v53 }
 0xc84   : > { %v4824_v10 = vsub.f32 %v4822_v53, %v4823_v15 }
 0xc86   : > { %v4825_v37 = vand.u32 4294901760, %v4824_v10 }
 0xc88   : > { %6290 = vmatmul.mubr.f32.vlgmr.msra.gmra.mrb[4].mxu1 %v4825_v37 }
 0xc89   : > { %6790 = vmatpush3.bf16.msra.mxu1 %v8418_v46  ;;  %6308 = vmatprep.mubr.f32.mxu1 %v4811_v9  ;;  %v8935_v46 = vld [vmem:[#allocation16_spill] sm:$0xff] }
 0xc8a   : > { %6792 = vmatprep.subr.bf16.mxu1 %v8456_v55 }
 0xc8d   : > { %6794 = vmatpush3.bf16.msra.mxu1 %v8456_v55  ;;  %v8936_v55 = vld [vmem:[#allocation17_spill] sm:$0xff] }
 0xc8e   : > { %6796 = vmatprep.subr.bf16.mxu1 %v8476_v7 }
 0xc91   : > { %6798 = vmatpush3.bf16.msra.mxu1 %v8476_v7  ;;  %v8937_v7 = vld [vmem:[#allocation10_spill] sm:$0xff] }
 0xc92   : > { %6800 = vmatprep.subr.bf16.mxu1 %v8501_v56 }
 0xc95   : > { %6802 = vmatpush3.bf16.msra.mxu1 %v8501_v56  ;;  %v8939_v56 = vld [vmem:[#allocation14_spill] sm:$0xff] }
 0xc96   : > { %6804 = vmatprep.subr.bf16.mxu1 %v8494_v11 }
 0xc98   : > { %6309 = vmatmul.mubr.f32.vlgmr.msra.gmra.mrb[4].mxu1 %v4821_v17 }
 0xc99   : > { %6806 = vmatpush3.bf16.msra.mxu1 %v8494_v11  ;;  %6327 = vmatprep.mubr.f32.mxu1 %v4812_v21  ;;  %v8938_v11 = vld [vmem:[#allocation9_spill] sm:$0xff] }
 0xc9a   : > { %6808 = vmatprep.subr.bf16.mxu1 %v8498_v57 }
 0xc9d   : > { %6810 = vmatpush3.bf16.msra.mxu1 %v8498_v57 }
 0xc9e   : > { %6812 = vmatprep.subr.bf16.mxu1 %v8512_v36 }
 0xca1   : > { %6814 = vmatpush3.bf16.msra.mxu1 %v8512_v36 }
 0xca2   : > { %6816 = vmatprep.subr.bf16.mxu1 %v8934_v29 }
 0xca5   : > { %6818 = vmatpush3.bf16.msra.mxu1 %v8934_v29 }
 0xca6   : > { %6820 = vmatprep.subr.bf16.mxu1 %v8935_v46 }
 0xca8   : > { %6328 = vmatmul.mubr.f32.vlgmr.msra.gmra.mrb[4].mxu1 %v4822_v53 }
 0xca9   : > { %6822 = vmatpush3.bf16.msra.mxu1 %v8935_v46  ;;  %6346 = vmatprep.mubr.f32.mxu1 %v4813_v48 }
 0xcaa   : > { %6824 = vmatprep.subr.bf16.mxu1 %v8936_v55 }
 0xcad   : > { %6826 = vmatpush3.bf16.msra.mxu1 %v8936_v55 }
 0xcae   : > { %6828 = vmatprep.subr.bf16.mxu1 %v8937_v7 }
 0xcb1   : > { %6830 = vmatpush3.bf16.msra.mxu1 %v8937_v7 }
 0xcb2   : > { %6832 = vmatprep.subr.bf16.mxu1 %v8938_v11 }
 0xcb5   : > { %6834 = vmatpush3.bf16.msra.mxu1 %v8938_v11 }
 0xcb6   : > { %6836 = vmatprep.subr.bf16.mxu1 %v8581_v14 }
 0xcb8   : > { %6347 = vmatmul.mubr.f32.vlgmr.msra.gmra.mrb[4].mxu1 %v4823_v15 }
 0xcb9   : > { %6838 = vmatpush3.bf16.msra.mxu1 %v8581_v14  ;;  %6365 = vmatprep.mubr.f32.mxu1 %v4811_v9 }
 0xcba   : > { %6840 = vmatprep.subr.bf16.mxu1 %v8587_v23 }
 0xcbd   : > { %6842 = vmatpush3.bf16.msra.mxu1 %v8587_v23  ;;  %v8940_v23 = vld [vmem:[#allocation15_spill] sm:$0xff] }
 0xcbe   : > { %6844 = vmatprep.subr.bf16.mxu1 %v8602_v39 }
 0xcc1   : > { %6846 = vmatpush3.bf16.msra.mxu1 %v8602_v39 }
 0xcc2   : > { %6848 = vmatprep.subr.bf16.mxu1 %v8618_v41 }
 0xcc5   : > { %6850 = vmatpush3.bf16.msra.mxu1 %v8618_v41 }
 0xcc6   : > { %6852 = vmatprep.subr.bf16.mxu1 %v8935_v46 }
 0xcc8   : > { %6366 = vmatmul.mubr.f32.vlgmr.msra.gmra.mrb[4].mxu1 %v4821_v17 }
 0xcc9   : > { %6854 = vmatpush3.bf16.msra.mxu1 %v8935_v46  ;;  %6384 = vmatprep.mubr.f32.mxu1 %v4811_v9 }
 0xcca   : > { %6856 = vmatprep.subr.bf16.mxu1 %v8936_v55 }
 0xccd   : > { %6858 = vmatpush3.bf16.msra.mxu1 %v8936_v55 }
 0xcce   : > { %6860 = vmatprep.subr.bf16.mxu1 %v8937_v7 }
 0xcd1   : > { %6862 = vmatpush3.bf16.msra.mxu1 %v8937_v7 }
 0xcd2   : > { %6864 = vmatprep.subr.bf16.mxu1 %v8938_v11 }
 0xcd5   : > { %6866 = vmatpush3.bf16.msra.mxu1 %v8938_v11 }
 0xcd8   : > { %6385 = vmatmul.mubr.f32.vlgmr.msra.gmra.mrb[4].mxu1 %v4821_v17 }
 0xdab   : > { %v6386_v57 = vpop.f32.mrb[4].mxu1 }
 0xdac   : > { %v5319_v36 = vadd.f32 %v6386_v57, %v8939_v56  ;;  %v5308_v14 = vpop.f32.mrb[5].mxu1 }
 0xdad   : > { %v5318_v39 = vadd.f32 %v5308_v14, %v8940_v23 }
 0xdae   : > { %v5348_v41 = vsel %vm5320_vm8, %v5319_v36, 0.0 }
 0xdaf   : > { %5349 = vadd.xlane.f32.xlu1 %v5348_v41  ;;  %v5321_v6 = vsel %vm5320_vm8, %v5318_v39, 0.0 }
 0xdb0   : > { %5322 = vadd.xlane.f32.xlu0 %v5321_v6 }
 0xe3c   : > { %v5350_v25 = vpop.xlane.xlu1 %5349 }
 0xe3d   : > { %v5351_v31 = vmul.f32 0.03125, %v5350_v25  ;;  %v5323_v0 = vpop.xlane.xlu0 %5322 }
 0xe3e   : > { %v5324_v3 = vmul.f32 0.03125, %v5323_v0 }
 0xe3f   : > { %v5352_v49 = vsub.f32 %v5319_v36, %v5351_v31 }
 0xe40   : > { %v5325_v13 = vsub.f32 %v5318_v39, %v5324_v3 }
 0xe41   : > { %v5353_v26 = vmul.f32 %v5352_v49, %v5352_v49 }
 0xe42   : > { %v5326_v51 = vmul.f32 %v5325_v13, %v5325_v13 }
 0xe43   : > { %v5354_v8 = vsel %vm5320_vm8, %v5353_v26, 0.0 }
 0xe44   : > { %v5327_v45 = vsel %vm5320_vm8, %v5326_v51, 0.0 }
 0xe45   : > { %5328 = vadd.xlane.f32.xlu0 %v5327_v45 }
 0xe49   : > { %5355 = vadd.xlane.f32.xlu0 %v5354_v8 }
 0xed2   : > { %v5329_v2 = vpop.xlane.xlu0 %5328 }
 0xed3   : > { %v5330_v54 = vmul.f32 0.03125, %v5329_v2 }
 0xed5   : > { %v5331_v33 = vadd.f32 1e-05, %v5330_v54 }
 0xed6   : > { %v5356_v61 = vpop.xlane.xlu0 %5355 }
 0xed7   : > { %7187 = vrsqrt.f32 %v5331_v33  ;;  %v5357_v30 = vmul.f32 0.03125, %v5356_v61 }
 0xed9   : > { %v5358_v20 = vadd.f32 1e-05, %v5357_v30 }
 0xedb   : > { %7189 = vrsqrt.f32 %v5358_v20 }
 0xee1   : > { %v7188_v18 = vpop.eup %7187 }
 0xee2   : > { %v5333_v35 = vmul.f32 %v7188_v18, %v5325_v13 }
 0xee4   : > { %v5337_v34 = vmul.f32 %v5335_v12, %v5333_v35 }
 0xee5   : > { %v7190_v32 = vpop.eup %7189 }
 0xee6   : > { %v5360_v60 = vmul.f32 %v7190_v32, %v5352_v49  ;;  %v5340_v22 = vadd.f32 %v5338_v4, %v5337_v34 }
 0xee8   : > { %v5361_v38 = vmul.f32 %v5360_v60, %v5335_v12  ;;  %vm5341_vm9 = vcmp.ne.f32.partialorder %v5340_v22, %v5340_v22 }
 0xee9   : > { %v5342_v47 = vsel %vm5341_vm9, 0.0, %v5340_v22 }
 0xeea   : > { %vm5343_vm10 = vcmp.eq.f32.partialorder %v5342_v47, inf  ;;  %v5362_v24 = vadd.f32 %v5361_v38, %v5338_v4 }
 0xeeb   : > { %v5344_v27 = vsel %vm5343_vm10, 1.0, %v5342_v47 }
 0xeec   : > { %vm5345_vm11 = vcmp.eq.f32.partialorder %v5344_v27, -inf  ;;  %vm5363_vm12 = vcmp.ne.f32.partialorder %v5362_v24, %v5362_v24 }
 0xeed   : > { %v5346_v16 = vsel %vm5345_vm11, -1.0, %v5344_v27  ;;  %v5364_v42 = vsel %vm5363_vm12, 0.0, %v5362_v24 }
 0xeee   : > { %5347 = vst.msk [vmem:[%s244_s16 - $0x7] sm:$0x80] %vm5320_vm8, %v5346_v16  ;;  %vm5365_vm13 = vcmp.eq.f32.partialorder %v5364_v42, inf }
 0xeef   : > { %v5366_v63 = vsel %vm5365_vm13, 1.0, %v5364_v42 }
 0xef0   : > { %vm5367_vm14 = vcmp.eq.f32.partialorder %v5366_v63, -inf }
 0xef1   : > { %v5368_v19 = vsel %vm5367_vm14, -1.0, %v5366_v63 }
 0xef2   : > { %5369 = vst.msk [vmem:[%s244_s16 - $0x6] sm:$0x80] %vm5320_vm8, %v5368_v19 }
 0xef3   : > { %7208 = shalt.err (!%p7205_p3)
}
 0xef4   : > { %s7209_s14 = scalar_lea.hbm %s8737_s20, 32  ;;  %s7213_s12 = scalar_lea.hbm %s8786_s6, 64 }
 0xef5   : > { %p7210_p4 = scmp.ne.s32.totalorder %s8737_s20, %s7209_s14  ;;  %p7214_p9 = scmp.lt.u32.totalorder %s8737_s20, %s8786_s6 }
 0xef6   : > { %p7215_p10 = scmp.lt.u32.totalorder %s7213_s12, %s7209_s14  ;;  %p7217_p12 = scmp.lt.u32.totalorder %s7209_s14, %s8737_s20 }
 0xef7   : > { %p7211_p7 = pnand %p7210_p4, %p7351_p5 }
 0xef8   : > { %p7216_p11 = por %p7215_p10, %p7214_p9 }
 0xef9   : > { %p7212_p8 = pneg %p7211_p7 }
 0xefa   : > { %p7218_p13 = por %p7217_p12, %p7216_p11 }
 0xefc   : > { %p7219_p0 = pnand %p7218_p13, %p7212_p8 }
 0xefe   : > { %7222 = shalt.err (!%p7219_p0)
}
 0xeff   : > { %6927 = dma.vmem_to_hbm [thread:$0]  (%p7351_p5), %s8739_s17, 32, %s8737_s20, %s5371_s25  }
 0xf00 PF: > { %p6933_p1 = scmp.ge.s32.totalorder %s7257_s24, 2  ;;  %s5396_s16 = sand.u32 1, %s7245_s21  }
 0xf01   : > { %s5397_s18 = scalar_lea.sflag [#allocation4], %s5396_s16 }
 0xf02   : > { %p6930_p2 = pnand %p6933_p1, %p7355_p6 }
 0xf04   : > { %7240 = dma.done.wait (!%p6930_p2), %s5397_s18, 32  }
 0xf05   : > { %7242 = vsyncadd (!%p6930_p2), %s5397_s18, 4294967264  ;;  %p16_p3 = scmp.ge.s32.totalorder %s7338_s27, 4   ;;  %s8941_s21 = smov %s7249_s22 }
 0xf06   : > { %s8942_s22 = smov %s7253_s23  ;;  %s8943_s23 = smov %s7349_s30 }
 0xf07   : > { %s8944_s24 = smov %s7338_s27  ;;  %18 = sbr.rel (!%p16_p3) target bundleno = 3 (0x3), region = 83 }
 0xf0e   :  { %5402 = vsyncpa [#allocation4], 1 }
 0xf0f   :  { %5404 = vsyncpa [#allocation4 + $0x1], 1 }

</bundles_post_ra>
